<compile_context>
chip_gen: v7x
topology: tpu7x:2x2x1
jax: 0.10.0
libtpu: 0.0.40
codegen_flags: <defaults>
</compile_context>

<pallas_src>
import functools
import math

import jax
import jax.numpy as jnp
from jax.experimental import pallas as pl
from jax.experimental.pallas import tpu as pltpu


# ---------------------------------------------------------------------------
# Tile-size helpers (respect the (8, 128) block constraints, fall back to the
# full dimension when it does not divide nicely).
# ---------------------------------------------------------------------------
def _pick_sublane_tile(n, pref=256):
    for t in (pref, 256, 128, 64, 32, 16, 8):
        if t <= pref and n % t == 0:
            return t
    return n


def _pick_lane_tile(n, pref=512):
    for t in (pref, 512, 384, 256, 128):
        if t <= pref and t % 128 == 0 and n % t == 0:
            return t
    return n  # full dimension (always legal as a block extent)


# ---------------------------------------------------------------------------
# Kernel 1: tiled matmul + bias (+ optional ReLU), fp32 accumulator in VMEM.
# Used for the fused QKV projection and the first FFN matmul.
# ---------------------------------------------------------------------------
def _matmul_bias_kernel(x_ref, w_ref, b_ref, o_ref, acc_ref, *, activation):
    @pl.when(pl.program_id(2) == 0)
    def _():
        acc_ref[...] = jnp.zeros_like(acc_ref)

    acc_ref[...] += jnp.dot(x_ref[...], w_ref[...],
                            preferred_element_type=jnp.float32)

    @pl.when(pl.program_id(2) == pl.num_programs(2) - 1)
    def _():
        r = acc_ref[...] + b_ref[...].astype(jnp.float32)
        if activation == "relu":
            r = jnp.maximum(r, 0.0)
        o_ref[...] = r.astype(o_ref.dtype)


def matmul_bias(x, w, b, activation=None):
    """x: (M, K), w: (K, N), b: (N,) -> act(x @ w + b), all lane-dense."""
    M, K = x.shape
    K2, N = w.shape
    assert K == K2 and b.shape == (N,)
    tm = _pick_sublane_tile(M, pref=256)
    tn = _pick_lane_tile(N, pref=512)
    tk = _pick_lane_tile(K, pref=512)
    grid = (M // tm, N // tn, K // tk)
    kernel = functools.partial(_matmul_bias_kernel, activation=activation)
    return pl.pallas_call(
        kernel,
        out_shape=jax.ShapeDtypeStruct((M, N), x.dtype),
        grid_spec=pltpu.PrefetchScalarGridSpec(
            num_scalar_prefetch=0,
            grid=grid,
            in_specs=[
                pl.BlockSpec((tm, tk), lambda i, j, k: (i, k)),
                pl.BlockSpec((tk, tn), lambda i, j, k: (k, j)),
                pl.BlockSpec((1, tn), lambda i, j, k: (0, j)),
            ],
            out_specs=pl.BlockSpec((tm, tn), lambda i, j, k: (i, j)),
            scratch_shapes=[pltpu.VMEM((tm, tn), jnp.float32)],
        ),
        compiler_params=pltpu.CompilerParams(
            dimension_semantics=("parallel", "parallel", "arbitrary")),
    )(x, w, b.reshape(1, N))


# ---------------------------------------------------------------------------
# Kernel 2: fused matmul + bias + residual add + LayerNorm (post-norm).
# Output N dimension is kept whole per tile so the row reduction for
# LayerNorm can happen in the matmul finalize step (saves an HBM round trip).
# ---------------------------------------------------------------------------
def _matmul_res_ln_kernel(x_ref, w_ref, b_ref, res_ref, g_ref, beta_ref,
                          o_ref, acc_ref, *, eps):
    @pl.when(pl.program_id(1) == 0)
    def _():
        acc_ref[...] = jnp.zeros_like(acc_ref)

    acc_ref[...] += jnp.dot(x_ref[...], w_ref[...],
                            preferred_element_type=jnp.float32)

    @pl.when(pl.program_id(1) == pl.num_programs(1) - 1)
    def _():
        s = (acc_ref[...] + b_ref[...].astype(jnp.float32)
             + res_ref[...].astype(jnp.float32))
        mean = jnp.mean(s, axis=-1, keepdims=True)
        c = s - mean
        var = jnp.mean(c * c, axis=-1, keepdims=True)
        r = c * jax.lax.rsqrt(var + eps)
        r = r * g_ref[...].astype(jnp.float32) + beta_ref[...].astype(jnp.float32)
        o_ref[...] = r.astype(o_ref.dtype)


def matmul_bias_residual_layernorm(x, w, b, residual, gamma, beta, eps=1e-5):
    """LayerNorm(residual + x @ w + b) with per-row stats (PyTorch post-norm)."""
    M, K = x.shape
    K2, N = w.shape
    assert K == K2 and residual.shape == (M, N)
    tm = _pick_sublane_tile(M, pref=256)
    tk = _pick_lane_tile(K, pref=512)
    grid = (M // tm, K // tk)
    return pl.pallas_call(
        functools.partial(_matmul_res_ln_kernel, eps=eps),
        out_shape=jax.ShapeDtypeStruct((M, N), x.dtype),
        grid_spec=pltpu.PrefetchScalarGridSpec(
            num_scalar_prefetch=0,
            grid=grid,
            in_specs=[
                pl.BlockSpec((tm, tk), lambda i, k: (i, k)),
                pl.BlockSpec((tk, N), lambda i, k: (k, 0)),
                pl.BlockSpec((1, N), lambda i, k: (0, 0)),
                pl.BlockSpec((tm, N), lambda i, k: (i, 0)),
                pl.BlockSpec((1, N), lambda i, k: (0, 0)),
                pl.BlockSpec((1, N), lambda i, k: (0, 0)),
            ],
            out_specs=pl.BlockSpec((tm, N), lambda i, k: (i, 0)),
            scratch_shapes=[pltpu.VMEM((tm, N), jnp.float32)],
        ),
        compiler_params=pltpu.CompilerParams(
            dimension_semantics=("parallel", "arbitrary")),
    )(x, w, b.reshape(1, N), residual, gamma.reshape(1, N), beta.reshape(1, N))


# ---------------------------------------------------------------------------
# Kernel 3: scaled-dot-product attention, all heads of one batch per program.
# ---------------------------------------------------------------------------
def _attention_kernel(q_ref, k_ref, v_ref, o_ref, *, scale):
    q = q_ref[0].astype(jnp.float32)          # (H, S, Dh)
    k = k_ref[0].astype(jnp.float32)          # (H, S, Dh)
    v = v_ref[0].astype(jnp.float32)          # (H, S, Dh)
    s = jnp.einsum("hqd,hkd->hqk", q, k,
                   preferred_element_type=jnp.float32) * scale
    m = jnp.max(s, axis=-1, keepdims=True)
    p = jnp.exp(s - m)
    l = jnp.sum(p, axis=-1, keepdims=True)
    p = p * pl.reciprocal(l, approx=True)
    ctx = jnp.einsum("hqk,hkd->hqd", p, v, preferred_element_type=jnp.float32)
    o_ref[0] = ctx.astype(o_ref.dtype)


def mha_attention(q, k, v, *, scale):
    """q, k, v: (B, H, S, Dh) -> softmax(q k^T * scale) v, per batch."""
    B, H, S, Dh = q.shape
    spec = pl.BlockSpec((1, H, S, Dh), lambda b: (b, 0, 0, 0))
    return pl.pallas_call(
        functools.partial(_attention_kernel, scale=scale),
        out_shape=jax.ShapeDtypeStruct((B, H, S, Dh), q.dtype),
        grid_spec=pltpu.PrefetchScalarGridSpec(
            num_scalar_prefetch=0,
            grid=(B,),
            in_specs=[spec, spec, spec],
            out_specs=spec,
        ),
        compiler_params=pltpu.CompilerParams(dimension_semantics=("parallel",)),
    )(q, k, v)


# ---------------------------------------------------------------------------
# Transformer encoder forward (Pallas kernels + XLA layout plumbing).
# ---------------------------------------------------------------------------
def _encoder_layer(tokens, p, B, S, nhead):
    N, E = tokens.shape
    Dh = E // nhead

    # --- self-attention block (post-norm) -----------------------------------
    qkv = matmul_bias(tokens, p["w_qkv"], p["b_qkv"])                  # (N, 3E)
    q, k, v = qkv[:, :E], qkv[:, E:2 * E], qkv[:, 2 * E:]

    def split_heads(t):  # (B*S, E) -> (B, H, S, Dh)
        return t.reshape(B, S, nhead, Dh).transpose(0, 2, 1, 3)

    ctx = mha_attention(split_heads(q), split_heads(k), split_heads(v),
                        scale=1.0 / math.sqrt(Dh))                     # (B, H, S, Dh)
    ctx = ctx.transpose(0, 2, 1, 3).reshape(N, E)
    # fused: out-proj + bias + residual + LayerNorm1
    tokens = matmul_bias_residual_layernorm(
        ctx, p["w_out"], p["b_out"], tokens, p["ln1_g"], p["ln1_b"])

    # --- feed-forward block (ReLU, post-norm) --------------------------------
    h = matmul_bias(tokens, p["w1"], p["b1"], activation="relu")       # (N, dff)
    # fused: FFN2 + bias + residual + LayerNorm2
    tokens = matmul_bias_residual_layernorm(
        h, p["w2"], p["b2"], tokens, p["ln2_g"], p["ln2_b"])
    return tokens


@functools.partial(jax.jit, static_argnames=("nhead",))
def transformer_encoder_forward(x, layer_params, *, nhead):
    """x: (S, B, E), batch_first=False like the PyTorch module."""
    S, B, E = x.shape
    tokens = x.transpose(1, 0, 2).reshape(B * S, E)   # lane-dense token matrix
    for p in layer_params:
        tokens = _encoder_layer(tokens, p, B, S, nhead)
    return tokens.reshape(B, S, E).transpose(1, 0, 2)


# ---------------------------------------------------------------------------
# Deterministic parameter construction + pure-JAX reference for verification.
# ---------------------------------------------------------------------------
def init_layer_params(key, d_model, dff, dtype=jnp.float32):
    ks = jax.random.split(key, 8)
    s = 0.05
    return dict(
        w_qkv=jax.random.normal(ks[0], (d_model, 3 * d_model), dtype) * s,
        b_qkv=jax.random.normal(ks[1], (3 * d_model,), dtype) * s,
        w_out=jax.random.normal(ks[2], (d_model, d_model), dtype) * s,
        b_out=jax.random.normal(ks[3], (d_model,), dtype) * s,
        w1=jax.random.normal(ks[4], (d_model, dff), dtype) * s,
        b1=jax.random.normal(ks[5], (dff,), dtype) * s,
        w2=jax.random.normal(ks[6], (dff, d_model), dtype) * s,
        b2=jax.random.normal(ks[7], (d_model,), dtype) * s,
        ln1_g=jnp.ones((d_model,), dtype), ln1_b=jnp.zeros((d_model,), dtype),
        ln2_g=jnp.ones((d_model,), dtype), ln2_b=jnp.zeros((d_model,), dtype),
    )


def _ref_layer_norm(x, g, b, eps=1e-5):
    mean = jnp.mean(x, axis=-1, keepdims=True)
    var = jnp.mean((x - mean) ** 2, axis=-1, keepdims=True)
    return (x - mean) * jax.lax.rsqrt(var + eps) * g + b


def reference_forward(x, layer_params, nhead):
    P = jax.lax.Precision.HIGHEST
    S, B, E = x.shape
    Dh = E // nhead
    out = x
    for p in layer_params:
        qkv = jnp.einsum("sbe,ef->sbf", out, p["w_qkv"], precision=P) + p["b_qkv"]
        q, k, v = jnp.split(qkv, 3, axis=-1)

        def sh(t):  # (S, B, E) -> (B, H, S, Dh)
            return t.reshape(S, B, nhead, Dh).transpose(1, 2, 0, 3)

        s = jnp.einsum("bhqd,bhkd->bhqk", sh(q), sh(k),
                       precision=P) / math.sqrt(Dh)
        a = jax.nn.softmax(s, axis=-1)
        ctx = jnp.einsum("bhqk,bhkd->bhqd", a, sh(v), precision=P)
        ctx = ctx.transpose(2, 0, 1, 3).reshape(S, B, E)
        attn_out = jnp.einsum("sbe,ef->sbf", ctx, p["w_out"],
                              precision=P) + p["b_out"]
        out = _ref_layer_norm(out + attn_out, p["ln1_g"], p["ln1_b"])
        h = jnp.maximum(
            jnp.einsum("sbe,ef->sbf", out, p["w1"], precision=P) + p["b1"], 0.0)
        f = jnp.einsum("sbf,fe->sbe", h, p["w2"], precision=P) + p["b2"]
        out = _ref_layer_norm(out + f, p["ln2_g"], p["ln2_b"])
    return out


if __name__ == "__main__":
    # Small, lane-aligned demo config (the module's real config is d_model=1000,
    # nhead=8, dim_feedforward=2048, num_layers=6; kernels are shape-generic).
    # TODO(synk): dropout layers are identity here (eval-mode forward only).
    SEQ, BATCH = 8, 2
    D_MODEL, NHEAD, DFF, NUM_LAYERS = 256, 8, 512, 6

    key = jax.random.PRNGKey(0)
    key, kx = jax.random.split(key)
    x = jax.random.normal(kx, (SEQ, BATCH, D_MODEL), dtype=jnp.float32)
    layer_keys = jax.random.split(key, NUM_LAYERS)
    params = [init_layer_params(k, D_MODEL, DFF) for k in layer_keys]

    out = transformer_encoder_forward(x, params, nhead=NHEAD)
    out = jax.block_until_ready(out)

    ref = reference_forward(x, params, NHEAD)
    assert out.shape == (SEQ, BATCH, D_MODEL)
    assert out.dtype == x.dtype
    assert jnp.allclose(out, ref, atol=2e-2, rtol=2e-2), \
        float(jnp.max(jnp.abs(out - ref)))

    print("KERNEL_OK")
</pallas_src>

<mosaic_0001>
module attributes {stable_mosaic.version = 11 : i64} {
  func.func @_matmul_bias_kernel(%arg0: i32, %arg1: i32, %arg2: i32, %arg3: memref<16x256xf32, #tpu.memory_space<vmem>>, %arg4: memref<256x384xf32, #tpu.memory_space<vmem>>, %arg5: memref<1x384xf32, #tpu.memory_space<vmem>>, %arg6: memref<16x384xf32, #tpu.memory_space<vmem>>, %arg7: memref<16x384xf32, #tpu.memory_space<vmem>>) attributes {dimension_semantics = [#tpu.dimension_semantics<parallel>, #tpu.dimension_semantics<parallel>, #tpu.dimension_semantics<arbitrary>], iteration_bounds = array<i64: 1, 2, 1>, scalar_prefetch = 0 : i64, scratch_operands = 1 : i64, tpu.core_type = #tpu.core_type<tc>, window_params = [{transform_indices = @transform_0, window_bounds = array<i64: 16, 256>}, {transform_indices = @transform_1, window_bounds = array<i64: 256, 384>}, {transform_indices = @transform_2, window_bounds = array<i64: 1, 384>}, {transform_indices = @transform_3, window_bounds = array<i64: 16, 384>}]} {
    %c0_i32 = arith.constant 0 : i32
    %0 = arith.cmpi eq, %arg2, %c0_i32 : i32
    %1 = arith.extui %0 : i1 to i32
    %c0_i32_0 = arith.constant 0 : i32
    %2 = arith.cmpi ne, %1, %c0_i32_0 : i32
    scf.if %2 {
      %cst_10 = arith.constant 0.000000e+00 : f32
      %12 = vector.broadcast %cst_10 : f32 to vector<16x384xf32>
      %c0_11 = arith.constant 0 : index
      %c0_12 = arith.constant 0 : index
      %13 = vector.load %arg7[%c0_11, %c0_12] : memref<16x384xf32, #tpu.memory_space<vmem>>, vector<16x384xf32>
      tpu.vector_store %arg7[%c0_11, %c0_12], %12 {strides = array<i32>} : memref<16x384xf32, #tpu.memory_space<vmem>>, vector<16x384xf32>,
    } else {
    }
    %c0 = arith.constant 0 : index
    %c0_1 = arith.constant 0 : index
    %3 = vector.load %arg7[%c0, %c0_1] : memref<16x384xf32, #tpu.memory_space<vmem>>, vector<16x384xf32>
    %c0_2 = arith.constant 0 : index
    %c0_3 = arith.constant 0 : index
    %4 = vector.load %arg3[%c0_2, %c0_3] : memref<16x256xf32, #tpu.memory_space<vmem>>, vector<16x256xf32>
    %c0_4 = arith.constant 0 : index
    %c0_5 = arith.constant 0 : index
    %5 = vector.load %arg4[%c0_4, %c0_5] : memref<256x384xf32, #tpu.memory_space<vmem>>, vector<256x384xf32>
    %cst = arith.constant dense<0.000000e+00> : vector<16x384xf32>
    %6 = tpu.matmul %4, %5, %cst {dimension_numbers = #tpu.dot_dimension_numbers<[1], [0], [0], [1], [0, 0, 1, 1], [], []>} : vector<16x256xf32>, vector<256x384xf32>, vector<16x384xf32> -> vector<16x384xf32>
    %7 = arith.addf %3, %6 : vector<16x384xf32>
    %c0_6 = arith.constant 0 : index
    %c0_7 = arith.constant 0 : index
    %8 = vector.load %arg7[%c0_6, %c0_7] : memref<16x384xf32, #tpu.memory_space<vmem>>, vector<16x384xf32>
    tpu.vector_store %arg7[%c0_6, %c0_7], %7 {strides = array<i32>} : memref<16x384xf32, #tpu.memory_space<vmem>>, vector<16x384xf32>,
    %c0_i32_8 = arith.constant 0 : i32
    %9 = arith.cmpi eq, %arg2, %c0_i32_8 : i32
    %10 = arith.extui %9 : i1 to i32
    %c0_i32_9 = arith.constant 0 : i32
    %11 = arith.cmpi ne, %10, %c0_i32_9 : i32
    scf.if %11 {
      %c0_10 = arith.constant 0 : index
      %c0_11 = arith.constant 0 : index
      %12 = vector.load %arg7[%c0_10, %c0_11] : memref<16x384xf32, #tpu.memory_space<vmem>>, vector<16x384xf32>
      %c0_12 = arith.constant 0 : index
      %c0_13 = arith.constant 0 : index
      %13 = vector.load %arg5[%c0_12, %c0_13] : memref<1x384xf32, #tpu.memory_space<vmem>>, vector<1x384xf32>
      %14 = vector.broadcast %13 : vector<1x384xf32> to vector<16x384xf32>
      %15 = arith.addf %12, %14 : vector<16x384xf32>
      %c0_14 = arith.constant 0 : index
      %c0_15 = arith.constant 0 : index
      %16 = vector.load %arg6[%c0_14, %c0_15] : memref<16x384xf32, #tpu.memory_space<vmem>>, vector<16x384xf32>
      tpu.vector_store %arg6[%c0_14, %c0_15], %15 {strides = array<i32>} : memref<16x384xf32, #tpu.memory_space<vmem>>, vector<16x384xf32>,
    } else {
    }
    return
  }
  func.func @transform_0(%arg0: i32, %arg1: i32, %arg2: i32) -> (i32, i32) {
    %c0_i32 = arith.constant 0 : i32
    return %arg0, %arg2 : i32, i32
  }
  func.func @transform_1(%arg0: i32, %arg1: i32, %arg2: i32) -> (i32, i32) {
    %c0_i32 = arith.constant 0 : i32
    return %arg2, %arg1 : i32, i32
  }
  func.func @transform_2(%arg0: i32, %arg1: i32, %arg2: i32) -> (i32, i32) {
    %c0_i32 = arith.constant 0 : i32
    %c0_i32_0 = arith.constant 0 : i32
    return %c0_i32, %arg1 : i32, i32
  }
  func.func @transform_3(%arg0: i32, %arg1: i32, %arg2: i32) -> (i32, i32) {
    %c0_i32 = arith.constant 0 : i32
    return %arg0, %arg1 : i32, i32
  }
}

module attributes {stable_mosaic.version = 11 : i64} {
  func.func @_matmul_res_ln_kernel(%arg0: i32, %arg1: i32, %arg2: memref<16x256xf32, #tpu.memory_space<vmem>>, %arg3: memref<256x256xf32, #tpu.memory_space<vmem>>, %arg4: memref<1x256xf32, #tpu.memory_space<vmem>>, %arg5: memref<16x256xf32, #tpu.memory_space<vmem>>, %arg6: memref<1x256xf32, #tpu.memory_space<vmem>>, %arg7: memref<1x256xf32, #tpu.memory_space<vmem>>, %arg8: memref<16x256xf32, #tpu.memory_space<vmem>>, %arg9: memref<16x256xf32, #tpu.memory_space<vmem>>) attributes {dimension_semantics = [#tpu.dimension_semantics<parallel>, #tpu.dimension_semantics<arbitrary>], iteration_bounds = array<i64: 1, 1>, scalar_prefetch = 0 : i64, scratch_operands = 1 : i64, tpu.core_type = #tpu.core_type<tc>, window_params = [{transform_indices = @transform_0, window_bounds = array<i64: 16, 256>}, {transform_indices = @transform_1, window_bounds = array<i64: 256, 256>}, {pipeline_mode = #tpu.pipeline_mode<synchronous>, transform_indices = @transform_2, window_bounds = array<i64: 1, 256>}, {transform_indices = @transform_3, window_bounds = array<i64: 16, 256>}, {pipeline_mode = #tpu.pipeline_mode<synchronous>, transform_indices = @transform_4, window_bounds = array<i64: 1, 256>}, {pipeline_mode = #tpu.pipeline_mode<synchronous>, transform_indices = @transform_5, window_bounds = array<i64: 1, 256>}, {transform_indices = @transform_6, window_bounds = array<i64: 16, 256>}]} {
    %c0_i32 = arith.constant 0 : i32
    %0 = arith.cmpi eq, %arg1, %c0_i32 : i32
    %1 = arith.extui %0 : i1 to i32
    %c0_i32_0 = arith.constant 0 : i32
    %2 = arith.cmpi ne, %1, %c0_i32_0 : i32
    scf.if %2 {
      %cst_10 = arith.constant 0.000000e+00 : f32
      %12 = vector.broadcast %cst_10 : f32 to vector<16x256xf32>
      %c0_11 = arith.constant 0 : index
      %c0_12 = arith.constant 0 : index
      %13 = vector.load %arg9[%c0_11, %c0_12] : memref<16x256xf32, #tpu.memory_space<vmem>>, vector<16x256xf32>
      tpu.vector_store %arg9[%c0_11, %c0_12], %12 {strides = array<i32>} : memref<16x256xf32, #tpu.memory_space<vmem>>, vector<16x256xf32>,
    } else {
    }
    %c0 = arith.constant 0 : index
    %c0_1 = arith.constant 0 : index
    %3 = vector.load %arg9[%c0, %c0_1] : memref<16x256xf32, #tpu.memory_space<vmem>>, vector<16x256xf32>
    %c0_2 = arith.constant 0 : index
    %c0_3 = arith.constant 0 : index
    %4 = vector.load %arg2[%c0_2, %c0_3] : memref<16x256xf32, #tpu.memory_space<vmem>>, vector<16x256xf32>
    %c0_4 = arith.constant 0 : index
    %c0_5 = arith.constant 0 : index
    %5 = vector.load %arg3[%c0_4, %c0_5] : memref<256x256xf32, #tpu.memory_space<vmem>>, vector<256x256xf32>
    %cst = arith.constant dense<0.000000e+00> : vector<16x256xf32>
    %6 = tpu.matmul %4, %5, %cst {dimension_numbers = #tpu.dot_dimension_numbers<[1], [0], [0], [1], [0, 0, 1, 1], [], []>} : vector<16x256xf32>, vector<256x256xf32>, vector<16x256xf32> -> vector<16x256xf32>
    %7 = arith.addf %3, %6 : vector<16x256xf32>
    %c0_6 = arith.constant 0 : index
    %c0_7 = arith.constant 0 : index
    %8 = vector.load %arg9[%c0_6, %c0_7] : memref<16x256xf32, #tpu.memory_space<vmem>>, vector<16x256xf32>
    tpu.vector_store %arg9[%c0_6, %c0_7], %7 {strides = array<i32>} : memref<16x256xf32, #tpu.memory_space<vmem>>, vector<16x256xf32>,
    %c0_i32_8 = arith.constant 0 : i32
    %9 = arith.cmpi eq, %arg1, %c0_i32_8 : i32
    %10 = arith.extui %9 : i1 to i32
    %c0_i32_9 = arith.constant 0 : i32
    %11 = arith.cmpi ne, %10, %c0_i32_9 : i32
    scf.if %11 {
      %c0_10 = arith.constant 0 : index
      %c0_11 = arith.constant 0 : index
      %12 = vector.load %arg9[%c0_10, %c0_11] : memref<16x256xf32, #tpu.memory_space<vmem>>, vector<16x256xf32>
      %c0_12 = arith.constant 0 : index
      %c0_13 = arith.constant 0 : index
      %13 = vector.load %arg4[%c0_12, %c0_13] : memref<1x256xf32, #tpu.memory_space<vmem>>, vector<1x256xf32>
      %14 = vector.broadcast %13 : vector<1x256xf32> to vector<16x256xf32>
      %15 = arith.addf %12, %14 : vector<16x256xf32>
      %c0_14 = arith.constant 0 : index
      %c0_15 = arith.constant 0 : index
      %16 = vector.load %arg5[%c0_14, %c0_15] : memref<16x256xf32, #tpu.memory_space<vmem>>, vector<16x256xf32>
      %17 = arith.addf %15, %16 : vector<16x256xf32>
      %cst_16 = arith.constant dense<0.000000e+00> : vector<16xf32>
      %18 = vector.multi_reduction <add>, %17, %cst_16 [1] : vector<16x256xf32> to vector<16xf32>
      %19 = vector.shape_cast %18 : vector<16xf32> to vector<16x1xf32>
      %cst_17 = arith.constant 2.560000e+02 : f32
      %20 = vector.broadcast %cst_17 : f32 to vector<16x1xf32>
      %21 = arith.divf %19, %20 : vector<16x1xf32>
      %22 = vector.broadcast %21 : vector<16x1xf32> to vector<16x256xf32>
      %23 = arith.subf %17, %22 : vector<16x256xf32>
      %24 = arith.mulf %23, %23 : vector<16x256xf32>
      %cst_18 = arith.constant dense<0.000000e+00> : vector<16xf32>
      %25 = vector.multi_reduction <add>, %24, %cst_18 [1] : vector<16x256xf32> to vector<16xf32>
      %26 = vector.shape_cast %25 : vector<16xf32> to vector<16x1xf32>
      %cst_19 = arith.constant 2.560000e+02 : f32
      %27 = vector.broadcast %cst_19 : f32 to vector<16x1xf32>
      %28 = arith.divf %26, %27 : vector<16x1xf32>
      %cst_20 = arith.constant 9.99999974E-6 : f32
      %29 = vector.broadcast %cst_20 : f32 to vector<16x1xf32>
      %30 = arith.addf %28, %29 : vector<16x1xf32>
      %31 = math.rsqrt %30 : vector<16x1xf32>
      %32 = vector.broadcast %31 : vector<16x1xf32> to vector<16x256xf32>
      %33 = arith.mulf %23, %32 : vector<16x256xf32>
      %c0_21 = arith.constant 0 : index
      %c0_22 = arith.constant 0 : index
      %34 = vector.load %arg6[%c0_21, %c0_22] : memref<1x256xf32, #tpu.memory_space<vmem>>, vector<1x256xf32>
      %35 = vector.broadcast %34 : vector<1x256xf32> to vector<16x256xf32>
      %36 = arith.mulf %33, %35 : vector<16x256xf32>
      %c0_23 = arith.constant 0 : index
      %c0_24 = arith.constant 0 : index
      %37 = vector.load %arg7[%c0_23, %c0_24] : memref<1x256xf32, #tpu.memory_space<vmem>>, vector<1x256xf32>
      %38 = vector.broadcast %37 : vector<1x256xf32> to vector<16x256xf32>
      %39 = arith.addf %36, %38 : vector<16x256xf32>
      %c0_25 = arith.constant 0 : index
      %c0_26 = arith.constant 0 : index
      %40 = vector.load %arg8[%c0_25, %c0_26] : memref<16x256xf32, #tpu.memory_space<vmem>>, vector<16x256xf32>
      tpu.vector_store %arg8[%c0_25, %c0_26], %39 {strides = array<i32>} : memref<16x256xf32, #tpu.memory_space<vmem>>, vector<16x256xf32>,
    } else {
    }
    return
  }
  func.func @transform_0(%arg0: i32, %arg1: i32) -> (i32, i32) {
    %c0_i32 = arith.constant 0 : i32
    return %arg0, %arg1 : i32, i32
  }
  func.func @transform_1(%arg0: i32, %arg1: i32) -> (i32, i32) {
    %c0_i32 = arith.constant 0 : i32
    %c0_i32_0 = arith.constant 0 : i32
    return %arg1, %c0_i32 : i32, i32
  }
  func.func @transform_2(%arg0: i32, %arg1: i32) -> (i32, i32) {
    %c0_i32 = arith.constant 0 : i32
    %c0_i32_0 = arith.constant 0 : i32
    %c0_i32_1 = arith.constant 0 : i32
    return %c0_i32, %c0_i32_0 : i32, i32
  }
  func.func @transform_3(%arg0: i32, %arg1: i32) -> (i32, i32) {
    %c0_i32 = arith.constant 0 : i32
    %c0_i32_0 = arith.constant 0 : i32
    return %arg0, %c0_i32 : i32, i32
  }
  func.func @transform_4(%arg0: i32, %arg1: i32) -> (i32, i32) {
    %c0_i32 = arith.constant 0 : i32
    %c0_i32_0 = arith.constant 0 : i32
    %c0_i32_1 = arith.constant 0 : i32
    return %c0_i32, %c0_i32_0 : i32, i32
  }
  func.func @transform_5(%arg0: i32, %arg1: i32) -> (i32, i32) {
    %c0_i32 = arith.constant 0 : i32
    %c0_i32_0 = arith.constant 0 : i32
    %c0_i32_1 = arith.constant 0 : i32
    return %c0_i32, %c0_i32_0 : i32, i32
  }
  func.func @transform_6(%arg0: i32, %arg1: i32) -> (i32, i32) {
    %c0_i32 = arith.constant 0 : i32
    %c0_i32_0 = arith.constant 0 : i32
    return %arg0, %c0_i32 : i32, i32
  }
}

module attributes {stable_mosaic.version = 11 : i64} {
  func.func @_attention_kernel(%arg0: i32, %arg1: memref<1x8x8x32xf32, #tpu.memory_space<vmem>>, %arg2: memref<1x8x8x32xf32, #tpu.memory_space<vmem>>, %arg3: memref<1x8x8x32xf32, #tpu.memory_space<vmem>>, %arg4: memref<1x8x8x32xf32, #tpu.memory_space<vmem>>) attributes {dimension_semantics = [#tpu.dimension_semantics<parallel>], iteration_bounds = array<i64: 2>, scalar_prefetch = 0 : i64, scratch_operands = 0 : i64, tpu.core_type = #tpu.core_type<tc>, window_params = [{transform_indices = @transform_0, window_bounds = array<i64: 1, 8, 8, 32>}, {transform_indices = @transform_1, window_bounds = array<i64: 1, 8, 8, 32>}, {transform_indices = @transform_2, window_bounds = array<i64: 1, 8, 8, 32>}, {transform_indices = @transform_3, window_bounds = array<i64: 1, 8, 8, 32>}]} {
    %c0 = arith.constant 0 : index
    %c0_0 = arith.constant 0 : index
    %c0_1 = arith.constant 0 : index
    %c0_2 = arith.constant 0 : index
    %0 = vector.load %arg1[%c0, %c0_0, %c0_1, %c0_2] : memref<1x8x8x32xf32, #tpu.memory_space<vmem>>, vector<1x8x8x32xf32>
    %1 = vector.shape_cast %0 : vector<1x8x8x32xf32> to vector<8x8x32xf32>
    %c0_3 = arith.constant 0 : index
    %c0_4 = arith.constant 0 : index
    %c0_5 = arith.constant 0 : index
    %c0_6 = arith.constant 0 : index
    %2 = vector.load %arg2[%c0_3, %c0_4, %c0_5, %c0_6] : memref<1x8x8x32xf32, #tpu.memory_space<vmem>>, vector<1x8x8x32xf32>
    %3 = vector.shape_cast %2 : vector<1x8x8x32xf32> to vector<8x8x32xf32>
    %c0_7 = arith.constant 0 : index
    %c0_8 = arith.constant 0 : index
    %c0_9 = arith.constant 0 : index
    %c0_10 = arith.constant 0 : index
    %4 = vector.load %arg3[%c0_7, %c0_8, %c0_9, %c0_10] : memref<1x8x8x32xf32, #tpu.memory_space<vmem>>, vector<1x8x8x32xf32>
    %5 = vector.shape_cast %4 : vector<1x8x8x32xf32> to vector<8x8x32xf32>
    "tpu.trace_start"() <{level = 10 : i32, message = "hqd,hkd->hqk"}> : () -> ()
    %cst = arith.constant dense<0.000000e+00> : vector<8x8x8xf32>
    %6 = tpu.matmul %1, %3, %cst {dimension_numbers = #tpu.dot_dimension_numbers<[2], [2], [1], [1], [0, 0, 0, 1, 1, 1], [0], [0]>} : vector<8x8x32xf32>, vector<8x8x32xf32>, vector<8x8x8xf32> -> vector<8x8x8xf32>
    "tpu.trace_stop"() : () -> ()
    %cst_11 = arith.constant 0.176776692 : f32
    %7 = vector.broadcast %cst_11 : f32 to vector<8x8x8xf32>
    %8 = arith.mulf %6, %7 : vector<8x8x8xf32>
    %cst_12 = arith.constant dense<0xFF800000> : vector<8x8xf32>
    %9 = vector.multi_reduction <maximumf>, %8, %cst_12 [2] : vector<8x8x8xf32> to vector<8x8xf32>
    %10 = vector.shape_cast %9 : vector<8x8xf32> to vector<8x8x1xf32>
    %11 = vector.broadcast %10 : vector<8x8x1xf32> to vector<8x8x8xf32>
    %12 = arith.subf %8, %11 : vector<8x8x8xf32>
    %13 = math.exp %12 : vector<8x8x8xf32>
    %cst_13 = arith.constant dense<0.000000e+00> : vector<8x8xf32>
    %14 = vector.multi_reduction <add>, %13, %cst_13 [2] : vector<8x8x8xf32> to vector<8x8xf32>
    %15 = vector.shape_cast %14 : vector<8x8xf32> to vector<8x8x1xf32>
    %16 = tpu.reciprocal %15 {approx = true} : vector<8x8x1xf32> -> vector<8x8x1xf32>
    %17 = vector.broadcast %16 : vector<8x8x1xf32> to vector<8x8x8xf32>
    %18 = arith.mulf %13, %17 : vector<8x8x8xf32>
    "tpu.trace_start"() <{level = 10 : i32, message = "hqk,hkd->hqd"}> : () -> ()
    %cst_14 = arith.constant dense<0.000000e+00> : vector<8x8x32xf32>
    %19 = tpu.matmul %18, %5, %cst_14 {dimension_numbers = #tpu.dot_dimension_numbers<[2], [1], [1], [2], [0, 0, 0, 1, 1, 2], [0], [0]>} : vector<8x8x8xf32>, vector<8x8x32xf32>, vector<8x8x32xf32> -> vector<8x8x32xf32>
    "tpu.trace_stop"() : () -> ()
    %c0_15 = arith.constant 0 : index
    %c0_16 = arith.constant 0 : index
    %c0_17 = arith.constant 0 : index
    %c0_18 = arith.constant 0 : index
    %20 = vector.load %arg4[%c0_15, %c0_16, %c0_17, %c0_18] : memref<1x8x8x32xf32, #tpu.memory_space<vmem>>, vector<1x8x8x32xf32>
    %21 = vector.shape_cast %20 : vector<1x8x8x32xf32> to vector<8x8x32xf32>
    %22 = vector.shape_cast %19 : vector<8x8x32xf32> to vector<1x8x8x32xf32>
    tpu.vector_store %arg4[%c0_15, %c0_16, %c0_17, %c0_18], %22 {strides = array<i32>} : memref<1x8x8x32xf32, #tpu.memory_space<vmem>>, vector<1x8x8x32xf32>,
    return
  }
  func.func @transform_0(%arg0: i32) -> (i32, i32, i32, i32) {
    %c0_i32 = arith.constant 0 : i32
    %c0_i32_0 = arith.constant 0 : i32
    %c0_i32_1 = arith.constant 0 : i32
    %c0_i32_2 = arith.constant 0 : i32
    return %arg0, %c0_i32, %c0_i32_0, %c0_i32_1 : i32, i32, i32, i32
  }
  func.func @transform_1(%arg0: i32) -> (i32, i32, i32, i32) {
    %c0_i32 = arith.constant 0 : i32
    %c0_i32_0 = arith.constant 0 : i32
    %c0_i32_1 = arith.constant 0 : i32
    %c0_i32_2 = arith.constant 0 : i32
    return %arg0, %c0_i32, %c0_i32_0, %c0_i32_1 : i32, i32, i32, i32
  }
  func.func @transform_2(%arg0: i32) -> (i32, i32, i32, i32) {
    %c0_i32 = arith.constant 0 : i32
    %c0_i32_0 = arith.constant 0 : i32
    %c0_i32_1 = arith.constant 0 : i32
    %c0_i32_2 = arith.constant 0 : i32
    return %arg0, %c0_i32, %c0_i32_0, %c0_i32_1 : i32, i32, i32, i32
  }
  func.func @transform_3(%arg0: i32) -> (i32, i32, i32, i32) {
    %c0_i32 = arith.constant 0 : i32
    %c0_i32_0 = arith.constant 0 : i32
    %c0_i32_1 = arith.constant 0 : i32
    %c0_i32_2 = arith.constant 0 : i32
    return %arg0, %c0_i32, %c0_i32_0, %c0_i32_1 : i32, i32, i32, i32
  }
}

module attributes {stable_mosaic.version = 11 : i64} {
  func.func @_matmul_bias_kernel(%arg0: i32, %arg1: i32, %arg2: i32, %arg3: memref<16x256xf32, #tpu.memory_space<vmem>>, %arg4: memref<256x512xf32, #tpu.memory_space<vmem>>, %arg5: memref<1x512xf32, #tpu.memory_space<vmem>>, %arg6: memref<16x512xf32, #tpu.memory_space<vmem>>, %arg7: memref<16x512xf32, #tpu.memory_space<vmem>>) attributes {dimension_semantics = [#tpu.dimension_semantics<parallel>, #tpu.dimension_semantics<parallel>, #tpu.dimension_semantics<arbitrary>], iteration_bounds = array<i64: 1, 1, 1>, scalar_prefetch = 0 : i64, scratch_operands = 1 : i64, tpu.core_type = #tpu.core_type<tc>, window_params = [{transform_indices = @transform_0, window_bounds = array<i64: 16, 256>}, {transform_indices = @transform_1, window_bounds = array<i64: 256, 512>}, {transform_indices = @transform_2, window_bounds = array<i64: 1, 512>}, {transform_indices = @transform_3, window_bounds = array<i64: 16, 512>}]} {
    %c0_i32 = arith.constant 0 : i32
    %0 = arith.cmpi eq, %arg2, %c0_i32 : i32
    %1 = arith.extui %0 : i1 to i32
    %c0_i32_0 = arith.constant 0 : i32
    %2 = arith.cmpi ne, %1, %c0_i32_0 : i32
    scf.if %2 {
      %cst_10 = arith.constant 0.000000e+00 : f32
      %12 = vector.broadcast %cst_10 : f32 to vector<16x512xf32>
      %c0_11 = arith.constant 0 : index
      %c0_12 = arith.constant 0 : index
      %13 = vector.load %arg7[%c0_11, %c0_12] : memref<16x512xf32, #tpu.memory_space<vmem>>, vector<16x512xf32>
      tpu.vector_store %arg7[%c0_11, %c0_12], %12 {strides = array<i32>} : memref<16x512xf32, #tpu.memory_space<vmem>>, vector<16x512xf32>,
    } else {
    }
    %c0 = arith.constant 0 : index
    %c0_1 = arith.constant 0 : index
    %3 = vector.load %arg7[%c0, %c0_1] : memref<16x512xf32, #tpu.memory_space<vmem>>, vector<16x512xf32>
    %c0_2 = arith.constant 0 : index
    %c0_3 = arith.constant 0 : index
    %4 = vector.load %arg3[%c0_2, %c0_3] : memref<16x256xf32, #tpu.memory_space<vmem>>, vector<16x256xf32>
    %c0_4 = arith.constant 0 : index
    %c0_5 = arith.constant 0 : index
    %5 = vector.load %arg4[%c0_4, %c0_5] : memref<256x512xf32, #tpu.memory_space<vmem>>, vector<256x512xf32>
    %cst = arith.constant dense<0.000000e+00> : vector<16x512xf32>
    %6 = tpu.matmul %4, %5, %cst {dimension_numbers = #tpu.dot_dimension_numbers<[1], [0], [0], [1], [0, 0, 1, 1], [], []>} : vector<16x256xf32>, vector<256x512xf32>, vector<16x512xf32> -> vector<16x512xf32>
    %7 = arith.addf %3, %6 : vector<16x512xf32>
    %c0_6 = arith.constant 0 : index
    %c0_7 = arith.constant 0 : index
    %8 = vector.load %arg7[%c0_6, %c0_7] : memref<16x512xf32, #tpu.memory_space<vmem>>, vector<16x512xf32>
    tpu.vector_store %arg7[%c0_6, %c0_7], %7 {strides = array<i32>} : memref<16x512xf32, #tpu.memory_space<vmem>>, vector<16x512xf32>,
    %c0_i32_8 = arith.constant 0 : i32
    %9 = arith.cmpi eq, %arg2, %c0_i32_8 : i32
    %10 = arith.extui %9 : i1 to i32
    %c0_i32_9 = arith.constant 0 : i32
    %11 = arith.cmpi ne, %10, %c0_i32_9 : i32
    scf.if %11 {
      %c0_10 = arith.constant 0 : index
      %c0_11 = arith.constant 0 : index
      %12 = vector.load %arg7[%c0_10, %c0_11] : memref<16x512xf32, #tpu.memory_space<vmem>>, vector<16x512xf32>
      %c0_12 = arith.constant 0 : index
      %c0_13 = arith.constant 0 : index
      %13 = vector.load %arg5[%c0_12, %c0_13] : memref<1x512xf32, #tpu.memory_space<vmem>>, vector<1x512xf32>
      %14 = vector.broadcast %13 : vector<1x512xf32> to vector<16x512xf32>
      %15 = arith.addf %12, %14 : vector<16x512xf32>
      %cst_14 = arith.constant 0.000000e+00 : f32
      %16 = vector.broadcast %cst_14 : f32 to vector<16x512xf32>
      %17 = arith.maximumf %15, %16 : vector<16x512xf32>
      %c0_15 = arith.constant 0 : index
      %c0_16 = arith.constant 0 : index
      %18 = vector.load %arg6[%c0_15, %c0_16] : memref<16x512xf32, #tpu.memory_space<vmem>>, vector<16x512xf32>
      tpu.vector_store %arg6[%c0_15, %c0_16], %17 {strides = array<i32>} : memref<16x512xf32, #tpu.memory_space<vmem>>, vector<16x512xf32>,
    } else {
    }
    return
  }
  func.func @transform_0(%arg0: i32, %arg1: i32, %arg2: i32) -> (i32, i32) {
    %c0_i32 = arith.constant 0 : i32
    return %arg0, %arg2 : i32, i32
  }
  func.func @transform_1(%arg0: i32, %arg1: i32, %arg2: i32) -> (i32, i32) {
    %c0_i32 = arith.constant 0 : i32
    return %arg2, %arg1 : i32, i32
  }
  func.func @transform_2(%arg0: i32, %arg1: i32, %arg2: i32) -> (i32, i32) {
    %c0_i32 = arith.constant 0 : i32
    %c0_i32_0 = arith.constant 0 : i32
    return %c0_i32, %arg1 : i32, i32
  }
  func.func @transform_3(%arg0: i32, %arg1: i32, %arg2: i32) -> (i32, i32) {
    %c0_i32 = arith.constant 0 : i32
    return %arg0, %arg1 : i32, i32
  }
}

module attributes {stable_mosaic.version = 11 : i64} {
  func.func @_matmul_res_ln_kernel(%arg0: i32, %arg1: i32, %arg2: memref<16x512xf32, #tpu.memory_space<vmem>>, %arg3: memref<512x256xf32, #tpu.memory_space<vmem>>, %arg4: memref<1x256xf32, #tpu.memory_space<vmem>>, %arg5: memref<16x256xf32, #tpu.memory_space<vmem>>, %arg6: memref<1x256xf32, #tpu.memory_space<vmem>>, %arg7: memref<1x256xf32, #tpu.memory_space<vmem>>, %arg8: memref<16x256xf32, #tpu.memory_space<vmem>>, %arg9: memref<16x256xf32, #tpu.memory_space<vmem>>) attributes {dimension_semantics = [#tpu.dimension_semantics<parallel>, #tpu.dimension_semantics<arbitrary>], iteration_bounds = array<i64: 1, 1>, scalar_prefetch = 0 : i64, scratch_operands = 1 : i64, tpu.core_type = #tpu.core_type<tc>, window_params = [{transform_indices = @transform_0, window_bounds = array<i64: 16, 512>}, {transform_indices = @transform_1, window_bounds = array<i64: 512, 256>}, {pipeline_mode = #tpu.pipeline_mode<synchronous>, transform_indices = @transform_2, window_bounds = array<i64: 1, 256>}, {transform_indices = @transform_3, window_bounds = array<i64: 16, 256>}, {pipeline_mode = #tpu.pipeline_mode<synchronous>, transform_indices = @transform_4, window_bounds = array<i64: 1, 256>}, {pipeline_mode = #tpu.pipeline_mode<synchronous>, transform_indices = @transform_5, window_bounds = array<i64: 1, 256>}, {transform_indices = @transform_6, window_bounds = array<i64: 16, 256>}]} {
    %c0_i32 = arith.constant 0 : i32
    %0 = arith.cmpi eq, %arg1, %c0_i32 : i32
    %1 = arith.extui %0 : i1 to i32
    %c0_i32_0 = arith.constant 0 : i32
    %2 = arith.cmpi ne, %1, %c0_i32_0 : i32
    scf.if %2 {
      %cst_10 = arith.constant 0.000000e+00 : f32
      %12 = vector.broadcast %cst_10 : f32 to vector<16x256xf32>
      %c0_11 = arith.constant 0 : index
      %c0_12 = arith.constant 0 : index
      %13 = vector.load %arg9[%c0_11, %c0_12] : memref<16x256xf32, #tpu.memory_space<vmem>>, vector<16x256xf32>
      tpu.vector_store %arg9[%c0_11, %c0_12], %12 {strides = array<i32>} : memref<16x256xf32, #tpu.memory_space<vmem>>, vector<16x256xf32>,
    } else {
    }
    %c0 = arith.constant 0 : index
    %c0_1 = arith.constant 0 : index
    %3 = vector.load %arg9[%c0, %c0_1] : memref<16x256xf32, #tpu.memory_space<vmem>>, vector<16x256xf32>
    %c0_2 = arith.constant 0 : index
    %c0_3 = arith.constant 0 : index
    %4 = vector.load %arg2[%c0_2, %c0_3] : memref<16x512xf32, #tpu.memory_space<vmem>>, vector<16x512xf32>
    %c0_4 = arith.constant 0 : index
    %c0_5 = arith.constant 0 : index
    %5 = vector.load %arg3[%c0_4, %c0_5] : memref<512x256xf32, #tpu.memory_space<vmem>>, vector<512x256xf32>
    %cst = arith.constant dense<0.000000e+00> : vector<16x256xf32>
    %6 = tpu.matmul %4, %5, %cst {dimension_numbers = #tpu.dot_dimension_numbers<[1], [0], [0], [1], [0, 0, 1, 1], [], []>} : vector<16x512xf32>, vector<512x256xf32>, vector<16x256xf32> -> vector<16x256xf32>
    %7 = arith.addf %3, %6 : vector<16x256xf32>
    %c0_6 = arith.constant 0 : index
    %c0_7 = arith.constant 0 : index
    %8 = vector.load %arg9[%c0_6, %c0_7] : memref<16x256xf32, #tpu.memory_space<vmem>>, vector<16x256xf32>
    tpu.vector_store %arg9[%c0_6, %c0_7], %7 {strides = array<i32>} : memref<16x256xf32, #tpu.memory_space<vmem>>, vector<16x256xf32>,
    %c0_i32_8 = arith.constant 0 : i32
    %9 = arith.cmpi eq, %arg1, %c0_i32_8 : i32
    %10 = arith.extui %9 : i1 to i32
    %c0_i32_9 = arith.constant 0 : i32
    %11 = arith.cmpi ne, %10, %c0_i32_9 : i32
    scf.if %11 {
      %c0_10 = arith.constant 0 : index
      %c0_11 = arith.constant 0 : index
      %12 = vector.load %arg9[%c0_10, %c0_11] : memref<16x256xf32, #tpu.memory_space<vmem>>, vector<16x256xf32>
      %c0_12 = arith.constant 0 : index
      %c0_13 = arith.constant 0 : index
      %13 = vector.load %arg4[%c0_12, %c0_13] : memref<1x256xf32, #tpu.memory_space<vmem>>, vector<1x256xf32>
      %14 = vector.broadcast %13 : vector<1x256xf32> to vector<16x256xf32>
      %15 = arith.addf %12, %14 : vector<16x256xf32>
      %c0_14 = arith.constant 0 : index
      %c0_15 = arith.constant 0 : index
      %16 = vector.load %arg5[%c0_14, %c0_15] : memref<16x256xf32, #tpu.memory_space<vmem>>, vector<16x256xf32>
      %17 = arith.addf %15, %16 : vector<16x256xf32>
      %cst_16 = arith.constant dense<0.000000e+00> : vector<16xf32>
      %18 = vector.multi_reduction <add>, %17, %cst_16 [1] : vector<16x256xf32> to vector<16xf32>
      %19 = vector.shape_cast %18 : vector<16xf32> to vector<16x1xf32>
      %cst_17 = arith.constant 2.560000e+02 : f32
      %20 = vector.broadcast %cst_17 : f32 to vector<16x1xf32>
      %21 = arith.divf %19, %20 : vector<16x1xf32>
      %22 = vector.broadcast %21 : vector<16x1xf32> to vector<16x256xf32>
      %23 = arith.subf %17, %22 : vector<16x256xf32>
      %24 = arith.mulf %23, %23 : vector<16x256xf32>
      %cst_18 = arith.constant dense<0.000000e+00> : vector<16xf32>
      %25 = vector.multi_reduction <add>, %24, %cst_18 [1] : vector<16x256xf32> to vector<16xf32>
      %26 = vector.shape_cast %25 : vector<16xf32> to vector<16x1xf32>
      %cst_19 = arith.constant 2.560000e+02 : f32
      %27 = vector.broadcast %cst_19 : f32 to vector<16x1xf32>
      %28 = arith.divf %26, %27 : vector<16x1xf32>
      %cst_20 = arith.constant 9.99999974E-6 : f32
      %29 = vector.broadcast %cst_20 : f32 to vector<16x1xf32>
      %30 = arith.addf %28, %29 : vector<16x1xf32>
      %31 = math.rsqrt %30 : vector<16x1xf32>
      %32 = vector.broadcast %31 : vector<16x1xf32> to vector<16x256xf32>
      %33 = arith.mulf %23, %32 : vector<16x256xf32>
      %c0_21 = arith.constant 0 : index
      %c0_22 = arith.constant 0 : index
      %34 = vector.load %arg6[%c0_21, %c0_22] : memref<1x256xf32, #tpu.memory_space<vmem>>, vector<1x256xf32>
      %35 = vector.broadcast %34 : vector<1x256xf32> to vector<16x256xf32>
      %36 = arith.mulf %33, %35 : vector<16x256xf32>
      %c0_23 = arith.constant 0 : index
      %c0_24 = arith.constant 0 : index
      %37 = vector.load %arg7[%c0_23, %c0_24] : memref<1x256xf32, #tpu.memory_space<vmem>>, vector<1x256xf32>
      %38 = vector.broadcast %37 : vector<1x256xf32> to vector<16x256xf32>
      %39 = arith.addf %36, %38 : vector<16x256xf32>
      %c0_25 = arith.constant 0 : index
      %c0_26 = arith.constant 0 : index
      %40 = vector.load %arg8[%c0_25, %c0_26] : memref<16x256xf32, #tpu.memory_space<vmem>>, vector<16x256xf32>
      tpu.vector_store %arg8[%c0_25, %c0_26], %39 {strides = array<i32>} : memref<16x256xf32, #tpu.memory_space<vmem>>, vector<16x256xf32>,
    } else {
    }
    return
  }
  func.func @transform_0(%arg0: i32, %arg1: i32) -> (i32, i32) {
    %c0_i32 = arith.constant 0 : i32
    return %arg0, %arg1 : i32, i32
  }
  func.func @transform_1(%arg0: i32, %arg1: i32) -> (i32, i32) {
    %c0_i32 = arith.constant 0 : i32
    %c0_i32_0 = arith.constant 0 : i32
    return %arg1, %c0_i32 : i32, i32
  }
  func.func @transform_2(%arg0: i32, %arg1: i32) -> (i32, i32) {
    %c0_i32 = arith.constant 0 : i32
    %c0_i32_0 = arith.constant 0 : i32
    %c0_i32_1 = arith.constant 0 : i32
    return %c0_i32, %c0_i32_0 : i32, i32
  }
  func.func @transform_3(%arg0: i32, %arg1: i32) -> (i32, i32) {
    %c0_i32 = arith.constant 0 : i32
    %c0_i32_0 = arith.constant 0 : i32
    return %arg0, %c0_i32 : i32, i32
  }
  func.func @transform_4(%arg0: i32, %arg1: i32) -> (i32, i32) {
    %c0_i32 = arith.constant 0 : i32
    %c0_i32_0 = arith.constant 0 : i32
    %c0_i32_1 = arith.constant 0 : i32
    return %c0_i32, %c0_i32_0 : i32, i32
  }
  func.func @transform_5(%arg0: i32, %arg1: i32) -> (i32, i32) {
    %c0_i32 = arith.constant 0 : i32
    %c0_i32_0 = arith.constant 0 : i32
    %c0_i32_1 = arith.constant 0 : i32
    return %c0_i32, %c0_i32_0 : i32, i32
  }
  func.func @transform_6(%arg0: i32, %arg1: i32) -> (i32, i32) {
    %c0_i32 = arith.constant 0 : i32
    %c0_i32_0 = arith.constant 0 : i32
    return %arg0, %c0_i32 : i32, i32
  }
}

module attributes {stable_mosaic.version = 11 : i64} {
  func.func @_matmul_bias_kernel(%arg0: i32, %arg1: i32, %arg2: i32, %arg3: memref<16x256xf32, #tpu.memory_space<vmem>>, %arg4: memref<256x384xf32, #tpu.memory_space<vmem>>, %arg5: memref<1x384xf32, #tpu.memory_space<vmem>>, %arg6: memref<16x384xf32, #tpu.memory_space<vmem>>, %arg7: memref<16x384xf32, #tpu.memory_space<vmem>>) attributes {dimension_semantics = [#tpu.dimension_semantics<parallel>, #tpu.dimension_semantics<parallel>, #tpu.dimension_semantics<arbitrary>], iteration_bounds = array<i64: 1, 2, 1>, scalar_prefetch = 0 : i64, scratch_operands = 1 : i64, tpu.core_type = #tpu.core_type<tc>, window_params = [{transform_indices = @transform_0, window_bounds = array<i64: 16, 256>}, {transform_indices = @transform_1, window_bounds = array<i64: 256, 384>}, {transform_indices = @transform_2, window_bounds = array<i64: 1, 384>}, {transform_indices = @transform_3, window_bounds = array<i64: 16, 384>}]} {
    %c0_i32 = arith.constant 0 : i32
    %0 = arith.cmpi eq, %arg2, %c0_i32 : i32
    %1 = arith.extui %0 : i1 to i32
    %c0_i32_0 = arith.constant 0 : i32
    %2 = arith.cmpi ne, %1, %c0_i32_0 : i32
    scf.if %2 {
      %cst_10 = arith.constant 0.000000e+00 : f32
      %12 = vector.broadcast %cst_10 : f32 to vector<16x384xf32>
      %c0_11 = arith.constant 0 : index
      %c0_12 = arith.constant 0 : index
      %13 = vector.load %arg7[%c0_11, %c0_12] : memref<16x384xf32, #tpu.memory_space<vmem>>, vector<16x384xf32>
      tpu.vector_store %arg7[%c0_11, %c0_12], %12 {strides = array<i32>} : memref<16x384xf32, #tpu.memory_space<vmem>>, vector<16x384xf32>,
    } else {
    }
    %c0 = arith.constant 0 : index
    %c0_1 = arith.constant 0 : index
    %3 = vector.load %arg7[%c0, %c0_1] : memref<16x384xf32, #tpu.memory_space<vmem>>, vector<16x384xf32>
    %c0_2 = arith.constant 0 : index
    %c0_3 = arith.constant 0 : index
    %4 = vector.load %arg3[%c0_2, %c0_3] : memref<16x256xf32, #tpu.memory_space<vmem>>, vector<16x256xf32>
    %c0_4 = arith.constant 0 : index
    %c0_5 = arith.constant 0 : index
    %5 = vector.load %arg4[%c0_4, %c0_5] : memref<256x384xf32, #tpu.memory_space<vmem>>, vector<256x384xf32>
    %cst = arith.constant dense<0.000000e+00> : vector<16x384xf32>
    %6 = tpu.matmul %4, %5, %cst {dimension_numbers = #tpu.dot_dimension_numbers<[1], [0], [0], [1], [0, 0, 1, 1], [], []>} : vector<16x256xf32>, vector<256x384xf32>, vector<16x384xf32> -> vector<16x384xf32>
    %7 = arith.addf %3, %6 : vector<16x384xf32>
    %c0_6 = arith.constant 0 : index
    %c0_7 = arith.constant 0 : index
    %8 = vector.load %arg7[%c0_6, %c0_7] : memref<16x384xf32, #tpu.memory_space<vmem>>, vector<16x384xf32>
    tpu.vector_store %arg7[%c0_6, %c0_7], %7 {strides = array<i32>} : memref<16x384xf32, #tpu.memory_space<vmem>>, vector<16x384xf32>,
    %c0_i32_8 = arith.constant 0 : i32
    %9 = arith.cmpi eq, %arg2, %c0_i32_8 : i32
    %10 = arith.extui %9 : i1 to i32
    %c0_i32_9 = arith.constant 0 : i32
    %11 = arith.cmpi ne, %10, %c0_i32_9 : i32
    scf.if %11 {
      %c0_10 = arith.constant 0 : index
      %c0_11 = arith.constant 0 : index
      %12 = vector.load %arg7[%c0_10, %c0_11] : memref<16x384xf32, #tpu.memory_space<vmem>>, vector<16x384xf32>
      %c0_12 = arith.constant 0 : index
      %c0_13 = arith.constant 0 : index
      %13 = vector.load %arg5[%c0_12, %c0_13] : memref<1x384xf32, #tpu.memory_space<vmem>>, vector<1x384xf32>
      %14 = vector.broadcast %13 : vector<1x384xf32> to vector<16x384xf32>
      %15 = arith.addf %12, %14 : vector<16x384xf32>
      %c0_14 = arith.constant 0 : index
      %c0_15 = arith.constant 0 : index
      %16 = vector.load %arg6[%c0_14, %c0_15] : memref<16x384xf32, #tpu.memory_space<vmem>>, vector<16x384xf32>
      tpu.vector_store %arg6[%c0_14, %c0_15], %15 {strides = array<i32>} : memref<16x384xf32, #tpu.memory_space<vmem>>, vector<16x384xf32>,
    } else {
    }
    return
  }
  func.func @transform_0(%arg0: i32, %arg1: i32, %arg2: i32) -> (i32, i32) {
    %c0_i32 = arith.constant 0 : i32
    return %arg0, %arg2 : i32, i32
  }
  func.func @transform_1(%arg0: i32, %arg1: i32, %arg2: i32) -> (i32, i32) {
    %c0_i32 = arith.constant 0 : i32
    return %arg2, %arg1 : i32, i32
  }
  func.func @transform_2(%arg0: i32, %arg1: i32, %arg2: i32) -> (i32, i32) {
    %c0_i32 = arith.constant 0 : i32
    %c0_i32_0 = arith.constant 0 : i32
    return %c0_i32, %arg1 : i32, i32
  }
  func.func @transform_3(%arg0: i32, %arg1: i32, %arg2: i32) -> (i32, i32) {
    %c0_i32 = arith.constant 0 : i32
    return %arg0, %arg1 : i32, i32
  }
}

</mosaic_0001>

<bundles_post_ra>
// kernel: transformer_encoder_forward.30
= control target key start
LH: loop header
LB: loop body
LE: loop exit
PB: predicated region body
PF: predicated region fallthrough
CT: control target
= control target key end

     0   :  { %8 = vsyncpa [#allocation4], 0  ;;  %s1305_s0 = inlined_call_operand.vmem [shape: f32[16,256], index: 0, kind: input, shape index: {}]   ;;  %s1306_s1 = inlined_call_operand.hbm [shape: f32[256,768], index: 1, kind: input, shape index: {}]   ;;  %s1307_s2 = inlined_call_operand.vmem [shape: f32[1,768], index: 2, kind: input, shape index: {}]   ;;  %s1308_s3 = inlined_call_operand.vmem [shape: f32[16,768], index: 3, kind: output, shape index: {}]  }
   0x1   :  { %10 = vsyncpa [#allocation4 + $0x1], 0  ;;  %s1055_s12 = smov 0   ;;  %s1057_s13 = smov 0  }
   0x2   :  { %s1059_s14 = smov 0   ;;  %s1061_s15 = smov 0  }
   0x3   :  { %s1063_s16 = smov 0   ;;  %s1065_s17 = smov 0  }
   0x4 LB: > { %s742_s18 = sadd.s32 4294967295, %s1029_s17   ;;  %s31_s19 = sadd.s32 1, %s1025_s16  ;;  %s1029_s17 = sphi %s1065_s17, %s16_s17   ;;  %s1025_s16 = sphi %s1063_s16, %s1319_s16   ;;  %s1021_s15 = sphi %s1061_s15, %s1318_s15   ;;  %s1017_s14 = sphi %s1059_s14, %s1317_s14   ;;  %s1013_s13 = sphi %s1057_s13, %s1316_s13   ;;  %s1009_s12 = sphi %s1055_s12, %s1315_s12  }
   0x5   : > { %p33_p0 = scmp.ge.s32.totalorder %s31_s19, 2  ;;  %s72_s20 = sadd.s32 1, %s1017_s14 }
   0x6   : > { %p79_p1 = scmp.ne.s32.totalorder %s1017_s14, %s1013_s13  ;;  %p80_p2 = scmp.eq.s32.totalorder %s1029_s17, 0 }
   0x7   : > { %s1321_s19 = smov (%p33_p0, %s31_s19), 0  ;;  %p85_p4 = scmp.ne.s32.totalorder %s1013_s13, %s1009_s12 }
   0x8   : > { %p1091_p3 = por %p80_p2, %p79_p1  ;;  %s68_s22 = ssub.s32 %s1025_s16, %s1321_s19 }
   0x9   : > { %p86_p5 = scmp.eq.s32.totalorder %s742_s18, 0  ;;  %p70_p6 = scmp.eq.s32.totalorder %s68_s22, 0 }
   0xa   : > { %p137_p7 = scmp.eq.s32.totalorder %s742_s18, 1  ;;  %p897_p10 = scmp.lt.s32.totalorder %s1029_s17, 2 }
   0xb   : > { %p1098_p8 = por %p86_p5, %p85_p4  ;;  %s178_s26 = sand.u32 1, %s1017_s14  }
   0xc   : > { %s1103_s24 = scalar_select %p70_p6, %s1017_s14, %s72_s20  }
   0xd   : > { %p1105_p9 = por %p137_p7, %p79_p1  ;;  %s752_s27 = smul.u32 384, %s1025_s16 }
   0xe   : > { %s888_s28 = smul.u32 768, %s178_s26  ;;  %p1119_p11 = pnand %p897_p10, %p1091_p3 }
   0xf   : > { %s1311_s25 = scalar_select %p1105_p9, 1, 0 }
  0x10   : > { %s1115_s4 = scalar_lea.hbm %s1306_s1, %s752_s27  ;;  %s182_s6 = scalar_lea.vmem [#allocation3], %s888_s28 }
  0x11   : > { %s192_s7 = sshll.u32 %s182_s6, 4  ;;  %s1126_s8 = scalar_lea.sflag [#allocation4], %s178_s26  ;;  %s1123_s7 = int_to_ptr.vmem [resolvable:$true] %s192_s7 }
  0x12   : > { %s949_s9 = scalar_lea.hbm %s1115_s4, 12288  ;;  %p951_p0 = pneg %p1119_p11 }
  0x13   : > { %p950_p13 = scmp.ne.s32.totalorder %s1115_s4, %s949_s9  ;;  %s954_s12 = scalar_lea.hbm %s1306_s1, 24576 }
  0x14   : > { %p955_p3 = scmp.lt.u32.totalorder %s1115_s4, %s1306_s1  ;;  %p956_p4 = scmp.lt.u32.totalorder %s954_s12, %s949_s9 }
  0x15   : > { %p952_p1 = pnand %p951_p0, %p950_p13  ;;  %p958_p6 = scmp.lt.u32.totalorder %s949_s9, %s1115_s4 }
  0x16   : > { %p957_p5 = por %p956_p4, %p955_p3 }
  0x17   : > { %p953_p2 = pneg %p952_p1 }
  0x18   : > { %p959_p7 = por %p958_p6, %p957_p5 }
  0x1a   : > { %p960_p10 = pnand %p959_p7, %p953_p2 }
  0x1c   : > { %963 = shalt.err (!%p960_p10)
}
  0x1d   : > { %s964_s21 = scalar_lea.vmem %s1123_s7, 12288  ;;  %s1031_s22 = smov [#allocation3]  }
  0x1e   : > { %p965_p13 = scmp.ne.s32.totalorder %s1123_s7, %s964_s21  ;;  %s969_s26 = sshll.u32 %s1031_s22, 4  ;;  %s970_s26 = int_to_ptr.vmem [resolvable:$false] %s969_s26 }
  0x1f   : > { %s971_s27 = scalar_lea.vmem %s970_s26, 24576  ;;  %p972_p9 = scmp.lt.s32.totalorder %s1123_s7, %s970_s26 }
  0x20   : > { %p967_p1 = pnand %p965_p13, %p951_p0  ;;  %p973_p3 = scmp.lt.s32.totalorder %s971_s27, %s964_s21 }
  0x22   : > { %p968_p12 = pneg %p967_p1  ;;  %p974_p4 = por %p973_p3, %p972_p9 }
  0x24   : > { %p975_p5 = pnand %p974_p4, %p968_p12 }
  0x26   : > { %978 = shalt.err (!%p975_p5)
}
  0x27   : > { %s1032_s28 = smov 768   ;;  %s1033_s29 = smov 384  }
  0x28   : > { %s1034_s30 = smov 24   ;;  %p208_p0 = scmp.lt.s32.totalorder %s1029_s17, 3 }
  0x29   : > { %896 = dma.hbm_to_vmem [thread:$0]  (!%p1119_p11), %s1115_s4, 12288, %s1123_s7, %s1126_s8, %s1032_s28, %s1033_s29, %s1034_s30  }
  0x2a   : > { %p1313_p2 = scmp.ge.s32.totalorder %s1029_s17, 1 }
  0x2c   : > { %p209_p6 = pnand %p1313_p2, %p208_p0 }
  0x2d   : > { %s1158_s6 = sand.u32 (!%p209_p6), 1, %s1013_s13  }
  0x2e   : > { %212 = sbr.rel (%p209_p6) target bundleno = 349 (0x15d), region = 32  ;;  %s215_s10 = scalar_lea.sflag (!%p209_p6), [#allocation4], %s1158_s6 }
  0x2f   : > { %s889_s9 = smul.u32 (!%p209_p6), 768, %s1158_s6 }
  0x31   : > { %s1162_s11 = scalar_lea.vmem (!%p209_p6), [#allocation3], %s889_s9 }
  0x35   : > { %1004 = dma.done.wait (%p1098_p8), %s215_s10, 12288  }
  0x36   : > { %1006 = vsyncadd (%p1098_p8), %s215_s10, 4294955008  ;;  %v296_v0 = vld [vmem:[%s1162_s11 + $0x8] sm:$0xff]  ;;  %v299_v1 = vld [vmem:[%s1162_s11 + $0x20] sm:$0xff]  ;;  %s268_s21 = smul.u32 3, %s1021_s15  ;;  %p1314_p9 = scmp.ne.s32.totalorder %s1311_s25, 0 }
  0x37   : > { %v295_v2 = vld [vmem:[%s1162_s11] sm:$0xff]  ;;  %v792_v3 = vpack.c.bf16 %v299_v1, %v296_v0  ;;  %v298_v4 = vld [vmem:[%s1162_s11 + $0x18] sm:$0xff]  ;;  %v305_v6 = vld [vmem:[%s1162_s11 + $0x50] sm:$0xff]  ;;  %s890_s28 = smul.u32 48, %s1158_s6 }
  0x38   : > { %v302_v5 = vld [vmem:[%s1162_s11 + $0x38] sm:$0xff]  ;;  %v794_v7 = vpack.c.bf16 %v298_v4, %v295_v2  ;;  %v301_v9 = vld [vmem:[%s1162_s11 + $0x30] sm:$0xff]  ;;  %v304_v10 = vld [vmem:[%s1162_s11 + $0x48] sm:$0xff]  ;;  %p269_p8 = scmp.lt.s32.totalorder %s268_s21, 5  ;;  %s753_s30 = smul.u32 (%p1314_p9), 24, %s1021_s15 }
  0x39   : > { %v796_v8 = vpack.c.bf16 %v305_v6, %v302_v5  ;;  %v308_v11 = vld [vmem:[%s1162_s11 + $0x68] sm:$0xff]  ;;  %793 = vmatprep.subr.bf16.mxu0 %v792_v3  ;;  %v311_v12 = vld [vmem:[%s1162_s11 + $0x80] sm:$0xff]  ;;  %v798_v13 = vpack.c.bf16 %v304_v10, %v301_v9  ;;  %v310_v16 = vld [vmem:[%s1162_s11 + $0x78] sm:$0xff]  ;;  %s253_s29 = scalar_lea.vmem [#allocation5], %s890_s28 }
  0x3a   : > { %795 = vmatpush1.bf16.msra.mxu0 %v794_v7  ;;  %v800_v14 = vpack.c.bf16 %v311_v12, %v308_v11  ;;  %v307_v15 = vld [vmem:[%s1162_s11 + $0x60] sm:$0xff]  ;;  %v314_v17 = vld [vmem:[%s1162_s11 + $0x98] sm:$0xff]  ;;  %v317_v18 = vld [vmem:[%s1162_s11 + $0xb0] sm:$0xff]  ;;  %s1323_s21 = smov (!%p269_p8, %s268_s21), 5  ;;  %s605_s10 = scalar_lea.vmem (%p1314_p9), %s1308_s3, %s753_s30 }
  0x3b   : > { %797 = vmatprep.subr.bf16.mxu0 %v796_v8  ;;  %v802_v19 = vpack.c.bf16 %v310_v16, %v307_v15  ;;  %v804_v20 = vpack.c.bf16 %v317_v18, %v314_v17  ;;  %v313_v21 = vld [vmem:[%s1162_s11 + $0x90] sm:$0xff]  ;;  %v316_v22 = vld [vmem:[%s1162_s11 + $0xa8] sm:$0xff]  ;;  %v323_v24 = vld [vmem:[%s1162_s11 + $0xe0] sm:$0xff]  ;;  %s271_s27 = scalar_lea.vmem %s1307_s2, %s1323_s21 }
  0x3c   : > { %v320_v23 = vld [vmem:[%s1162_s11 + $0xc8] sm:$0xff]  ;;  %v345_v25 = vld [vmem:[%s1162_s11 + $0x190] sm:$0xff]  ;;  %v806_v29 = vpack.c.bf16 %v316_v22, %v313_v21  ;;  %v319_v30 = vld [vmem:[%s1162_s11 + $0xc0] sm:$0xff] }
  0x3d   : > { %v348_v26 = vld [vmem:[%s1162_s11 + $0x1a8] sm:$0xff]  ;;  %v297_v27 = vld [vmem:[%s1162_s11 + $0x10] sm:$0xff]  ;;  %v322_v31 = vld [vmem:[%s1162_s11 + $0xd8] sm:$0xff]  ;;  %v808_v34 = vpack.c.bf16 %v323_v24, %v320_v23 }
  0x3e   : > { %799 = vmatpush1.bf16.msra.mxu0 %v798_v13  ;;  %v300_v28 = vld [vmem:[%s1162_s11 + $0x28] sm:$0xff]  ;;  %v856_v32 = vpack.c.bf16 %v348_v26, %v345_v25  ;;  %v326_v35 = vld [vmem:[%s1162_s11 + $0xf8] sm:$0xff]  ;;  %v351_v36 = vld [vmem:[%s1162_s11 + $0x1c0] sm:$0xff]  ;;  %v810_v43 = vpack.c.bf16 %v322_v31, %v319_v30 }
  0x3f   : > { %801 = vmatprep.subr.bf16.mxu0 %v800_v14  ;;  %v858_v33 = vpack.c.bf16 %v300_v28, %v297_v27  ;;  %v354_v37 = vld [vmem:[%s1162_s11 + $0x1d8] sm:$0xff]  ;;  %v329_v38 = vld [vmem:[%s1162_s11 + $0x110] sm:$0xff]  ;;  %v303_v40 = vld [vmem:[%s1162_s11 + $0x40] sm:$0xff] }
  0x40   : > { %857 = vmatprep.subr.bf16.mxu1 %v856_v32  ;;  %v860_v39 = vpack.c.bf16 %v354_v37, %v351_v36  ;;  %v306_v41 = vld [vmem:[%s1162_s11 + $0x58] sm:$0xff]  ;;  %v357_v44 = vld [vmem:[%s1162_s11 + $0x1f0] sm:$0xff]  ;;  %v360_v45 = vld [vmem:[%s1162_s11 + $0x208] sm:$0xff]  ;;  %v812_v47 = vpack.c.bf16 %v329_v38, %v326_v35 }
  0x41   : > { %859 = vmatpush3.bf16.msra.mxu1 %v858_v33  ;;  %v862_v42 = vpack.c.bf16 %v306_v41, %v303_v40  ;;  %v309_v46 = vld [vmem:[%s1162_s11 + $0x70] sm:$0xff]  ;;  %v328_v49 = vld [vmem:[%s1162_s11 + $0x108] sm:$0xff]  ;;  %v864_v50 = vpack.c.bf16 %v360_v45, %v357_v44  ;;  %v335_v53 = vld [vmem:[%s1162_s11 + $0x140] sm:$0xff] }
  0x42   : > { %803 = vmatpush1.bf16.msra.mxu0 %v802_v19  ;;  %861 = vmatprep.subr.bf16.mxu1 %v860_v39  ;;  %v325_v48 = vld [vmem:[%s1162_s11 + $0xf0] sm:$0xff]  ;;  %v312_v51 = vld [vmem:[%s1162_s11 + $0x88] sm:$0xff]  ;;  %v363_v54 = vld [vmem:[%s1162_s11 + $0x220] sm:$0xff] }
  0x43   : > { %805 = vmatprep.subr.bf16.mxu0 %v804_v20  ;;  %v332_v52 = vld [vmem:[%s1162_s11 + $0x128] sm:$0xff]  ;;  %v866_v55 = vpack.c.bf16 %v312_v51, %v309_v46  ;;  %v366_v56 = vld [vmem:[%s1162_s11 + $0x238] sm:$0xff]  ;;  %v814_v57 = vpack.c.bf16 %v328_v49, %v325_v48  ;;  %v331_v58 = vld [vmem:[%s1162_s11 + $0x120] sm:$0xff] }
  0x44   : > { %v868_v59 = vpack.c.bf16 %v366_v56, %v363_v54  ;;  %v315_v60 = vld [vmem:[%s1162_s11 + $0xa0] sm:$0xff]  ;;  %v318_v61 = vld [vmem:[%s1162_s11 + $0xb8] sm:$0xff]  ;;  %v816_v62 = vpack.c.bf16 %v335_v53, %v332_v52  ;;  %v369_v0 = vld [vmem:[%s1162_s11 + $0x250] sm:$0xff] }
  0x45   : > { %863 = vmatpush3.bf16.msra.mxu1 %v862_v42  ;;  %v334_v63 = vld [vmem:[%s1162_s11 + $0x138] sm:$0xff]  ;;  %v372_v1 = vld [vmem:[%s1162_s11 + $0x268] sm:$0xff]  ;;  %v341_v3 = vld [vmem:[%s1162_s11 + $0x170] sm:$0xff]  ;;  %v870_v4 = vpack.c.bf16 %v318_v61, %v315_v60 }
  0x46   : > { %807 = vmatpush1.bf16.msra.mxu0 %v806_v29  ;;  %865 = vmatprep.subr.bf16.mxu1 %v864_v50  ;;  %v338_v2 = vld [vmem:[%s1162_s11 + $0x158] sm:$0xff]  ;;  %v818_v5 = vpack.c.bf16 %v334_v63, %v331_v58  ;;  %v337_v6 = vld [vmem:[%s1162_s11 + $0x150] sm:$0xff]  ;;  %v872_v7 = vpack.c.bf16 %v372_v1, %v369_v0  ;;  %v324_v9 = vld [vmem:[%s1162_s11 + $0xe8] sm:$0xff] }
  0x47   : > { %809 = vmatprep.subr.bf16.mxu0 %v808_v34  ;;  %v321_v8 = vld [vmem:[%s1162_s11 + $0xd0] sm:$0xff]  ;;  %v820_v10 = vpack.c.bf16 %v341_v3, %v338_v2  ;;  %v340_v11 = vld [vmem:[%s1162_s11 + $0x168] sm:$0xff]  ;;  %v375_v12 = vld [vmem:[%s1162_s11 + $0x280] sm:$0xff] }
  0x48   : > { %v378_v13 = vld [vmem:[%s1162_s11 + $0x298] sm:$0xff]  ;;  %v344_v14 = vld [vmem:[%s1162_s11 + $0x188] sm:$0xff]  ;;  %v347_v15 = vld [vmem:[%s1162_s11 + $0x1a0] sm:$0xff]  ;;  %v874_v16 = vpack.c.bf16 %v324_v9, %v321_v8  ;;  %v822_v17 = vpack.c.bf16 %v340_v11, %v337_v6 }
  0x49   : > { %867 = vmatpush3.bf16.msra.mxu1 %v866_v55  ;;  %v343_v18 = vld [vmem:[%s1162_s11 + $0x180] sm:$0xff]  ;;  %v876_v19 = vpack.c.bf16 %v378_v13, %v375_v12  ;;  %v330_v21 = vld [vmem:[%s1162_s11 + $0x118] sm:$0xff]  ;;  %v824_v22 = vpack.c.bf16 %v347_v15, %v344_v14  ;;  %v381_v24 = vld [vmem:[%s1162_s11 + $0x2b0] sm:$0xff] }
  0x4a   : > { %811 = vmatpush1.bf16.msra.mxu0 %v810_v43  ;;  %869 = vmatprep.subr.bf16.mxu1 %v868_v59  ;;  %v327_v20 = vld [vmem:[%s1162_s11 + $0x100] sm:$0xff]  ;;  %v346_v23 = vld [vmem:[%s1162_s11 + $0x198] sm:$0xff]  ;;  %v384_v25 = vld [vmem:[%s1162_s11 + $0x2c8] sm:$0xff] }
  0x4b   : > { %813 = vmatprep.subr.bf16.mxu0 %v812_v47  ;;  %v350_v26 = vld [vmem:[%s1162_s11 + $0x1b8] sm:$0xff]  ;;  %v353_v27 = vld [vmem:[%s1162_s11 + $0x1d0] sm:$0xff]  ;;  %v878_v28 = vpack.c.bf16 %v330_v21, %v327_v20  ;;  %v292_v29 = vld [vmem:[%s1305_s0 + $0x8] sm:$0xff]  ;;  %v826_v30 = vpack.c.bf16 %v346_v23, %v343_v18  ;;  %v880_v32 = vpack.c.bf16 %v384_v25, %v381_v24  ;;  %v566_v20 = vlaneseq }
  0x4c   : > { %v349_v31 = vld [vmem:[%s1162_s11 + $0x1b0] sm:$0xff]  ;;  %v336_v34 = vld [vmem:[%s1162_s11 + $0x148] sm:$0xff]  ;;  %v828_v35 = vpack.c.bf16 %v353_v27, %v350_v26  ;;  %v387_v37 = vld [vmem:[%s1162_s11 + $0x2e0] sm:$0xff]  ;;  %532 = vmatprep.mubr.f32.mxu1 %v292_v29  ;;  %455 = vmatprep.mubr.f32.mxu0 %v292_v29 }
  0x4d   : > { %871 = vmatpush3.bf16.msra.mxu1 %v870_v4  ;;  %v333_v33 = vld [vmem:[%s1162_s11 + $0x130] sm:$0xff]  ;;  %v352_v36 = vld [vmem:[%s1162_s11 + $0x1c8] sm:$0xff]  ;;  %v390_v38 = vld [vmem:[%s1162_s11 + $0x2f8] sm:$0xff]  ;;  %v567_v21 = vshrl.u32 %v566_v20, 7 }
  0x4e   : > { %815 = vmatpush1.bf16.msra.mxu0 %v814_v57  ;;  %873 = vmatprep.subr.bf16.mxu1 %v872_v7  ;;  %v356_v39 = vld [vmem:[%s1162_s11 + $0x1e8] sm:$0xff]  ;;  %v359_v40 = vld [vmem:[%s1162_s11 + $0x200] sm:$0xff]  ;;  %v882_v41 = vpack.c.bf16 %v336_v34, %v333_v33  ;;  %v830_v42 = vpack.c.bf16 %v352_v36, %v349_v31  ;;  %v884_v43 = vpack.c.bf16 %v390_v38, %v387_v37  ;;  %v342_v45 = vld [vmem:[%s1162_s11 + $0x178] sm:$0xff] }
  0x4f   : > { %817 = vmatprep.subr.bf16.mxu0 %v816_v62  ;;  %v339_v44 = vld [vmem:[%s1162_s11 + $0x160] sm:$0xff]  ;;  %v832_v46 = vpack.c.bf16 %v359_v40, %v356_v39  ;;  %v358_v48 = vld [vmem:[%s1162_s11 + $0x1f8] sm:$0xff]  ;;  %v365_v50 = vld [vmem:[%s1162_s11 + $0x230] sm:$0xff]  ;;  %v568_v33 = vsub.s32 0, %v567_v21  ;;  %v572_v34 = vsub.s32 1, %v567_v21 }
  0x50   : > { %v355_v47 = vld [vmem:[%s1162_s11 + $0x1e0] sm:$0xff]  ;;  %v362_v49 = vld [vmem:[%s1162_s11 + $0x218] sm:$0xff]  ;;  %v886_v51 = vpack.c.bf16 %v342_v45, %v339_v44  ;;  %v361_v54 = vld [vmem:[%s1162_s11 + $0x210] sm:$0xff] }
  0x51   : > { %875 = vmatpush3.bf16.msra.mxu1 %v874_v16  ;;  %v834_v52 = vpack.c.bf16 %v358_v48, %v355_v47  ;;  %v836_v53 = vpack.c.bf16 %v365_v50, %v362_v49  ;;  %v364_v55 = vld [vmem:[%s1162_s11 + $0x228] sm:$0xff]  ;;  %v371_v57 = vld [vmem:[%s1162_s11 + $0x260] sm:$0xff]  ;;  %v294_v60 = vld [vmem:[%s1305_s0 + $0x18] sm:$0xff] }
  0x52   : > { %819 = vmatpush1.bf16.msra.mxu0 %v818_v5  ;;  %877 = vmatprep.subr.bf16.mxu1 %v876_v19  ;;  %v368_v56 = vld [vmem:[%s1162_s11 + $0x248] sm:$0xff]  ;;  %v291_v58 = vld [vmem:[%s1305_s0] sm:$0xff]  ;;  %v838_v59 = vpack.c.bf16 %v364_v55, %v361_v54  ;;  %v370_v63 = vld [vmem:[%s1162_s11 + $0x258] sm:$0xff] }
  0x53   : > { %821 = vmatprep.subr.bf16.mxu0 %v820_v10  ;;  %v840_v61 = vpack.c.bf16 %v371_v57, %v368_v56  ;;  %v367_v62 = vld [vmem:[%s1162_s11 + $0x240] sm:$0xff]  ;;  %v374_v0 = vld [vmem:[%s1162_s11 + $0x278] sm:$0xff]  ;;  %v377_v1 = vld [vmem:[%s1162_s11 + $0x290] sm:$0xff] }
  0x54   : > { %v293_v2 = vld [vmem:[%s1305_s0 + $0x10] sm:$0xff]  ;;  %v842_v3 = vpack.c.bf16 %v370_v63, %v367_v62  ;;  %v844_v4 = vpack.c.bf16 %v377_v1, %v374_v0  ;;  %v376_v6 = vld [vmem:[%s1162_s11 + $0x288] sm:$0xff]  ;;  %v383_v8 = vld [vmem:[%s1162_s11 + $0x2c0] sm:$0xff] }
  0x55   : > { %879 = vmatpush3.bf16.msra.mxu1 %v878_v28  ;;  %v373_v5 = vld [vmem:[%s1162_s11 + $0x270] sm:$0xff]  ;;  %v380_v7 = vld [vmem:[%s1162_s11 + $0x2a8] sm:$0xff]  ;;  %v379_v11 = vld [vmem:[%s1162_s11 + $0x2a0] sm:$0xff] }
  0x56   : > { %823 = vmatpush1.bf16.msra.mxu0 %v822_v17  ;;  %881 = vmatprep.subr.bf16.mxu1 %v880_v32  ;;  %v846_v9 = vpack.c.bf16 %v376_v6, %v373_v5  ;;  %v848_v10 = vpack.c.bf16 %v383_v8, %v380_v7  ;;  %v382_v12 = vld [vmem:[%s1162_s11 + $0x2b8] sm:$0xff]  ;;  %v389_v14 = vld [vmem:[%s1162_s11 + $0x2f0] sm:$0xff]  ;;  %v388_v18 = vld [vmem:[%s1162_s11 + $0x2e8] sm:$0xff] }
  0x57   : > { %825 = vmatprep.subr.bf16.mxu0 %v824_v22  ;;  %v386_v13 = vld [vmem:[%s1162_s11 + $0x2d8] sm:$0xff]  ;;  %v850_v15 = vpack.c.bf16 %v382_v12, %v379_v11  ;;  %v385_v17 = vld [vmem:[%s1162_s11 + $0x2d0] sm:$0xff]  ;;  %v576_v22 = vsub.s32 2, %v567_v21  ;;  %v564_v23 = vld [vmem:[%s271_s27] sm:$0x7] }
  0x58   : > { %v852_v16 = vpack.c.bf16 %v389_v14, %v386_v13  ;;  %v854_v19 = vpack.c.bf16 %v388_v18, %v385_v17  ;;  %v573_v36 = vrot.slane %v564_v23, %v572_v34 }
  0x59   : > { %883 = vmatpush3.bf16.msra.mxu1 %v882_v41  ;;  %v577_v25 = vrot.slane %v564_v23, %v576_v22 }
  0x5a   : > { %827 = vmatpush1.bf16.msra.mxu0 %v826_v30  ;;  %885 = vmatprep.subr.bf16.mxu1 %v884_v43 }
  0x5b   : > { %829 = vmatprep.subr.bf16.mxu0 %v828_v35  ;;  %v569_v35 = vrot.slane %v564_v23, %v568_v33 }
  0x5d   : > { %887 = vmatpush3.bf16.msra.mxu1 %v886_v51 }
  0x5e   : > { %831 = vmatpush1.bf16.msra.mxu0 %v830_v42 }
  0x5f   : > { %833 = vmatprep.subr.bf16.mxu0 %v832_v46 }
  0x60   : > { %533 = vmatmul.mubr.f32.vlgmr.msra.gmra.mrb[0].mxu1 %v291_v58 }
  0x61   : > { %537 = vmatprep.mubr.f32.mxu1 %v294_v60 }
  0x62   : > { %835 = vmatpush1.bf16.msra.mxu0 %v834_v52 }
  0x63   : > { %837 = vmatprep.subr.bf16.mxu0 %v836_v53 }
  0x64   : > { %538 = vmatmul.mubr.f32.gmra.mrb[2].mxu1 %v293_v2 }
  0x66   : > { %839 = vmatpush1.bf16.msra.mxu0 %v838_v59 }
  0x67   : > { %841 = vmatprep.subr.bf16.mxu0 %v840_v61 }
  0x6a   : > { %843 = vmatpush1.bf16.msra.mxu0 %v842_v3 }
  0x6b   : > { %845 = vmatprep.subr.bf16.mxu0 %v844_v4 }
  0x6e   : > { %847 = vmatpush1.bf16.msra.mxu0 %v846_v9 }
  0x6f   : > { %849 = vmatprep.subr.bf16.mxu0 %v848_v10 }
  0x72   : > { %851 = vmatpush1.bf16.msra.mxu0 %v850_v15 }
  0x73   : > { %853 = vmatprep.subr.bf16.mxu0 %v852_v16 }
  0x76   : > { %855 = vmatpush1.bf16.msra.mxu0 %v854_v19 }
  0x79   : > { %456 = vmatmul.mubr.f32.vlgmr.msra.gmra.mrb[0].mxu0 %v291_v58 }
  0x7a   : > { %461 = vmatprep.mubr.f32.mxu0 %v294_v60 }
  0x7d   : > { %462 = vmatmul.mubr.f32.gmra.mrb[2].mxu0 %v293_v2 }
 0x133   : > { %v786_v24 = vpop.f32.mrb[0].mxu1 }
 0x134   : > { %v787_v26 = vpop.f32.mrb[1].mxu1 }
 0x135   : > { %v788_v27 = vadd.f32 %v787_v26, %v786_v24 }
 0x137   : > { %v583_v28 = vadd.f32 %v788_v27, %v577_v25  ;;  %v789_v29 = vpop.f32.mrb[2].mxu1 }
 0x138   : > { %v790_v30 = vpop.f32.mrb[3].mxu1 }
 0x139   : > { %589 = vst [vmem:[%s253_s29 + $0x10] sm:$0xff] %v583_v28  ;;  %v791_v31 = vadd.f32 %v790_v30, %v789_v29 }
 0x13b   : > { %v586_v32 = vadd.f32 %v791_v31, %v577_v25 }
 0x13d   : > { %592 = vst [vmem:[%s253_s29 + $0x28] sm:$0xff] %v586_v32 }
 0x140   : > { %v622_v47 = vld [vmem:[%s253_s29 + $0x10] sm:$0xff] (%p1314_p9) }
 0x141   : > { %623 = vst [vmem:[%s605_s10 + $0x10] sm:$0xff] (%p1314_p9), %v622_v47 }
 0x144   : > { %v628_v50 = vld [vmem:[%s253_s29 + $0x28] sm:$0xff] (%p1314_p9) }
 0x145   : > { %629 = vst [vmem:[%s605_s10 + $0x40] sm:$0xff] (%p1314_p9), %v628_v50 }
 0x14c   : > { %v457_v37 = vpop.f32.mrb[0].mxu0 }
 0x14d   : > { %v581_v38 = vadd.f32 %v569_v35, %v457_v37  ;;  %v459_v39 = vpop.f32.mrb[1].mxu0 }
 0x14e   : > { %v582_v40 = vadd.f32 %v573_v36, %v459_v39  ;;  %599 = sbr.rel (!%p1314_p9) target bundleno = 349 (0x15d), region = 48 }
 0x14f   : > { %587 = vst [vmem:[%s253_s29] sm:$0xff] %v581_v38 }
 0x150   : > { %588 = vst [vmem:[%s253_s29 + $0x8] sm:$0xff] %v582_v40  ;;  %v463_v41 = vpop.f32.mrb[2].mxu0 }
 0x151   : > { %v584_v42 = vadd.f32 %v569_v35, %v463_v41  ;;  %v465_v43 = vpop.f32.mrb[3].mxu0 }
 0x152   : > { %v585_v44 = vadd.f32 %v573_v36, %v465_v43 }
 0x153   : > { %590 = vst [vmem:[%s253_s29 + $0x18] sm:$0xff] %v584_v42 }
 0x154   : > { %591 = vst [vmem:[%s253_s29 + $0x20] sm:$0xff] %v585_v44 }
 0x156   : > { %v618_v45 = vld [vmem:[%s253_s29] sm:$0xff] }
 0x157   : > { %v620_v46 = vld [vmem:[%s253_s29 + $0x8] sm:$0xff]  ;;  %619 = vst [vmem:[%s605_s10] sm:$0xff] %v618_v45 }
 0x158   : > { %621 = vst [vmem:[%s605_s10 + $0x8] sm:$0xff] %v620_v46 }
 0x15a   : > { %v624_v48 = vld [vmem:[%s253_s29 + $0x18] sm:$0xff] }
 0x15b   : > { %v626_v49 = vld [vmem:[%s253_s29 + $0x20] sm:$0xff]  ;;  %625 = vst [vmem:[%s605_s10 + $0x30] sm:$0xff] %v624_v48 }
 0x15c   : > { %627 = vst [vmem:[%s605_s10 + $0x38] sm:$0xff] %v626_v49 }
 0x15d PF: > { %s16_s17 = sadd.s32 1, %s1029_s17   ;;  %s1315_s12 = smov %s1013_s13 }
 0x15e   : > { %p13_p11 = scmp.ge.s32.totalorder %s16_s17, 4   ;;  %s1316_s13 = smov %s1017_s14 }
 0x15f   : > { %s1317_s14 = smov %s1103_s24  ;;  %s1318_s15 = smov %s1025_s16 }
 0x160   : > { %s1319_s16 = smov %s1321_s19  ;;  %15 = sbr.rel (!%p13_p11) target bundleno = 4 (0x4), region = 109 }
 0x167   :  { %645 = vsyncpa [#allocation4], 1 }
 0x168   :  { %647 = vsyncpa [#allocation4 + $0x1], 1 }

// kernel: transformer_encoder_forward.32
= control target key start
LH: loop header
LB: loop body
LE: loop exit
PB: predicated region body
PF: predicated region fallthrough
CT: control target
= control target key end

     0   :  { %s664_s1 = inlined_call_operand.vmem [shape: f32[256,256], index: 1, kind: input, shape index: {}]   ;;  %s665_s0 = inlined_call_operand.vmem [shape: f32[16,256], index: 0, kind: input, shape index: {}]   ;;  %s666_s2 = inlined_call_operand.vmem [shape: f32[1,256], index: 2, kind: input, shape index: {}]   ;;  %s667_s3 = inlined_call_operand.vmem [shape: f32[16,256], index: 3, kind: input, shape index: {}]   ;;  %s668_s4 = inlined_call_operand.vmem [shape: f32[1,256], index: 4, kind: input, shape index: {}]   ;;  %s669_s5 = inlined_call_operand.vmem [shape: f32[1,256], index: 5, kind: input, shape index: {}]   ;;  %s670_s6 = inlined_call_operand.vmem [shape: f32[16,256], index: 6, kind: output, shape index: {}]  }
   0x1   :  { %v40_v0 = vld [vmem:[%s664_s1 + $0x8] sm:$0xff]  ;;  %v42_v1 = vld [vmem:[%s664_s1 + $0x18] sm:$0xff]  ;;  %v39_v2 = vld [vmem:[%s664_s1] sm:$0xff] }
   0x2   :  { %v292_v3 = vpack.c.bf16 %v42_v1, %v40_v0  ;;  %v41_v4 = vld [vmem:[%s664_s1 + $0x10] sm:$0xff]  ;;  %v44_v5 = vld [vmem:[%s664_s1 + $0x28] sm:$0xff]  ;;  %v46_v6 = vld [vmem:[%s664_s1 + $0x38] sm:$0xff] }
   0x3   :  { %v294_v7 = vpack.c.bf16 %v41_v4, %v39_v2  ;;  %v296_v8 = vpack.c.bf16 %v46_v6, %v44_v5  ;;  %v43_v9 = vld [vmem:[%s664_s1 + $0x20] sm:$0xff]  ;;  %v45_v10 = vld [vmem:[%s664_s1 + $0x30] sm:$0xff]  ;;  %v48_v11 = vld [vmem:[%s664_s1 + $0x48] sm:$0xff] }
   0x4   :  { %293 = vmatprep.subr.bf16.mxu0 %v292_v3  ;;  %356 = vmatprep.subr.bf16.mxu1 %v292_v3  ;;  %v50_v12 = vld [vmem:[%s664_s1 + $0x58] sm:$0xff]  ;;  %v298_v13 = vpack.c.bf16 %v45_v10, %v43_v9  ;;  %v47_v15 = vld [vmem:[%s664_s1 + $0x40] sm:$0xff]  ;;  %v49_v16 = vld [vmem:[%s664_s1 + $0x50] sm:$0xff] }
   0x5   :  { %295 = vmatpush1.bf16.msra.mxu0 %v294_v7  ;;  %372 = vmatpush1.bf16.msra.mxu1 %v294_v7  ;;  %v300_v14 = vpack.c.bf16 %v50_v12, %v48_v11  ;;  %v52_v17 = vld [vmem:[%s664_s1 + $0x68] sm:$0xff]  ;;  %v54_v18 = vld [vmem:[%s664_s1 + $0x78] sm:$0xff]  ;;  %v302_v19 = vpack.c.bf16 %v49_v16, %v47_v15  ;;  %v51_v21 = vld [vmem:[%s664_s1 + $0x60] sm:$0xff] }
   0x6   :  { %297 = vmatprep.subr.bf16.mxu0 %v296_v8  ;;  %357 = vmatprep.subr.bf16.mxu1 %v296_v8  ;;  %v304_v20 = vpack.c.bf16 %v54_v18, %v52_v17  ;;  %v53_v22 = vld [vmem:[%s664_s1 + $0x70] sm:$0xff]  ;;  %v56_v23 = vld [vmem:[%s664_s1 + $0x88] sm:$0xff]  ;;  %v58_v24 = vld [vmem:[%s664_s1 + $0x98] sm:$0xff] }
   0x7   :  { %v306_v25 = vpack.c.bf16 %v53_v22, %v51_v21  ;;  %v308_v26 = vpack.c.bf16 %v58_v24, %v56_v23  ;;  %v55_v27 = vld [vmem:[%s664_s1 + $0x80] sm:$0xff]  ;;  %v57_v28 = vld [vmem:[%s664_s1 + $0x90] sm:$0xff]  ;;  %v60_v29 = vld [vmem:[%s664_s1 + $0xa8] sm:$0xff] }
   0x8   :  { %v62_v30 = vld [vmem:[%s664_s1 + $0xb8] sm:$0xff]  ;;  %v310_v31 = vpack.c.bf16 %v57_v28, %v55_v27  ;;  %v59_v33 = vld [vmem:[%s664_s1 + $0xa0] sm:$0xff]  ;;  %v61_v34 = vld [vmem:[%s664_s1 + $0xb0] sm:$0xff] }
   0x9   :  { %299 = vmatpush1.bf16.msra.mxu0 %v298_v13  ;;  %373 = vmatpush1.bf16.msra.mxu1 %v298_v13  ;;  %v312_v32 = vpack.c.bf16 %v62_v30, %v60_v29  ;;  %v64_v35 = vld [vmem:[%s664_s1 + $0xc8] sm:$0xff]  ;;  %v66_v36 = vld [vmem:[%s664_s1 + $0xd8] sm:$0xff]  ;;  %v314_v37 = vpack.c.bf16 %v61_v34, %v59_v33  ;;  %v63_v39 = vld [vmem:[%s664_s1 + $0xc0] sm:$0xff] }
   0xa   :  { %301 = vmatprep.subr.bf16.mxu0 %v300_v14  ;;  %358 = vmatprep.subr.bf16.mxu1 %v300_v14  ;;  %v316_v38 = vpack.c.bf16 %v66_v36, %v64_v35  ;;  %v65_v40 = vld [vmem:[%s664_s1 + $0xd0] sm:$0xff]  ;;  %v36_v41 = vld [vmem:[%s665_s0 + $0x8] sm:$0xff]  ;;  %v70_v43 = vld [vmem:[%s664_s1 + $0xf8] sm:$0xff]  ;;  %v197_v36 = vlaneseq }
   0xb   :  { %v68_v42 = vld [vmem:[%s664_s1 + $0xe8] sm:$0xff]  ;;  %167 = vmatprep.mubr.f32.mxu0 %v36_v41  ;;  %v38_v44 = vld [vmem:[%s665_s0 + $0x18] sm:$0xff]  ;;  %v318_v45 = vpack.c.bf16 %v65_v40, %v63_v39  ;;  %v67_v47 = vld [vmem:[%s664_s1 + $0xe0] sm:$0xff] }
   0xc   :  { %173 = vmatprep.mubr.f32.mxu1 %v38_v44  ;;  %v320_v46 = vpack.c.bf16 %v70_v43, %v68_v42  ;;  %v69_v48 = vld [vmem:[%s664_s1 + $0xf0] sm:$0xff]  ;;  %v72_v49 = vld [vmem:[%s664_s1 + $0x108] sm:$0xff]  ;;  %v74_v50 = vld [vmem:[%s664_s1 + $0x118] sm:$0xff] }
   0xd   :  { %303 = vmatpush1.bf16.msra.mxu0 %v302_v19  ;;  %374 = vmatpush1.bf16.msra.mxu1 %v302_v19  ;;  %v322_v51 = vpack.c.bf16 %v69_v48, %v67_v47  ;;  %v324_v52 = vpack.c.bf16 %v74_v50, %v72_v49  ;;  %v71_v53 = vld [vmem:[%s664_s1 + $0x100] sm:$0xff]  ;;  %v73_v54 = vld [vmem:[%s664_s1 + $0x110] sm:$0xff]  ;;  %v76_v55 = vld [vmem:[%s664_s1 + $0x128] sm:$0xff] }
   0xe   :  { %305 = vmatprep.subr.bf16.mxu0 %v304_v20  ;;  %359 = vmatprep.subr.bf16.mxu1 %v304_v20  ;;  %v78_v56 = vld [vmem:[%s664_s1 + $0x138] sm:$0xff]  ;;  %v326_v57 = vpack.c.bf16 %v73_v54, %v71_v53  ;;  %v75_v59 = vld [vmem:[%s664_s1 + $0x120] sm:$0xff]  ;;  %v77_v60 = vld [vmem:[%s664_s1 + $0x130] sm:$0xff] }
   0xf   :  { %v328_v58 = vpack.c.bf16 %v78_v56, %v76_v55  ;;  %v80_v61 = vld [vmem:[%s664_s1 + $0x148] sm:$0xff]  ;;  %v82_v62 = vld [vmem:[%s664_s1 + $0x158] sm:$0xff]  ;;  %v330_v63 = vpack.c.bf16 %v77_v60, %v75_v59  ;;  %v79_v1 = vld [vmem:[%s664_s1 + $0x140] sm:$0xff] }
  0x10   :  { %v332_v0 = vpack.c.bf16 %v82_v62, %v80_v61  ;;  %v81_v2 = vld [vmem:[%s664_s1 + $0x150] sm:$0xff]  ;;  %v84_v3 = vld [vmem:[%s664_s1 + $0x168] sm:$0xff]  ;;  %v86_v4 = vld [vmem:[%s664_s1 + $0x178] sm:$0xff] }
  0x11   :  { %307 = vmatpush1.bf16.msra.mxu0 %v306_v25  ;;  %375 = vmatpush1.bf16.msra.mxu1 %v306_v25  ;;  %v334_v5 = vpack.c.bf16 %v81_v2, %v79_v1  ;;  %v336_v6 = vpack.c.bf16 %v86_v4, %v84_v3  ;;  %v83_v7 = vld [vmem:[%s664_s1 + $0x160] sm:$0xff]  ;;  %v85_v8 = vld [vmem:[%s664_s1 + $0x170] sm:$0xff]  ;;  %v88_v9 = vld [vmem:[%s664_s1 + $0x188] sm:$0xff] }
  0x12   :  { %309 = vmatprep.subr.bf16.mxu0 %v308_v26  ;;  %360 = vmatprep.subr.bf16.mxu1 %v308_v26  ;;  %v90_v10 = vld [vmem:[%s664_s1 + $0x198] sm:$0xff]  ;;  %v338_v11 = vpack.c.bf16 %v85_v8, %v83_v7  ;;  %v87_v13 = vld [vmem:[%s664_s1 + $0x180] sm:$0xff]  ;;  %v89_v14 = vld [vmem:[%s664_s1 + $0x190] sm:$0xff] }
  0x13   :  { %v340_v12 = vpack.c.bf16 %v90_v10, %v88_v9  ;;  %v92_v15 = vld [vmem:[%s664_s1 + $0x1a8] sm:$0xff]  ;;  %v94_v16 = vld [vmem:[%s664_s1 + $0x1b8] sm:$0xff]  ;;  %v342_v17 = vpack.c.bf16 %v89_v14, %v87_v13  ;;  %v91_v19 = vld [vmem:[%s664_s1 + $0x1a0] sm:$0xff] }
  0x14   :  { %v344_v18 = vpack.c.bf16 %v94_v16, %v92_v15  ;;  %v93_v20 = vld [vmem:[%s664_s1 + $0x1b0] sm:$0xff]  ;;  %v96_v21 = vld [vmem:[%s664_s1 + $0x1c8] sm:$0xff]  ;;  %v98_v22 = vld [vmem:[%s664_s1 + $0x1d8] sm:$0xff] }
  0x15   :  { %311 = vmatpush1.bf16.msra.mxu0 %v310_v31  ;;  %376 = vmatpush1.bf16.msra.mxu1 %v310_v31  ;;  %v346_v23 = vpack.c.bf16 %v93_v20, %v91_v19  ;;  %v348_v24 = vpack.c.bf16 %v98_v22, %v96_v21  ;;  %v95_v25 = vld [vmem:[%s664_s1 + $0x1c0] sm:$0xff]  ;;  %v97_v26 = vld [vmem:[%s664_s1 + $0x1d0] sm:$0xff]  ;;  %v100_v27 = vld [vmem:[%s664_s1 + $0x1e8] sm:$0xff] }
  0x16   :  { %313 = vmatprep.subr.bf16.mxu0 %v312_v32  ;;  %361 = vmatprep.subr.bf16.mxu1 %v312_v32  ;;  %v102_v28 = vld [vmem:[%s664_s1 + $0x1f8] sm:$0xff]  ;;  %v350_v29 = vpack.c.bf16 %v97_v26, %v95_v25  ;;  %v99_v31 = vld [vmem:[%s664_s1 + $0x1e0] sm:$0xff]  ;;  %v101_v32 = vld [vmem:[%s664_s1 + $0x1f0] sm:$0xff] }
  0x17   :  { %v352_v30 = vpack.c.bf16 %v102_v28, %v100_v27  ;;  %v354_v33 = vpack.c.bf16 %v101_v32, %v99_v31  ;;  %v35_v34 = vld [vmem:[%s665_s0] sm:$0xff]  ;;  %v37_v35 = vld [vmem:[%s665_s0 + $0x10] sm:$0xff] }
  0x18   :  { %v195_v39 = vld [vmem:[%s666_s2] sm:$0x3]  ;;  %v213_v49 = vld [vmem:[%s667_s3 + $0x10] sm:$0xff] }
  0x19   :  { %315 = vmatpush1.bf16.msra.mxu0 %v314_v37  ;;  %377 = vmatpush1.bf16.msra.mxu1 %v314_v37  ;;  %v198_v37 = vshrl.u32 %v197_v36, 7 }
  0x1a   :  { %317 = vmatprep.subr.bf16.mxu0 %v316_v38  ;;  %362 = vmatprep.subr.bf16.mxu1 %v316_v38 }
  0x1b   :  { %v199_v38 = vsub.s32 0, %v198_v37  ;;  %v203_v40 = vsub.s32 1, %v198_v37 }
  0x1d   :  { %319 = vmatpush1.bf16.msra.mxu0 %v318_v45  ;;  %378 = vmatpush1.bf16.msra.mxu1 %v318_v45  ;;  %v200_v41 = vrot.slane %v195_v39, %v199_v38  ;;  %v204_v42 = vrot.slane %v195_v39, %v203_v40  ;;  %v211_v45 = vld [vmem:[%s667_s3] sm:$0xff] }
  0x1e   :  { %321 = vmatprep.subr.bf16.mxu0 %v320_v46  ;;  %363 = vmatprep.subr.bf16.mxu1 %v320_v46 }
  0x21   :  { %323 = vmatpush1.bf16.msra.mxu0 %v322_v51  ;;  %379 = vmatpush1.bf16.msra.mxu1 %v322_v51  ;;  %v214_v51 = vld [vmem:[%s667_s3 + $0x18] sm:$0xff] }
  0x22   :  { %325 = vmatprep.subr.bf16.mxu0 %v324_v52  ;;  %364 = vmatprep.subr.bf16.mxu1 %v324_v52  ;;  %v212_v52 = vld [vmem:[%s667_s3 + $0x8] sm:$0xff] }
  0x25   :  { %327 = vmatpush1.bf16.msra.mxu0 %v326_v57  ;;  %380 = vmatpush1.bf16.msra.mxu1 %v326_v57 }
  0x26   :  { %329 = vmatprep.subr.bf16.mxu0 %v328_v58  ;;  %365 = vmatprep.subr.bf16.mxu1 %v328_v58 }
  0x29   :  { %331 = vmatpush1.bf16.msra.mxu0 %v330_v63  ;;  %381 = vmatpush1.bf16.msra.mxu1 %v330_v63 }
  0x2a   :  { %333 = vmatprep.subr.bf16.mxu0 %v332_v0  ;;  %366 = vmatprep.subr.bf16.mxu1 %v332_v0 }
  0x2d   :  { %335 = vmatpush1.bf16.msra.mxu0 %v334_v5  ;;  %382 = vmatpush1.bf16.msra.mxu1 %v334_v5 }
  0x2e   :  { %337 = vmatprep.subr.bf16.mxu0 %v336_v6  ;;  %367 = vmatprep.subr.bf16.mxu1 %v336_v6 }
  0x31   :  { %339 = vmatpush1.bf16.msra.mxu0 %v338_v11  ;;  %383 = vmatpush1.bf16.msra.mxu1 %v338_v11 }
  0x32   :  { %341 = vmatprep.subr.bf16.mxu0 %v340_v12  ;;  %368 = vmatprep.subr.bf16.mxu1 %v340_v12 }
  0x35   :  { %343 = vmatpush1.bf16.msra.mxu0 %v342_v17  ;;  %384 = vmatpush1.bf16.msra.mxu1 %v342_v17  ;;  %v252_v17 = vld [vmem:[%s668_s4] sm:$0x3] }
  0x36   :  { %345 = vmatprep.subr.bf16.mxu0 %v344_v18  ;;  %369 = vmatprep.subr.bf16.mxu1 %v344_v18  ;;  %v268_v18 = vld [vmem:[%s669_s5] sm:$0x3]  ;;  %v257_v19 = vrot.slane %v252_v17, %v199_v38  ;;  %v261_v20 = vrot.slane %v252_v17, %v203_v40 }
  0x37   :  { %v273_v22 = vrot.slane %v268_v18, %v199_v38 }
  0x39   :  { %347 = vmatpush1.bf16.msra.mxu0 %v346_v23  ;;  %385 = vmatpush1.bf16.msra.mxu1 %v346_v23  ;;  %v277_v23 = vrot.slane %v268_v18, %v203_v40 }
  0x3a   :  { %349 = vmatprep.subr.bf16.mxu0 %v348_v24  ;;  %370 = vmatprep.subr.bf16.mxu1 %v348_v24 }
  0x3d   :  { %351 = vmatpush1.bf16.msra.mxu0 %v350_v29  ;;  %386 = vmatpush1.bf16.msra.mxu1 %v350_v29 }
  0x3e   :  { %353 = vmatprep.subr.bf16.mxu0 %v352_v30  ;;  %371 = vmatprep.subr.bf16.mxu1 %v352_v30 }
  0x41   :  { %355 = vmatpush1.bf16.msra.mxu0 %v354_v33  ;;  %387 = vmatpush1.bf16.msra.mxu1 %v354_v33 }
  0x44   :  { %168 = vmatmul.mubr.f32.vlgmr.msra.gmra.mrb[0].mxu0 %v35_v34  ;;  %174 = vmatmul.mubr.f32.vlgmr.msra.gmra.mrb[0].mxu1 %v37_v35 }
 0x117   :  { %v169_v43 = vpop.f32.mrb[0].mxu0  ;;  %v175_v44 = vpop.f32.mrb[0].mxu1 }
 0x118   :  { %v207_v46 = vadd.f32 %v200_v41, %v169_v43  ;;  %v171_v47 = vpop.f32.mrb[1].mxu0  ;;  %v209_v48 = vadd.f32 %v200_v41, %v175_v44  ;;  %v177_v50 = vpop.f32.mrb[1].mxu1 }
 0x119   :  { %v208_v53 = vadd.f32 %v204_v42, %v171_v47  ;;  %v210_v54 = vadd.f32 %v204_v42, %v177_v50 }
 0x11a   :  { %v215_v55 = vadd.f32 %v211_v45, %v207_v46  ;;  %v217_v56 = vadd.f32 %v213_v49, %v209_v48 }
 0x11b   :  { %v218_v57 = vadd.f32 %v214_v51, %v210_v54  ;;  %v216_v58 = vadd.f32 %v212_v52, %v208_v53 }
 0x11d   :  { %v219_v59 = vadd.f32 %v216_v58, %v215_v55  ;;  %v222_v60 = vadd.f32 %v218_v57, %v217_v56 }
 0x11f   :  { %220 = vadd.xlane.f32.xlu0 %v219_v59 }
 0x123   :  { %223 = vadd.xlane.f32.xlu0 %v222_v60 }
 0x1ac   :  { %v221_v61 = vpop.xlane.xlu0 %220 }
 0x1ad   :  { %v226_v62 = vmul.f32 0.00390625, %v221_v61 }
 0x1af   :  { %v228_v63 = vsub.f32 %v215_v55, %v226_v62  ;;  %v229_v0 = vsub.f32 %v216_v58, %v226_v62 }
 0x1b0   :  { %v224_v1 = vpop.xlane.xlu0 %223 }
 0x1b1   :  { %v227_v2 = vmul.f32 0.00390625, %v224_v1  ;;  %v232_v3 = vmul.f32 %v228_v63, %v228_v63  ;;  %v233_v4 = vmul.f32 %v229_v0, %v229_v0 }
 0x1b3   :  { %v230_v5 = vsub.f32 %v217_v56, %v227_v2  ;;  %v231_v6 = vsub.f32 %v218_v57, %v227_v2  ;;  %v236_v7 = vadd.f32 %v233_v4, %v232_v3 }
 0x1b5   :  { %237 = vadd.xlane.f32.xlu1 %v236_v7  ;;  %v234_v8 = vmul.f32 %v230_v5, %v230_v5  ;;  %v235_v9 = vmul.f32 %v231_v6, %v231_v6 }
 0x1b7   :  { %v239_v10 = vadd.f32 %v235_v9, %v234_v8 }
 0x1b9   :  { %240 = vadd.xlane.f32.xlu1 %v239_v10 }
 0x242   :  { %v238_v11 = vpop.xlane.xlu1 %237 }
 0x243   :  { %v242_v12 = vmul.f32 0.00390625, %v238_v11 }
 0x245   :  { %v244_v13 = vadd.f32 1e-05, %v242_v12 }
 0x246   :  { %v241_v14 = vpop.xlane.xlu1 %240 }
 0x247   :  { %388 = vrsqrt.f32 %v244_v13  ;;  %v243_v15 = vmul.f32 0.00390625, %v241_v14 }
 0x249   :  { %v245_v16 = vadd.f32 1e-05, %v243_v15 }
 0x24b   :  { %390 = vrsqrt.f32 %v245_v16 }
 0x251   :  { %v389_v21 = vpop.eup %388 }
 0x252   :  { %v248_v24 = vmul.f32 %v389_v21, %v228_v63  ;;  %v249_v25 = vmul.f32 %v389_v21, %v229_v0 }
 0x254   :  { %v264_v26 = vmul.f32 %v257_v19, %v248_v24  ;;  %v265_v27 = vmul.f32 %v261_v20, %v249_v25 }
 0x255   :  { %v391_v28 = vpop.eup %390 }
 0x256   :  { %v280_v29 = vadd.f32 %v273_v22, %v264_v26  ;;  %v281_v30 = vadd.f32 %v277_v23, %v265_v27  ;;  %v250_v31 = vmul.f32 %v391_v28, %v230_v5  ;;  %v251_v32 = vmul.f32 %v391_v28, %v231_v6 }
 0x258   :  { %284 = vst [vmem:[%s670_s6] sm:$0xff] %v280_v29  ;;  %285 = vst [vmem:[%s670_s6 + $0x8] sm:$0xff] %v281_v30  ;;  %v266_v33 = vmul.f32 %v257_v19, %v250_v31  ;;  %v267_v34 = vmul.f32 %v261_v20, %v251_v32 }
 0x25a   :  { %v282_v35 = vadd.f32 %v273_v22, %v266_v33  ;;  %v283_v36 = vadd.f32 %v277_v23, %v267_v34 }
 0x25c   :  { %286 = vst [vmem:[%s670_s6 + $0x10] sm:$0xff] %v282_v35  ;;  %287 = vst [vmem:[%s670_s6 + $0x18] sm:$0xff] %v283_v36 }

// kernel: transformer_encoder_forward.33
= control target key start
LH: loop header
LB: loop body
LE: loop exit
PB: predicated region body
PF: predicated region fallthrough
CT: control target
= control target key end

     0   :  { %s968_s1 = inlined_call_operand.vmem [shape: f32[256,512], index: 1, kind: input, shape index: {}]   ;;  %s969_s0 = inlined_call_operand.vmem [shape: f32[16,256], index: 0, kind: input, shape index: {}]   ;;  %s970_s2 = inlined_call_operand.vmem [shape: f32[1,512], index: 2, kind: input, shape index: {}]   ;;  %s971_s3 = inlined_call_operand.vmem [shape: f32[16,512], index: 3, kind: output, shape index: {}]  }
   0x1   :  { %v39_v0 = vld [vmem:[%s968_s1 + $0x8] sm:$0xff]  ;;  %v41_v2 = vld [vmem:[%s968_s1 + $0x18] sm:$0xff]  ;;  %v38_v5 = vld [vmem:[%s968_s1] sm:$0xff] }
   0x2   :  { %v43_v1 = vld [vmem:[%s968_s1 + $0x28] sm:$0xff]  ;;  %v45_v4 = vld [vmem:[%s968_s1 + $0x38] sm:$0xff]  ;;  %v42_v6 = vld [vmem:[%s968_s1 + $0x20] sm:$0xff] }
   0x3   :  { %v397_v3 = vpack.c.bf16 %v43_v1, %v39_v0  ;;  %v461_v7 = vpack.c.bf16 %v45_v4, %v41_v2  ;;  %v399_v8 = vpack.c.bf16 %v42_v6, %v38_v5  ;;  %v40_v9 = vld [vmem:[%s968_s1 + $0x10] sm:$0xff]  ;;  %v47_v11 = vld [vmem:[%s968_s1 + $0x48] sm:$0xff]  ;;  %v49_v14 = vld [vmem:[%s968_s1 + $0x58] sm:$0xff] }
   0x4   :  { %v44_v10 = vld [vmem:[%s968_s1 + $0x30] sm:$0xff]  ;;  %v51_v13 = vld [vmem:[%s968_s1 + $0x68] sm:$0xff]  ;;  %v53_v15 = vld [vmem:[%s968_s1 + $0x78] sm:$0xff] }
   0x5   :  { %398 = vmatprep.subr.bf16.mxu0 %v397_v3  ;;  %v463_v12 = vpack.c.bf16 %v44_v10, %v40_v9  ;;  %462 = vmatprep.subr.bf16.mxu1 %v461_v7  ;;  %v401_v16 = vpack.c.bf16 %v51_v13, %v47_v11  ;;  %v465_v17 = vpack.c.bf16 %v53_v15, %v49_v14  ;;  %v46_v18 = vld [vmem:[%s968_s1 + $0x40] sm:$0xff]  ;;  %v48_v20 = vld [vmem:[%s968_s1 + $0x50] sm:$0xff]  ;;  %v55_v23 = vld [vmem:[%s968_s1 + $0x88] sm:$0xff] }
   0x6   :  { %400 = vmatpush1.bf16.msra.mxu0 %v399_v8  ;;  %v50_v19 = vld [vmem:[%s968_s1 + $0x60] sm:$0xff]  ;;  %v52_v22 = vld [vmem:[%s968_s1 + $0x70] sm:$0xff]  ;;  %v59_v24 = vld [vmem:[%s968_s1 + $0xa8] sm:$0xff] }
   0x7   :  { %464 = vmatpush1.bf16.msra.mxu1 %v463_v12  ;;  %v403_v21 = vpack.c.bf16 %v50_v19, %v46_v18  ;;  %402 = vmatprep.subr.bf16.mxu0 %v401_v16  ;;  %v467_v25 = vpack.c.bf16 %v52_v22, %v48_v20  ;;  %v405_v26 = vpack.c.bf16 %v59_v24, %v55_v23  ;;  %v57_v27 = vld [vmem:[%s968_s1 + $0x98] sm:$0xff]  ;;  %v54_v29 = vld [vmem:[%s968_s1 + $0x80] sm:$0xff]  ;;  %v56_v32 = vld [vmem:[%s968_s1 + $0x90] sm:$0xff] }
   0x8   :  { %466 = vmatprep.subr.bf16.mxu1 %v465_v17  ;;  %v61_v28 = vld [vmem:[%s968_s1 + $0xb8] sm:$0xff]  ;;  %v58_v31 = vld [vmem:[%s968_s1 + $0xa0] sm:$0xff]  ;;  %v60_v33 = vld [vmem:[%s968_s1 + $0xb0] sm:$0xff] }
   0x9   :  { %v469_v30 = vpack.c.bf16 %v61_v28, %v57_v27  ;;  %v407_v34 = vpack.c.bf16 %v58_v31, %v54_v29  ;;  %v63_v35 = vld [vmem:[%s968_s1 + $0xc8] sm:$0xff]  ;;  %v65_v37 = vld [vmem:[%s968_s1 + $0xd8] sm:$0xff]  ;;  %v471_v38 = vpack.c.bf16 %v60_v33, %v56_v32  ;;  %v62_v41 = vld [vmem:[%s968_s1 + $0xc0] sm:$0xff] }
   0xa   :  { %404 = vmatpush1.bf16.msra.mxu0 %v403_v21  ;;  %v67_v36 = vld [vmem:[%s968_s1 + $0xe8] sm:$0xff]  ;;  %v69_v40 = vld [vmem:[%s968_s1 + $0xf8] sm:$0xff]  ;;  %v66_v42 = vld [vmem:[%s968_s1 + $0xe0] sm:$0xff] }
   0xb   :  { %468 = vmatpush1.bf16.msra.mxu1 %v467_v25  ;;  %406 = vmatprep.subr.bf16.mxu0 %v405_v26  ;;  %v409_v39 = vpack.c.bf16 %v67_v36, %v63_v35  ;;  %v473_v43 = vpack.c.bf16 %v69_v40, %v65_v37  ;;  %v64_v44 = vld [vmem:[%s968_s1 + $0xd0] sm:$0xff]  ;;  %v71_v46 = vld [vmem:[%s968_s1 + $0x108] sm:$0xff]  ;;  %v73_v48 = vld [vmem:[%s968_s1 + $0x118] sm:$0xff]  ;;  %v411_v50 = vpack.c.bf16 %v66_v42, %v62_v41 }
   0xc   :  { %470 = vmatprep.subr.bf16.mxu1 %v469_v30  ;;  %v68_v45 = vld [vmem:[%s968_s1 + $0xf0] sm:$0xff]  ;;  %v75_v47 = vld [vmem:[%s968_s1 + $0x128] sm:$0xff]  ;;  %v77_v49 = vld [vmem:[%s968_s1 + $0x138] sm:$0xff] }
   0xd   :  { %v475_v51 = vpack.c.bf16 %v68_v45, %v64_v44  ;;  %v413_v52 = vpack.c.bf16 %v75_v47, %v71_v46  ;;  %v70_v53 = vld [vmem:[%s968_s1 + $0x100] sm:$0xff]  ;;  %v72_v55 = vld [vmem:[%s968_s1 + $0x110] sm:$0xff]  ;;  %v477_v56 = vpack.c.bf16 %v77_v49, %v73_v48  ;;  %v79_v58 = vld [vmem:[%s968_s1 + $0x148] sm:$0xff] }
   0xe   :  { %408 = vmatpush1.bf16.msra.mxu0 %v407_v34  ;;  %v74_v54 = vld [vmem:[%s968_s1 + $0x120] sm:$0xff]  ;;  %v76_v57 = vld [vmem:[%s968_s1 + $0x130] sm:$0xff]  ;;  %v83_v59 = vld [vmem:[%s968_s1 + $0x168] sm:$0xff] }
   0xf   :  { %472 = vmatpush1.bf16.msra.mxu1 %v471_v38  ;;  %410 = vmatprep.subr.bf16.mxu0 %v409_v39  ;;  %v81_v60 = vld [vmem:[%s968_s1 + $0x158] sm:$0xff]  ;;  %v415_v62 = vpack.c.bf16 %v74_v54, %v70_v53  ;;  %v479_v63 = vpack.c.bf16 %v76_v57, %v72_v55  ;;  %v417_v0 = vpack.c.bf16 %v83_v59, %v79_v58  ;;  %v78_v1 = vld [vmem:[%s968_s1 + $0x140] sm:$0xff]  ;;  %v80_v3 = vld [vmem:[%s968_s1 + $0x150] sm:$0xff] }
  0x10   :  { %474 = vmatprep.subr.bf16.mxu1 %v473_v43  ;;  %v85_v61 = vld [vmem:[%s968_s1 + $0x178] sm:$0xff]  ;;  %v82_v2 = vld [vmem:[%s968_s1 + $0x160] sm:$0xff]  ;;  %v84_v5 = vld [vmem:[%s968_s1 + $0x170] sm:$0xff] }
  0x11   :  { %v481_v4 = vpack.c.bf16 %v85_v61, %v81_v60  ;;  %v87_v6 = vld [vmem:[%s968_s1 + $0x188] sm:$0xff]  ;;  %v89_v8 = vld [vmem:[%s968_s1 + $0x198] sm:$0xff]  ;;  %v419_v10 = vpack.c.bf16 %v82_v2, %v78_v1  ;;  %v483_v11 = vpack.c.bf16 %v84_v5, %v80_v3  ;;  %v86_v13 = vld [vmem:[%s968_s1 + $0x180] sm:$0xff] }
  0x12   :  { %412 = vmatpush1.bf16.msra.mxu0 %v411_v50  ;;  %v91_v7 = vld [vmem:[%s968_s1 + $0x1a8] sm:$0xff]  ;;  %v93_v9 = vld [vmem:[%s968_s1 + $0x1b8] sm:$0xff]  ;;  %v90_v14 = vld [vmem:[%s968_s1 + $0x1a0] sm:$0xff] }
  0x13   :  { %476 = vmatpush1.bf16.msra.mxu1 %v475_v51  ;;  %414 = vmatprep.subr.bf16.mxu0 %v413_v52  ;;  %v421_v12 = vpack.c.bf16 %v91_v7, %v87_v6  ;;  %v88_v15 = vld [vmem:[%s968_s1 + $0x190] sm:$0xff]  ;;  %v485_v16 = vpack.c.bf16 %v93_v9, %v89_v8  ;;  %v95_v18 = vld [vmem:[%s968_s1 + $0x1c8] sm:$0xff]  ;;  %v97_v20 = vld [vmem:[%s968_s1 + $0x1d8] sm:$0xff]  ;;  %v423_v22 = vpack.c.bf16 %v90_v14, %v86_v13 }
  0x14   :  { %478 = vmatprep.subr.bf16.mxu1 %v477_v56  ;;  %v92_v17 = vld [vmem:[%s968_s1 + $0x1b0] sm:$0xff]  ;;  %v99_v19 = vld [vmem:[%s968_s1 + $0x1e8] sm:$0xff]  ;;  %v101_v21 = vld [vmem:[%s968_s1 + $0x1f8] sm:$0xff] }
  0x15   :  { %v487_v23 = vpack.c.bf16 %v92_v17, %v88_v15  ;;  %v425_v24 = vpack.c.bf16 %v99_v19, %v95_v18  ;;  %v94_v25 = vld [vmem:[%s968_s1 + $0x1c0] sm:$0xff]  ;;  %v96_v27 = vld [vmem:[%s968_s1 + $0x1d0] sm:$0xff]  ;;  %v489_v28 = vpack.c.bf16 %v101_v21, %v97_v20  ;;  %v103_v30 = vld [vmem:[%s968_s1 + $0x208] sm:$0xff] }
  0x16   :  { %416 = vmatpush1.bf16.msra.mxu0 %v415_v62  ;;  %v98_v26 = vld [vmem:[%s968_s1 + $0x1e0] sm:$0xff]  ;;  %v100_v29 = vld [vmem:[%s968_s1 + $0x1f0] sm:$0xff]  ;;  %v107_v31 = vld [vmem:[%s968_s1 + $0x228] sm:$0xff] }
  0x17   :  { %480 = vmatpush1.bf16.msra.mxu1 %v479_v63  ;;  %418 = vmatprep.subr.bf16.mxu0 %v417_v0  ;;  %v105_v32 = vld [vmem:[%s968_s1 + $0x218] sm:$0xff]  ;;  %v427_v34 = vpack.c.bf16 %v98_v26, %v94_v25  ;;  %v491_v35 = vpack.c.bf16 %v100_v29, %v96_v27  ;;  %v429_v36 = vpack.c.bf16 %v107_v31, %v103_v30  ;;  %v102_v37 = vld [vmem:[%s968_s1 + $0x200] sm:$0xff]  ;;  %v104_v39 = vld [vmem:[%s968_s1 + $0x210] sm:$0xff] }
  0x18   :  { %482 = vmatprep.subr.bf16.mxu1 %v481_v4  ;;  %v109_v33 = vld [vmem:[%s968_s1 + $0x238] sm:$0xff]  ;;  %v106_v38 = vld [vmem:[%s968_s1 + $0x220] sm:$0xff]  ;;  %v108_v41 = vld [vmem:[%s968_s1 + $0x230] sm:$0xff] }
  0x19   :  { %v493_v40 = vpack.c.bf16 %v109_v33, %v105_v32  ;;  %v111_v42 = vld [vmem:[%s968_s1 + $0x248] sm:$0xff]  ;;  %v113_v44 = vld [vmem:[%s968_s1 + $0x258] sm:$0xff]  ;;  %v431_v46 = vpack.c.bf16 %v106_v38, %v102_v37  ;;  %v495_v47 = vpack.c.bf16 %v108_v41, %v104_v39  ;;  %v110_v49 = vld [vmem:[%s968_s1 + $0x240] sm:$0xff] }
  0x1a   :  { %420 = vmatpush1.bf16.msra.mxu0 %v419_v10  ;;  %v115_v43 = vld [vmem:[%s968_s1 + $0x268] sm:$0xff]  ;;  %v117_v45 = vld [vmem:[%s968_s1 + $0x278] sm:$0xff]  ;;  %v114_v50 = vld [vmem:[%s968_s1 + $0x260] sm:$0xff] }
  0x1b   :  { %484 = vmatpush1.bf16.msra.mxu1 %v483_v11  ;;  %422 = vmatprep.subr.bf16.mxu0 %v421_v12  ;;  %v433_v48 = vpack.c.bf16 %v115_v43, %v111_v42  ;;  %v112_v51 = vld [vmem:[%s968_s1 + $0x250] sm:$0xff]  ;;  %v497_v52 = vpack.c.bf16 %v117_v45, %v113_v44  ;;  %v119_v54 = vld [vmem:[%s968_s1 + $0x288] sm:$0xff]  ;;  %v121_v56 = vld [vmem:[%s968_s1 + $0x298] sm:$0xff]  ;;  %v435_v58 = vpack.c.bf16 %v114_v50, %v110_v49 }
  0x1c   :  { %486 = vmatprep.subr.bf16.mxu1 %v485_v16  ;;  %v116_v53 = vld [vmem:[%s968_s1 + $0x270] sm:$0xff]  ;;  %v123_v55 = vld [vmem:[%s968_s1 + $0x2a8] sm:$0xff]  ;;  %v125_v57 = vld [vmem:[%s968_s1 + $0x2b8] sm:$0xff] }
  0x1d   :  { %v499_v59 = vpack.c.bf16 %v116_v53, %v112_v51  ;;  %v437_v60 = vpack.c.bf16 %v123_v55, %v119_v54  ;;  %v118_v61 = vld [vmem:[%s968_s1 + $0x280] sm:$0xff]  ;;  %v120_v63 = vld [vmem:[%s968_s1 + $0x290] sm:$0xff]  ;;  %v501_v0 = vpack.c.bf16 %v125_v57, %v121_v56  ;;  %v127_v2 = vld [vmem:[%s968_s1 + $0x2c8] sm:$0xff] }
  0x1e   :  { %424 = vmatpush1.bf16.msra.mxu0 %v423_v22  ;;  %v122_v62 = vld [vmem:[%s968_s1 + $0x2a0] sm:$0xff]  ;;  %v124_v1 = vld [vmem:[%s968_s1 + $0x2b0] sm:$0xff]  ;;  %v131_v3 = vld [vmem:[%s968_s1 + $0x2e8] sm:$0xff] }
  0x1f   :  { %488 = vmatpush1.bf16.msra.mxu1 %v487_v23  ;;  %426 = vmatprep.subr.bf16.mxu0 %v425_v24  ;;  %v129_v4 = vld [vmem:[%s968_s1 + $0x2d8] sm:$0xff]  ;;  %v439_v6 = vpack.c.bf16 %v122_v62, %v118_v61  ;;  %v126_v7 = vld [vmem:[%s968_s1 + $0x2c0] sm:$0xff]  ;;  %v503_v8 = vpack.c.bf16 %v124_v1, %v120_v63  ;;  %v441_v9 = vpack.c.bf16 %v131_v3, %v127_v2  ;;  %v128_v11 = vld [vmem:[%s968_s1 + $0x2d0] sm:$0xff] }
  0x20   :  { %490 = vmatprep.subr.bf16.mxu1 %v489_v28  ;;  %v133_v5 = vld [vmem:[%s968_s1 + $0x2f8] sm:$0xff]  ;;  %v130_v10 = vld [vmem:[%s968_s1 + $0x2e0] sm:$0xff]  ;;  %v132_v12 = vld [vmem:[%s968_s1 + $0x2f0] sm:$0xff] }
  0x21   :  { %v505_v13 = vpack.c.bf16 %v133_v5, %v129_v4  ;;  %v135_v14 = vld [vmem:[%s968_s1 + $0x308] sm:$0xff]  ;;  %v137_v17 = vld [vmem:[%s968_s1 + $0x318] sm:$0xff]  ;;  %v443_v19 = vpack.c.bf16 %v130_v10, %v126_v7  ;;  %v507_v20 = vpack.c.bf16 %v132_v12, %v128_v11  ;;  %v134_v22 = vld [vmem:[%s968_s1 + $0x300] sm:$0xff]  ;;  %v349_v4 = vlaneseq }
  0x22   :  { %428 = vmatpush1.bf16.msra.mxu0 %v427_v34  ;;  %v139_v15 = vld [vmem:[%s968_s1 + $0x328] sm:$0xff]  ;;  %v141_v18 = vld [vmem:[%s968_s1 + $0x338] sm:$0xff]  ;;  %v138_v23 = vld [vmem:[%s968_s1 + $0x320] sm:$0xff] }
  0x23   :  { %492 = vmatpush1.bf16.msra.mxu1 %v491_v35  ;;  %430 = vmatprep.subr.bf16.mxu0 %v429_v36  ;;  %v35_v16 = vld [vmem:[%s969_s0 + $0x8] sm:$0xff]  ;;  %v445_v21 = vpack.c.bf16 %v139_v15, %v135_v14  ;;  %v136_v24 = vld [vmem:[%s968_s1 + $0x310] sm:$0xff]  ;;  %v509_v25 = vpack.c.bf16 %v141_v18, %v137_v17  ;;  %v145_v29 = vld [vmem:[%s968_s1 + $0x358] sm:$0xff]  ;;  %v447_v31 = vpack.c.bf16 %v138_v23, %v134_v22  ;;  %v350_v5 = vshrl.u32 %v349_v4, 7 }
  0x24   :  { %494 = vmatprep.subr.bf16.mxu1 %v493_v40  ;;  %230 = vmatprep.mubr.f32.mxu0 %v35_v16  ;;  %v140_v26 = vld [vmem:[%s968_s1 + $0x330] sm:$0xff]  ;;  %v143_v27 = vld [vmem:[%s968_s1 + $0x348] sm:$0xff]  ;;  %v149_v30 = vld [vmem:[%s968_s1 + $0x378] sm:$0xff] }
  0x25   :  { %307 = vmatprep.mubr.f32.mxu1 %v35_v16  ;;  %v147_v28 = vld [vmem:[%s968_s1 + $0x368] sm:$0xff]  ;;  %v511_v32 = vpack.c.bf16 %v140_v26, %v136_v24  ;;  %v142_v34 = vld [vmem:[%s968_s1 + $0x340] sm:$0xff]  ;;  %v144_v36 = vld [vmem:[%s968_s1 + $0x350] sm:$0xff]  ;;  %v513_v37 = vpack.c.bf16 %v149_v30, %v145_v29  ;;  %v363_v10 = vsub.s32 3, %v350_v5 }
  0x26   :  { %432 = vmatpush1.bf16.msra.mxu0 %v431_v46  ;;  %v449_v33 = vpack.c.bf16 %v147_v28, %v143_v27  ;;  %v146_v35 = vld [vmem:[%s968_s1 + $0x360] sm:$0xff]  ;;  %v148_v38 = vld [vmem:[%s968_s1 + $0x370] sm:$0xff]  ;;  %v151_v39 = vld [vmem:[%s968_s1 + $0x388] sm:$0xff] }
  0x27   :  { %496 = vmatpush1.bf16.msra.mxu1 %v495_v47  ;;  %434 = vmatprep.subr.bf16.mxu0 %v433_v48  ;;  %v155_v40 = vld [vmem:[%s968_s1 + $0x3a8] sm:$0xff]  ;;  %v153_v41 = vld [vmem:[%s968_s1 + $0x398] sm:$0xff]  ;;  %v451_v43 = vpack.c.bf16 %v146_v35, %v142_v34  ;;  %v515_v44 = vpack.c.bf16 %v148_v38, %v144_v36  ;;  %v150_v46 = vld [vmem:[%s968_s1 + $0x380] sm:$0xff] }
  0x28   :  { %498 = vmatprep.subr.bf16.mxu1 %v497_v52  ;;  %v157_v42 = vld [vmem:[%s968_s1 + $0x3b8] sm:$0xff]  ;;  %v453_v45 = vpack.c.bf16 %v155_v40, %v151_v39  ;;  %v154_v47 = vld [vmem:[%s968_s1 + $0x3a0] sm:$0xff]  ;;  %v152_v48 = vld [vmem:[%s968_s1 + $0x390] sm:$0xff] }
  0x29   :  { %v517_v49 = vpack.c.bf16 %v157_v42, %v153_v41  ;;  %v156_v50 = vld [vmem:[%s968_s1 + $0x3b0] sm:$0xff]  ;;  %v159_v51 = vld [vmem:[%s968_s1 + $0x3c8] sm:$0xff]  ;;  %v161_v53 = vld [vmem:[%s968_s1 + $0x3d8] sm:$0xff]  ;;  %v455_v55 = vpack.c.bf16 %v154_v47, %v150_v46 }
  0x2a   :  { %436 = vmatpush1.bf16.msra.mxu0 %v435_v58  ;;  %v163_v52 = vld [vmem:[%s968_s1 + $0x3e8] sm:$0xff]  ;;  %v165_v54 = vld [vmem:[%s968_s1 + $0x3f8] sm:$0xff]  ;;  %v519_v56 = vpack.c.bf16 %v156_v50, %v152_v48  ;;  %v158_v58 = vld [vmem:[%s968_s1 + $0x3c0] sm:$0xff] }
  0x2b   :  { %500 = vmatpush1.bf16.msra.mxu1 %v499_v59  ;;  %438 = vmatprep.subr.bf16.mxu0 %v437_v60  ;;  %v457_v57 = vpack.c.bf16 %v163_v52, %v159_v51  ;;  %v162_v59 = vld [vmem:[%s968_s1 + $0x3e0] sm:$0xff]  ;;  %v521_v60 = vpack.c.bf16 %v165_v54, %v161_v53  ;;  %v160_v61 = vld [vmem:[%s968_s1 + $0x3d0] sm:$0xff]  ;;  %v37_v2 = vld [vmem:[%s969_s0 + $0x18] sm:$0xff] }
  0x2c   :  { %502 = vmatprep.subr.bf16.mxu1 %v501_v0  ;;  %v164_v62 = vld [vmem:[%s968_s1 + $0x3f0] sm:$0xff]  ;;  %v459_v63 = vpack.c.bf16 %v162_v59, %v158_v58  ;;  %v34_v1 = vld [vmem:[%s969_s0] sm:$0xff] }
  0x2d   :  { %v523_v0 = vpack.c.bf16 %v164_v62, %v160_v61  ;;  %v36_v3 = vld [vmem:[%s969_s0 + $0x10] sm:$0xff]  ;;  %v347_v7 = vld [vmem:[%s970_s2] sm:$0xf] }
  0x2e   :  { %440 = vmatpush1.bf16.msra.mxu0 %v439_v6  ;;  %v351_v6 = vsub.s32 0, %v350_v5  ;;  %v364_v14 = vrot.slane %v347_v7, %v363_v10 }
  0x2f   :  { %504 = vmatpush1.bf16.msra.mxu1 %v503_v8  ;;  %442 = vmatprep.subr.bf16.mxu0 %v441_v9  ;;  %v359_v8 = vsub.s32 2, %v350_v5  ;;  %v355_v9 = vsub.s32 1, %v350_v5 }
  0x30   :  { %506 = vmatprep.subr.bf16.mxu1 %v505_v13  ;;  %v352_v11 = vrot.slane %v347_v7, %v351_v6 }
  0x31   :  { %v360_v12 = vrot.slane %v347_v7, %v359_v8  ;;  %v356_v13 = vrot.slane %v347_v7, %v355_v9 }
  0x32   :  { %444 = vmatpush1.bf16.msra.mxu0 %v443_v19 }
  0x33   :  { %508 = vmatpush1.bf16.msra.mxu1 %v507_v20  ;;  %446 = vmatprep.subr.bf16.mxu0 %v445_v21 }
  0x34   :  { %510 = vmatprep.subr.bf16.mxu1 %v509_v25 }
  0x36   :  { %448 = vmatpush1.bf16.msra.mxu0 %v447_v31 }
  0x37   :  { %512 = vmatpush1.bf16.msra.mxu1 %v511_v32  ;;  %450 = vmatprep.subr.bf16.mxu0 %v449_v33 }
  0x38   :  { %514 = vmatprep.subr.bf16.mxu1 %v513_v37 }
  0x3a   :  { %452 = vmatpush1.bf16.msra.mxu0 %v451_v43 }
  0x3b   :  { %516 = vmatpush1.bf16.msra.mxu1 %v515_v44  ;;  %454 = vmatprep.subr.bf16.mxu0 %v453_v45 }
  0x3c   :  { %518 = vmatprep.subr.bf16.mxu1 %v517_v49 }
  0x3e   :  { %456 = vmatpush1.bf16.msra.mxu0 %v455_v55 }
  0x3f   :  { %520 = vmatpush1.bf16.msra.mxu1 %v519_v56  ;;  %458 = vmatprep.subr.bf16.mxu0 %v457_v57 }
  0x40   :  { %522 = vmatprep.subr.bf16.mxu1 %v521_v60 }
  0x42   :  { %460 = vmatpush1.bf16.msra.mxu0 %v459_v63 }
  0x43   :  { %524 = vmatpush1.bf16.msra.mxu1 %v523_v0 }
  0x45   :  { %231 = vmatmul.mubr.f32.vlgmr.msra.gmra.mrb[0].mxu0 %v34_v1 }
  0x46   :  { %308 = vmatmul.mubr.f32.vlgmr.msra.gmra.mrb[0].mxu1 %v34_v1  ;;  %236 = vmatprep.mubr.f32.mxu0 %v37_v2 }
  0x47   :  { %313 = vmatprep.mubr.f32.mxu1 %v37_v2 }
  0x49   :  { %237 = vmatmul.mubr.f32.gmra.mrb[2].mxu0 %v36_v3 }
  0x4a   :  { %314 = vmatmul.mubr.f32.gmra.mrb[2].mxu1 %v36_v3 }
 0x118   :  { %v232_v15 = vpop.f32.mrb[0].mxu0 }
 0x119   :  { %v369_v16 = vadd.f32 %v352_v11, %v232_v15  ;;  %v309_v17 = vpop.f32.mrb[0].mxu1  ;;  %v234_v18 = vpop.f32.mrb[1].mxu0 }
 0x11a   :  { %v371_v19 = vadd.f32 %v360_v12, %v309_v17  ;;  %v370_v20 = vadd.f32 %v356_v13, %v234_v18  ;;  %v311_v21 = vpop.f32.mrb[1].mxu1 }
 0x11b   :  { %v377_v22 = vmax.f32 %v369_v16, 0.0  ;;  %v372_v23 = vadd.f32 %v364_v14, %v311_v21 }
 0x11c   :  { %v379_v24 = vmax.f32 %v371_v19, 0.0  ;;  %v378_v25 = vmax.f32 %v370_v20, 0.0  ;;  %v238_v26 = vpop.f32.mrb[2].mxu0 }
 0x11d   :  { %385 = vst [vmem:[%s971_s3] sm:$0xff] %v377_v22  ;;  %v380_v27 = vmax.f32 %v372_v23, 0.0  ;;  %v373_v28 = vadd.f32 %v352_v11, %v238_v26  ;;  %v315_v29 = vpop.f32.mrb[2].mxu1  ;;  %v240_v30 = vpop.f32.mrb[3].mxu0 }
 0x11e   :  { %387 = vst [vmem:[%s971_s3 + $0x10] sm:$0xff] %v379_v24  ;;  %386 = vst [vmem:[%s971_s3 + $0x8] sm:$0xff] %v378_v25  ;;  %v375_v31 = vadd.f32 %v360_v12, %v315_v29  ;;  %v374_v32 = vadd.f32 %v356_v13, %v240_v30  ;;  %v317_v33 = vpop.f32.mrb[3].mxu1 }
 0x11f   :  { %388 = vst [vmem:[%s971_s3 + $0x18] sm:$0xff] %v380_v27  ;;  %v381_v34 = vmax.f32 %v373_v28, 0.0  ;;  %v376_v35 = vadd.f32 %v364_v14, %v317_v33 }
 0x120   :  { %v383_v36 = vmax.f32 %v375_v31, 0.0  ;;  %v382_v37 = vmax.f32 %v374_v32, 0.0 }
 0x121   :  { %389 = vst [vmem:[%s971_s3 + $0x20] sm:$0xff] %v381_v34  ;;  %v384_v38 = vmax.f32 %v376_v35, 0.0 }
 0x122   :  { %391 = vst [vmem:[%s971_s3 + $0x30] sm:$0xff] %v383_v36  ;;  %390 = vst [vmem:[%s971_s3 + $0x28] sm:$0xff] %v382_v37 }
 0x123   :  { %392 = vst [vmem:[%s971_s3 + $0x38] sm:$0xff] %v384_v38 }

// kernel: transformer_encoder_forward.31
= control target key start
LH: loop header
LB: loop body
LE: loop exit
PB: predicated region body
PF: predicated region fallthrough
CT: control target
= control target key end

     0   :  { %s1839_s12 = smov 0   ;;  %s2006_s0 = inlined_call_operand.vmem [shape: f32[2,8,8,32], index: 0, kind: input, shape index: {}]   ;;  %s2007_s1 = inlined_call_operand.vmem [shape: f32[2,8,8,32], index: 1, kind: input, shape index: {}]   ;;  %s2008_s2 = inlined_call_operand.vmem [shape: f32[2,8,8,32], index: 2, kind: input, shape index: {}]   ;;  %s2009_s3 = inlined_call_operand.vmem [shape: f32[2,8,8,32], index: 3, kind: output, shape index: {}]  }
   0x1 LB: > { %s1612_s13 = sadd.s32 4294967295, %s1815_s12   ;;  %p1616_p0 = scmp.ge.s32.totalorder %s1815_s12, 1  ;;  %s1815_s12 = sphi %s1839_s12, %s13_s12  }
   0x2   : > { %p157_p1 = scmp.lt.s32.totalorder %s1815_s12, 3 }
   0x4   : > { %p158_p2 = pnand %p1616_p0, %p157_p1 }
   0x5   : > { %p191_p3 = scmp.lt.s32.totalorder (!%p158_p2), %s1612_s13, 1  ;;  %v1817_v0 = vmov (!%p158_p2), 0.0   ;;  %vm1818_vm0 = vmmov (!%p158_p2), 0   ;;  %vm235_vm1 = vcmask (!%p158_p2), 261120   ;;  %vm852_vm2 = vcmask (!%p158_p2), 64512  }
   0x6   : > { %161 = sbr.rel (%p158_p2) target bundleno = 777 (0x309), region = 32  ;;  %1687 = vmatprep.subr.mxu0 (!%p158_p2), %v1817_v0  ;;  %1689 = vmatprep.mubr.msk.f32.mxu0 (!%p158_p2), %vm1818_vm0, %v1817_v0 }
   0x7   : > { %1692 = vmatprep.subr.mxu1 (!%p158_p2), %v1817_v0  ;;  %1694 = vmatprep.mubr.msk.f32.mxu1 (!%p158_p2), %vm1818_vm0, %v1817_v0 }
   0xd   : > { %s2011_s13 = smov (!%p191_p3, %s1612_s13), 1 }
   0xe   : > { %s1853_s14 = sshll.u32 %s2011_s13, 6 }
   0xf   : > { %s1859_s17 = scalar_lea.vmem %s2007_s1, %s1853_s14  ;;  %s1865_s20 = scalar_lea.vmem %s2006_s0, %s1853_s14 }
  0x10   : > { %v219_v1 = vld [vmem:[%s1859_s17] sm:$0xff]  ;;  %v220_v2 = vld [vmem:[%s1859_s17 + $0x8] sm:$0xff]  ;;  %v221_v5 = vld [vmem:[%s1859_s17 + $0x10] sm:$0xff]  ;;  %s1952_s23 = scalar_lea.vmem %s2008_s2, %s1853_s14  ;;  %s210_s26 = scalar_lea.vmem %s2009_s3, %s1853_s14 }
  0x11   : > { %1688 = vmatpush3.xpose.msk.msra.mxu0 %vm235_vm1, %v219_v1  ;;  %v211_v3 = vld [vmem:[%s1865_s20] sm:$0xff]  ;;  %1693 = vmatpush3.xpose.msk.msra.mxu1 %vm235_vm1, %v220_v2  ;;  %v212_v4 = vld [vmem:[%s1865_s20 + $0x8] sm:$0xff]  ;;  %v222_v6 = vld [vmem:[%s1859_s17 + $0x18] sm:$0xff] }
  0x12   : > { %1697 = vmatprep.subr.mxu0 %v1817_v0  ;;  %1702 = vmatprep.subr.mxu1 %v1817_v0  ;;  %v213_v7 = vld [vmem:[%s1865_s20 + $0x10] sm:$0xff]  ;;  %v223_v8 = vld [vmem:[%s1859_s17 + $0x20] sm:$0xff]  ;;  %v214_v9 = vld [vmem:[%s1865_s20 + $0x18] sm:$0xff] }
  0x13   : > { %v224_v10 = vld [vmem:[%s1859_s17 + $0x28] sm:$0xff]  ;;  %v215_v11 = vld [vmem:[%s1865_s20 + $0x20] sm:$0xff]  ;;  %v225_v12 = vld [vmem:[%s1859_s17 + $0x30] sm:$0xff] }
  0x14   : > { %1690 = vmatmul.mubr.msk.f32.vlgmr.msra.gmra.mrb[0].mxu0 %vm235_vm1, %v211_v3  ;;  %1695 = vmatmul.mubr.msk.f32.vlgmr.msra.gmra.mrb[0].mxu1 %vm235_vm1, %v212_v4  ;;  %v216_v13 = vld [vmem:[%s1865_s20 + $0x28] sm:$0xff]  ;;  %v226_v14 = vld [vmem:[%s1859_s17 + $0x38] sm:$0xff]  ;;  %v217_v15 = vld [vmem:[%s1865_s20 + $0x30] sm:$0xff] }
  0x15   : > { %1698 = vmatpush3.xpose.msk.msra.mxu0 %vm235_vm1, %v221_v5  ;;  %1699 = vmatprep.mubr.msk.f32.mxu0 %vm1818_vm0, %v1817_v0  ;;  %v218_v16 = vld [vmem:[%s1865_s20 + $0x38] sm:$0xff] }
  0x16   : > { %1707 = vmatprep.subr.mxu0 %v1817_v0  ;;  %1703 = vmatpush3.xpose.msk.msra.mxu1 %vm235_vm1, %v222_v6 }
  0x17   : > { %1704 = vmatprep.mubr.msk.f32.mxu1 %vm1818_vm0, %v1817_v0  ;;  %1712 = vmatprep.subr.mxu1 %v1817_v0 }
  0x18   : > { %1700 = vmatmul.mubr.msk.f32.vlgmr.msra.gmra.mrb[2].mxu0 %vm235_vm1, %v213_v7 }
  0x19   : > { %1708 = vmatpush3.xpose.msk.msra.mxu0 %vm235_vm1, %v223_v8  ;;  %1709 = vmatprep.mubr.msk.f32.mxu0 %vm1818_vm0, %v1817_v0 }
  0x1a   : > { %1705 = vmatmul.mubr.msk.f32.vlgmr.msra.gmra.mrb[2].mxu1 %vm235_vm1, %v214_v9  ;;  %1717 = vmatprep.subr.mxu0 %v1817_v0 }
  0x1b   : > { %1713 = vmatpush3.xpose.msk.msra.mxu1 %vm235_vm1, %v224_v10  ;;  %1714 = vmatprep.mubr.msk.f32.mxu1 %vm1818_vm0, %v1817_v0 }
  0x1c   : > { %1710 = vmatmul.mubr.msk.f32.vlgmr.msra.gmra.mrb[4].mxu0 %vm235_vm1, %v215_v11  ;;  %1722 = vmatprep.subr.mxu1 %v1817_v0 }
  0x1d   : > { %1718 = vmatpush3.xpose.msk.msra.mxu0 %vm235_vm1, %v225_v12  ;;  %1719 = vmatprep.mubr.msk.f32.mxu0 %vm1818_vm0, %v1817_v0 }
  0x1e   : > { %1715 = vmatmul.mubr.msk.f32.vlgmr.msra.gmra.mrb[4].mxu1 %vm235_vm1, %v216_v13  ;;  %1727 = vmatprep.subr.mxu0 %v1817_v0 }
  0x1f   : > { %1723 = vmatpush3.xpose.msk.msra.mxu1 %vm235_vm1, %v226_v14  ;;  %1724 = vmatprep.mubr.msk.f32.mxu1 %vm1818_vm0, %v1817_v0 }
  0x20   : > { %1720 = vmatmul.mubr.msk.f32.vlgmr.msra.gmra.mrb[6].mxu0 %vm235_vm1, %v217_v15  ;;  %1732 = vmatprep.subr.mxu1 %v1817_v0 }
  0x21   : > { %1729 = vmatprep.mubr.msk.f32.mxu0 %vm1818_vm0, %v1817_v0 }
  0x22   : > { %1725 = vmatmul.mubr.msk.f32.vlgmr.msra.gmra.mrb[6].mxu1 %vm235_vm1, %v218_v16 }
  0x23   : > { %1734 = vmatprep.mubr.msk.f32.mxu1 %vm1818_vm0, %v1817_v0 }
  0xe7   : > { %v308_v17 = vpop.f32.mrb[0].mxu0  ;;  %v384_v18 = vpop.f32.mrb[0].mxu1 }
  0xe8   : > { %v844_v19 = vmul.f32 0.17677669, %v308_v17  ;;  %v1691_v20 = vpop.f32.mrb[1].mxu0  ;;  %v845_v21 = vmul.f32 0.17677669, %v384_v18  ;;  %v1696_v22 = vpop.f32.mrb[1].mxu1 }
  0xea   : > { %v853_v23 = vsel %vm852_vm2, %v844_v19, -inf  ;;  %v856_v27 = vsel %vm852_vm2, %v845_v21, -inf }
  0xeb   : > { %854 = vmax.xlane.f32.xlu0 %v853_v23  ;;  %v460_v24 = vpop.f32.mrb[2].mxu0 }
  0xec   : > { %v846_v25 = vmul.f32 0.17677669, %v460_v24  ;;  %v1701_v26 = vpop.f32.mrb[3].mxu0 }
  0xed   : > { %v536_v28 = vpop.f32.mrb[2].mxu1  ;;  %v227_v26 = vld [vmem:[%s1952_s23] sm:$0xff] }
  0xee   : > { %v847_v29 = vmul.f32 0.17677669, %v536_v28  ;;  %v859_v30 = vsel %vm852_vm2, %v846_v25, -inf  ;;  %v1706_v31 = vpop.f32.mrb[3].mxu1  ;;  %1728 = vmatpush3.msra.mxu0 %v227_v26 }
  0xef   : > { %857 = vmax.xlane.f32.xlu0 %v856_v27  ;;  %860 = vmax.xlane.f32.xlu1 %v859_v30  ;;  %v612_v32 = vpop.f32.mrb[4].mxu0  ;;  %v228_v27 = vld [vmem:[%s1952_s23 + $0x8] sm:$0xff] }
  0xf0   : > { %v848_v33 = vmul.f32 0.17677669, %v612_v32  ;;  %v1711_v34 = vpop.f32.mrb[5].mxu0  ;;  %v862_v35 = vsel %vm852_vm2, %v847_v29, -inf  ;;  %1737 = vmatprep.subr.mxu0 %v1817_v0  ;;  %1733 = vmatpush3.msra.mxu1 %v228_v27 }
  0xf1   : > { %v688_v36 = vpop.f32.mrb[4].mxu1  ;;  %1742 = vmatprep.subr.mxu1 %v1817_v0 }
  0xf2   : > { %v849_v37 = vmul.f32 0.17677669, %v688_v36  ;;  %v865_v38 = vsel %vm852_vm2, %v848_v33, -inf  ;;  %v1716_v39 = vpop.f32.mrb[5].mxu1  ;;  %v229_v36 = vld [vmem:[%s1952_s23 + $0x10] sm:$0xff] }
  0xf3   : > { %863 = vmax.xlane.f32.xlu1 %v862_v35  ;;  %866 = vmax.xlane.f32.xlu0 %v865_v38  ;;  %v764_v40 = vpop.f32.mrb[6].mxu0 }
  0xf4   : > { %v850_v41 = vmul.f32 0.17677669, %v764_v40  ;;  %v868_v42 = vsel %vm852_vm2, %v849_v37, -inf  ;;  %v1721_v43 = vpop.f32.mrb[7].mxu0 }
  0xf5   : > { %v840_v44 = vpop.f32.mrb[6].mxu1 }
  0xf6   : > { %v851_v45 = vmul.f32 0.17677669, %v840_v44  ;;  %v871_v46 = vsel %vm852_vm2, %v850_v41, -inf  ;;  %v1726_v47 = vpop.f32.mrb[7].mxu1  ;;  %v231_v44 = vld [vmem:[%s1952_s23 + $0x20] sm:$0xff] }
  0xf7   : > { %869 = vmax.xlane.f32.xlu1 %v868_v42  ;;  %872 = vmax.xlane.f32.xlu0 %v871_v46  ;;  %v230_v42 = vld [vmem:[%s1952_s23 + $0x18] sm:$0xff] }
  0xf8   : > { %v874_v48 = vsel %vm852_vm2, %v851_v45, -inf }
  0xfb   : > { %875 = vmax.xlane.f32.xlu1 %v874_v48  ;;  %v232_v48 = vld [vmem:[%s1952_s23 + $0x28] sm:$0xff] }
 0x178   : > { %v855_v49 = vpop.xlane.xlu0 %854 }
 0x179   : > { %v877_v50 = vsub.f32 %v844_v19, %v855_v49 }
 0x17b   : > { %v885_v51 = vmul.f32 1.442695, %v877_v50  ;;  %v233_v50 = vld [vmem:[%s1952_s23 + $0x30] sm:$0xff] }
 0x17c   : > { %v858_v52 = vpop.xlane.xlu0 %857  ;;  %v861_v53 = vpop.xlane.xlu1 %860 }
 0x17d   : > { %1777 = vpow2.f32 %v885_v51  ;;  %v878_v54 = vsub.f32 %v845_v21, %v858_v52  ;;  %v879_v55 = vsub.f32 %v846_v25, %v861_v53 }
 0x17f   : > { %v887_v56 = vmul.f32 1.442695, %v878_v54  ;;  %v889_v57 = vmul.f32 1.442695, %v879_v55  ;;  %v234_v54 = vld [vmem:[%s1952_s23 + $0x38] sm:$0xff] }
 0x180   : > { %v864_v58 = vpop.xlane.xlu1 %863  ;;  %v867_v59 = vpop.xlane.xlu0 %866 }
 0x181   : > { %1779 = vpow2.f32 %v887_v56  ;;  %v880_v60 = vsub.f32 %v847_v29, %v864_v58  ;;  %v881_v61 = vsub.f32 %v848_v33, %v867_v59 }
 0x182   : > { %1781 = vpow2.f32 %v889_v57 }
 0x183   : > { %v891_v62 = vmul.f32 1.442695, %v880_v60  ;;  %v893_v63 = vmul.f32 1.442695, %v881_v61 }
 0x184   : > { %v870_v1 = vpop.xlane.xlu1 %869  ;;  %v873_v2 = vpop.xlane.xlu0 %872 }
 0x185   : > { %1783 = vpow2.f32 %v891_v62  ;;  %v882_v3 = vsub.f32 %v849_v37, %v870_v1  ;;  %v883_v4 = vsub.f32 %v850_v41, %v873_v2 }
 0x186   : > { %1785 = vpow2.f32 %v893_v63 }
 0x187   : > { %v1778_v5 = vpop.eup %1777  ;;  %v895_v6 = vmul.f32 1.442695, %v882_v3  ;;  %v897_v7 = vmul.f32 1.442695, %v883_v4 }
 0x188   : > { %v876_v8 = vpop.xlane.xlu1 %875  ;;  %v901_v9 = vsel %vm852_vm2, %v1778_v5, 0.0 }
 0x189   : > { %1787 = vpow2.f32 %v895_v6  ;;  %v884_v10 = vsub.f32 %v851_v45, %v876_v8  ;;  %902 = vadd.xlane.f32.xlu0 %v901_v9 }
 0x18a   : > { %1789 = vpow2.f32 %v897_v7 }
 0x18b   : > { %v1780_v11 = vpop.eup %1779  ;;  %v899_v12 = vmul.f32 1.442695, %v884_v10 }
 0x18c   : > { %v1782_v13 = vpop.eup %1781  ;;  %v904_v14 = vsel %vm852_vm2, %v1780_v11, 0.0 }
 0x18d   : > { %1791 = vpow2.f32 %v899_v12  ;;  %905 = vadd.xlane.f32.xlu1 %v904_v14  ;;  %v907_v15 = vsel %vm852_vm2, %v1782_v13, 0.0 }
 0x18e   : > { %908 = vadd.xlane.f32.xlu0 %v907_v15 }
 0x18f   : > { %v1784_v16 = vpop.eup %1783 }
 0x190   : > { %v1786_v17 = vpop.eup %1785  ;;  %v910_v18 = vsel %vm852_vm2, %v1784_v16, 0.0 }
 0x191   : > { %911 = vadd.xlane.f32.xlu1 %v910_v18  ;;  %v913_v19 = vsel %vm852_vm2, %v1786_v17, 0.0 }
 0x192   : > { %914 = vadd.xlane.f32.xlu0 %v913_v19 }
 0x193   : > { %v1936_v20 = vpop.eup %1787 }
 0x194   : > { %v1938_v21 = vpop.eup %1789  ;;  %v916_v22 = vsel %vm852_vm2, %v1936_v20, 0.0 }
 0x195   : > { %917 = vadd.xlane.f32.xlu1 %v916_v22  ;;  %v919_v23 = vsel %vm852_vm2, %v1938_v21, 0.0 }
 0x196   : > { %920 = vadd.xlane.f32.xlu0 %v919_v23 }
 0x197   : > { %v1944_v24 = vpop.eup %1791 }
 0x198   : > { %v922_v25 = vsel %vm852_vm2, %v1944_v24, 0.0 }
 0x199   : > { %923 = vadd.xlane.f32.xlu1 %v922_v25 }
 0x216   : > { %v903_v28 = vpop.xlane.xlu0 %902 }
 0x217   : > { %1793 = vrcp.f32 %v903_v28 }
 0x21a   : > { %v906_v29 = vpop.xlane.xlu1 %905 }
 0x21b   : > { %1795 = vrcp.f32 %v906_v29  ;;  %v909_v30 = vpop.xlane.xlu0 %908 }
 0x21c   : > { %1797 = vrcp.f32 %v909_v30 }
 0x21e   : > { %v912_v31 = vpop.xlane.xlu1 %911 }
 0x21f   : > { %1799 = vrcp.f32 %v912_v31  ;;  %v915_v32 = vpop.xlane.xlu0 %914 }
 0x220   : > { %1801 = vrcp.f32 %v915_v32 }
 0x221   : > { %v1794_v33 = vpop.eup %1793 }
 0x222   : > { %v933_v34 = vmul.f32 %v1794_v33, %v1778_v5  ;;  %v918_v35 = vpop.xlane.xlu1 %917 }
 0x223   : > { %1803 = vrcp.f32 %v918_v35  ;;  %v921_v37 = vpop.xlane.xlu0 %920 }
 0x224   : > { %1805 = vrcp.f32 %v921_v37  ;;  %1730 = vmatmul.mubr.msk.f32.vlgmr.msra.gmra.mrb[8].mxu0 %vm852_vm2, %v933_v34 }
 0x225   : > { %v1796_v38 = vpop.eup %1795  ;;  %1738 = vmatpush3.msra.mxu0 %v229_v36  ;;  %1739 = vmatprep.mubr.msk.f32.mxu0 %vm1818_vm0, %v1817_v0 }
 0x226   : > { %v1798_v39 = vpop.eup %1797  ;;  %v934_v40 = vmul.f32 %v1796_v38, %v1780_v11  ;;  %v924_v41 = vpop.xlane.xlu1 %923  ;;  %1747 = vmatprep.subr.mxu0 %v1817_v0 }
 0x227   : > { %v935_v43 = vmul.f32 %v1798_v39, %v1782_v13  ;;  %1807 = vrcp.f32 %v924_v41 }
 0x228   : > { %1735 = vmatmul.mubr.msk.f32.vlgmr.msra.gmra.mrb[8].mxu1 %vm852_vm2, %v934_v40 }
 0x229   : > { %v1800_v45 = vpop.eup %1799  ;;  %1740 = vmatmul.mubr.msk.f32.vlgmr.msra.gmra.mrb[10].mxu0 %vm852_vm2, %v935_v43  ;;  %1743 = vmatpush3.msra.mxu1 %v230_v42 }
 0x22a   : > { %v1802_v46 = vpop.eup %1801  ;;  %v936_v47 = vmul.f32 %v1800_v45, %v1784_v16  ;;  %1744 = vmatprep.mubr.msk.f32.mxu1 %vm1818_vm0, %v1817_v0  ;;  %1748 = vmatpush3.msra.mxu0 %v231_v44 }
 0x22b   : > { %v937_v49 = vmul.f32 %v1802_v46, %v1786_v17  ;;  %1749 = vmatprep.mubr.msk.f32.mxu0 %vm1818_vm0, %v1817_v0  ;;  %1752 = vmatprep.subr.mxu1 %v1817_v0 }
 0x22c   : > { %1745 = vmatmul.mubr.msk.f32.vlgmr.msra.gmra.mrb[10].mxu1 %vm852_vm2, %v936_v47  ;;  %1757 = vmatprep.subr.mxu0 %v1817_v0 }
 0x22d   : > { %v1804_v51 = vpop.eup %1803  ;;  %1750 = vmatmul.mubr.msk.f32.vlgmr.msra.gmra.mrb[12].mxu0 %vm852_vm2, %v937_v49  ;;  %1753 = vmatpush3.msra.mxu1 %v232_v48 }
 0x22e   : > { %v1806_v52 = vpop.eup %1805  ;;  %v938_v53 = vmul.f32 %v1804_v51, %v1936_v20  ;;  %1754 = vmatprep.mubr.msk.f32.mxu1 %vm1818_vm0, %v1817_v0  ;;  %1758 = vmatpush3.msra.mxu0 %v233_v50 }
 0x22f   : > { %v939_v55 = vmul.f32 %v1806_v52, %v1938_v21  ;;  %1759 = vmatprep.mubr.msk.f32.mxu0 %vm1818_vm0, %v1817_v0  ;;  %1762 = vmatprep.subr.mxu1 %v1817_v0 }
 0x230   : > { %1755 = vmatmul.mubr.msk.f32.vlgmr.msra.gmra.mrb[12].mxu1 %vm852_vm2, %v938_v53 }
 0x231   : > { %v1808_v56 = vpop.eup %1807  ;;  %1760 = vmatmul.mubr.msk.f32.vlgmr.msra.gmra.mrb[14].mxu0 %vm852_vm2, %v939_v55  ;;  %1763 = vmatpush3.msra.mxu1 %v234_v54 }
 0x232   : > { %v940_v57 = vmul.f32 %v1808_v56, %v1944_v24  ;;  %1764 = vmatprep.mubr.msk.f32.mxu1 %vm1818_vm0, %v1817_v0 }
 0x234   : > { %1765 = vmatmul.mubr.msk.f32.vlgmr.msra.gmra.mrb[14].mxu1 %vm852_vm2, %v940_v57 }
 0x2f7   : > { %v1010_v58 = vpop.f32.mrb[8].mxu0 }
 0x2f8   : > { %1525 = vst.msk [vmem:[%s210_s26] sm:$0xff] %vm235_vm1, %v1010_v58  ;;  %v1731_v59 = vpop.f32.mrb[9].mxu0 }
 0x2fb   : > { %v1083_v60 = vpop.f32.mrb[8].mxu1 }
 0x2fc   : > { %1526 = vst.msk [vmem:[%s210_s26 + $0x8] sm:$0xff] %vm235_vm1, %v1083_v60  ;;  %v1156_v61 = vpop.f32.mrb[10].mxu0  ;;  %v1736_v62 = vpop.f32.mrb[9].mxu1 }
 0x2fd   : > { %1527 = vst.msk [vmem:[%s210_s26 + $0x10] sm:$0xff] %vm235_vm1, %v1156_v61  ;;  %v1741_v63 = vpop.f32.mrb[11].mxu0 }
 0x2ff   : > { %v1229_v1 = vpop.f32.mrb[10].mxu1 }
 0x300   : > { %1528 = vst.msk [vmem:[%s210_s26 + $0x18] sm:$0xff] %vm235_vm1, %v1229_v1  ;;  %v1302_v0 = vpop.f32.mrb[12].mxu0  ;;  %v1746_v2 = vpop.f32.mrb[11].mxu1 }
 0x301   : > { %1529 = vst.msk [vmem:[%s210_s26 + $0x20] sm:$0xff] %vm235_vm1, %v1302_v0  ;;  %v1751_v3 = vpop.f32.mrb[13].mxu0 }
 0x303   : > { %v1375_v4 = vpop.f32.mrb[12].mxu1 }
 0x304   : > { %1530 = vst.msk [vmem:[%s210_s26 + $0x28] sm:$0xff] %vm235_vm1, %v1375_v4  ;;  %v1448_v5 = vpop.f32.mrb[14].mxu0  ;;  %v1756_v6 = vpop.f32.mrb[13].mxu1 }
 0x305   : > { %1531 = vst.msk [vmem:[%s210_s26 + $0x30] sm:$0xff] %vm235_vm1, %v1448_v5  ;;  %v1761_v7 = vpop.f32.mrb[15].mxu0 }
 0x307   : > { %v1521_v8 = vpop.f32.mrb[14].mxu1 }
 0x308   : > { %1532 = vst.msk [vmem:[%s210_s26 + $0x38] sm:$0xff] %vm235_vm1, %v1521_v8  ;;  %v1766_v9 = vpop.f32.mrb[15].mxu1 }
 0x309 PF: > { %s13_s12 = sadd.s32 1, %s1815_s12  }
 0x30a   : > { %p10_p4 = scmp.ge.s32.totalorder %s13_s12, 4  }
 0x30c   :  { %12 = sbr.rel (!%p10_p4) target bundleno = 1 (0x1), region = 68 }

// kernel: transformer_encoder_forward.35
= control target key start
LH: loop header
LB: loop body
LE: loop exit
PB: predicated region body
PF: predicated region fallthrough
CT: control target
= control target key end

     0   :  { %s1176_s12 = smov 0   ;;  %s1178_s13 = smov 0   ;;  %s1562_s0 = inlined_call_operand.vmem [shape: f32[16,256], index: 0, kind: input, shape index: {}]   ;;  %s1563_s1 = inlined_call_operand.vmem [shape: f32[256,768], index: 1, kind: input, shape index: {}]   ;;  %s1564_s2 = inlined_call_operand.vmem [shape: f32[1,768], index: 2, kind: input, shape index: {}]   ;;  %s1565_s3 = inlined_call_operand.vmem [shape: f32[16,768], index: 3, kind: output, shape index: {}]  }
   0x1   :  { %s1180_s14 = smov 0   ;;  %s1182_s15 = smov 0  }
   0x2   :  { %s1184_s16 = smov 0  }
   0x3 LB: > { %s28_s17 = sadd.s32 1, %s1150_s15  ;;  %s927_s18 = sadd.s32 4294967295, %s1154_s16   ;;  %s1154_s16 = sphi %s1184_s16, %s13_s16   ;;  %s1150_s15 = sphi %s1182_s15, %s1570_s15   ;;  %s1146_s14 = sphi %s1180_s14, %s1569_s14   ;;  %s1142_s13 = sphi %s1178_s13, %s1568_s13   ;;  %s1138_s12 = sphi %s1176_s12, %s1567_s12  }
   0x4   : > { %p30_p0 = scmp.ge.s32.totalorder %s28_s17, 2  ;;  %p76_p1 = scmp.ne.s32.totalorder %s1142_s13, %s1138_s12 }
   0x5   : > { %p77_p2 = scmp.eq.s32.totalorder %s1154_s16, 0  ;;  %p134_p4 = scmp.eq.s32.totalorder %s927_s18, 1 }
   0x6   : > { %s1572_s17 = smov (%p30_p0, %s28_s17), 0  ;;  %s69_s20 = sadd.s32 1, %s1142_s13 }
   0x7   : > { %p78_p3 = por %p77_p2, %p76_p1  ;;  %s65_s19 = ssub.s32 %s1150_s15, %s1572_s17 }
   0x8   : > { %p67_p5 = scmp.eq.s32.totalorder %s65_s19, 0  ;;  %p1211_p6 = por %p134_p4, %p76_p1 }
   0x9   : > { %p931_p7 = scmp.ge.s32.totalorder %s1154_s16, 2 }
   0xa   : > { %s1216_s22 = scalar_select %p67_p5, %s1142_s13, %s69_s20  }
   0xb   : > { %171 = sbr.rel (%p931_p7) target bundleno = 71 (0x47), region = 20 }
  0x12   : > { %174 = sbr.rel (!%p78_p3) target bundleno = 71 (0x47), region = 24  ;;  %s176_s23 = sand.u32 (%p78_p3), 1, %s1142_s13  }
  0x13   : > { %s937_s24 = smul.u32 (%p78_p3), 24, %s1150_s15 }
  0x14   : > { %s1073_s25 = smul.u32 (%p78_p3), 768, %s176_s23 }
  0x15   : > { %s1224_s28 = scalar_lea.vmem (%p78_p3), %s1563_s1, %s937_s24 }
  0x16   : > { %v197_v0 = vld [vmem:[%s1224_s28] sm:$0xff] (%p78_p3)  ;;  %v199_v1 = vld [vmem:[%s1224_s28 + $0x8] sm:$0xff] (%p78_p3)  ;;  %v201_v2 = vld [vmem:[%s1224_s28 + $0x10] sm:$0xff] (%p78_p3)  ;;  %s1229_s29 = scalar_lea.vmem (%p78_p3), [#allocation3], %s1073_s25 }
  0x17   : > { %198 = vst [vmem:[%s1229_s29] sm:$0xff] (%p78_p3), %v197_v0  ;;  %200 = vst [vmem:[%s1229_s29 + $0x8] sm:$0xff] (%p78_p3), %v199_v1  ;;  %v203_v3 = vld [vmem:[%s1224_s28 + $0x30] sm:$0xff] (%p78_p3)  ;;  %v205_v4 = vld [vmem:[%s1224_s28 + $0x38] sm:$0xff] (%p78_p3) }
  0x18   : > { %202 = vst [vmem:[%s1229_s29 + $0x10] sm:$0xff] (%p78_p3), %v201_v2  ;;  %v207_v5 = vld [vmem:[%s1224_s28 + $0x40] sm:$0xff] (%p78_p3)  ;;  %204 = vst [vmem:[%s1229_s29 + $0x18] sm:$0xff] (%p78_p3), %v203_v3  ;;  %v211_v7 = vld [vmem:[%s1224_s28 + $0x68] sm:$0xff] (%p78_p3) }
  0x19   : > { %206 = vst [vmem:[%s1229_s29 + $0x20] sm:$0xff] %v205_v4  ;;  %208 = vst [vmem:[%s1229_s29 + $0x28] sm:$0xff] %v207_v5  ;;  %v209_v6 = vld [vmem:[%s1224_s28 + $0x60] sm:$0xff]  ;;  %v213_v8 = vld [vmem:[%s1224_s28 + $0x70] sm:$0xff] }
  0x1a   : > { %210 = vst [vmem:[%s1229_s29 + $0x30] sm:$0xff] %v209_v6  ;;  %212 = vst [vmem:[%s1229_s29 + $0x38] sm:$0xff] %v211_v7  ;;  %v215_v9 = vld [vmem:[%s1224_s28 + $0x90] sm:$0xff]  ;;  %v217_v10 = vld [vmem:[%s1224_s28 + $0x98] sm:$0xff] }
  0x1b   : > { %214 = vst [vmem:[%s1229_s29 + $0x40] sm:$0xff] %v213_v8  ;;  %v219_v11 = vld [vmem:[%s1224_s28 + $0xa0] sm:$0xff]  ;;  %216 = vst [vmem:[%s1229_s29 + $0x48] sm:$0xff] %v215_v9  ;;  %v223_v13 = vld [vmem:[%s1224_s28 + $0xc8] sm:$0xff] }
  0x1c   : > { %218 = vst [vmem:[%s1229_s29 + $0x50] sm:$0xff] %v217_v10  ;;  %220 = vst [vmem:[%s1229_s29 + $0x58] sm:$0xff] %v219_v11  ;;  %v221_v12 = vld [vmem:[%s1224_s28 + $0xc0] sm:$0xff]  ;;  %v225_v14 = vld [vmem:[%s1224_s28 + $0xd0] sm:$0xff] }
  0x1d   : > { %222 = vst [vmem:[%s1229_s29 + $0x60] sm:$0xff] %v221_v12  ;;  %224 = vst [vmem:[%s1229_s29 + $0x68] sm:$0xff] %v223_v13  ;;  %v227_v15 = vld [vmem:[%s1224_s28 + $0xf0] sm:$0xff]  ;;  %v229_v16 = vld [vmem:[%s1224_s28 + $0xf8] sm:$0xff] }
  0x1e   : > { %226 = vst [vmem:[%s1229_s29 + $0x70] sm:$0xff] %v225_v14  ;;  %v231_v17 = vld [vmem:[%s1224_s28 + $0x100] sm:$0xff]  ;;  %228 = vst [vmem:[%s1229_s29 + $0x78] sm:$0xff] %v227_v15  ;;  %v235_v19 = vld [vmem:[%s1224_s28 + $0x128] sm:$0xff] }
  0x1f   : > { %230 = vst [vmem:[%s1229_s29 + $0x80] sm:$0xff] %v229_v16  ;;  %232 = vst [vmem:[%s1229_s29 + $0x88] sm:$0xff] %v231_v17  ;;  %v233_v18 = vld [vmem:[%s1224_s28 + $0x120] sm:$0xff]  ;;  %v237_v20 = vld [vmem:[%s1224_s28 + $0x130] sm:$0xff] }
  0x20   : > { %234 = vst [vmem:[%s1229_s29 + $0x90] sm:$0xff] %v233_v18  ;;  %236 = vst [vmem:[%s1229_s29 + $0x98] sm:$0xff] %v235_v19  ;;  %v239_v21 = vld [vmem:[%s1224_s28 + $0x150] sm:$0xff]  ;;  %v241_v22 = vld [vmem:[%s1224_s28 + $0x158] sm:$0xff] }
  0x21   : > { %238 = vst [vmem:[%s1229_s29 + $0xa0] sm:$0xff] %v237_v20  ;;  %v243_v23 = vld [vmem:[%s1224_s28 + $0x160] sm:$0xff]  ;;  %240 = vst [vmem:[%s1229_s29 + $0xa8] sm:$0xff] %v239_v21  ;;  %v247_v25 = vld [vmem:[%s1224_s28 + $0x188] sm:$0xff] }
  0x22   : > { %242 = vst [vmem:[%s1229_s29 + $0xb0] sm:$0xff] %v241_v22  ;;  %244 = vst [vmem:[%s1229_s29 + $0xb8] sm:$0xff] %v243_v23  ;;  %v245_v24 = vld [vmem:[%s1224_s28 + $0x180] sm:$0xff]  ;;  %v249_v26 = vld [vmem:[%s1224_s28 + $0x190] sm:$0xff] }
  0x23   : > { %246 = vst [vmem:[%s1229_s29 + $0xc0] sm:$0xff] %v245_v24  ;;  %248 = vst [vmem:[%s1229_s29 + $0xc8] sm:$0xff] %v247_v25  ;;  %v251_v27 = vld [vmem:[%s1224_s28 + $0x1b0] sm:$0xff]  ;;  %v253_v28 = vld [vmem:[%s1224_s28 + $0x1b8] sm:$0xff] }
  0x24   : > { %250 = vst [vmem:[%s1229_s29 + $0xd0] sm:$0xff] %v249_v26  ;;  %v255_v29 = vld [vmem:[%s1224_s28 + $0x1c0] sm:$0xff]  ;;  %252 = vst [vmem:[%s1229_s29 + $0xd8] sm:$0xff] %v251_v27  ;;  %v259_v31 = vld [vmem:[%s1224_s28 + $0x1e8] sm:$0xff] }
  0x25   : > { %254 = vst [vmem:[%s1229_s29 + $0xe0] sm:$0xff] %v253_v28  ;;  %256 = vst [vmem:[%s1229_s29 + $0xe8] sm:$0xff] %v255_v29  ;;  %v257_v30 = vld [vmem:[%s1224_s28 + $0x1e0] sm:$0xff]  ;;  %v261_v32 = vld [vmem:[%s1224_s28 + $0x1f0] sm:$0xff] }
  0x26   : > { %258 = vst [vmem:[%s1229_s29 + $0xf0] sm:$0xff] %v257_v30  ;;  %260 = vst [vmem:[%s1229_s29 + $0xf8] sm:$0xff] %v259_v31  ;;  %v263_v33 = vld [vmem:[%s1224_s28 + $0x210] sm:$0xff]  ;;  %v265_v34 = vld [vmem:[%s1224_s28 + $0x218] sm:$0xff] }
  0x27   : > { %262 = vst [vmem:[%s1229_s29 + $0x100] sm:$0xff] %v261_v32  ;;  %v267_v35 = vld [vmem:[%s1224_s28 + $0x220] sm:$0xff]  ;;  %264 = vst [vmem:[%s1229_s29 + $0x108] sm:$0xff] %v263_v33  ;;  %v271_v37 = vld [vmem:[%s1224_s28 + $0x248] sm:$0xff] }
  0x28   : > { %266 = vst [vmem:[%s1229_s29 + $0x110] sm:$0xff] %v265_v34  ;;  %268 = vst [vmem:[%s1229_s29 + $0x118] sm:$0xff] %v267_v35  ;;  %v269_v36 = vld [vmem:[%s1224_s28 + $0x240] sm:$0xff]  ;;  %v273_v38 = vld [vmem:[%s1224_s28 + $0x250] sm:$0xff] }
  0x29   : > { %270 = vst [vmem:[%s1229_s29 + $0x120] sm:$0xff] %v269_v36  ;;  %272 = vst [vmem:[%s1229_s29 + $0x128] sm:$0xff] %v271_v37  ;;  %v275_v39 = vld [vmem:[%s1224_s28 + $0x270] sm:$0xff]  ;;  %v277_v40 = vld [vmem:[%s1224_s28 + $0x278] sm:$0xff] }
  0x2a   : > { %274 = vst [vmem:[%s1229_s29 + $0x130] sm:$0xff] %v273_v38  ;;  %v279_v41 = vld [vmem:[%s1224_s28 + $0x280] sm:$0xff]  ;;  %276 = vst [vmem:[%s1229_s29 + $0x138] sm:$0xff] %v275_v39  ;;  %v283_v43 = vld [vmem:[%s1224_s28 + $0x2a8] sm:$0xff] }
  0x2b   : > { %278 = vst [vmem:[%s1229_s29 + $0x140] sm:$0xff] %v277_v40  ;;  %280 = vst [vmem:[%s1229_s29 + $0x148] sm:$0xff] %v279_v41  ;;  %v281_v42 = vld [vmem:[%s1224_s28 + $0x2a0] sm:$0xff]  ;;  %v285_v44 = vld [vmem:[%s1224_s28 + $0x2b0] sm:$0xff] }
  0x2c   : > { %282 = vst [vmem:[%s1229_s29 + $0x150] sm:$0xff] %v281_v42  ;;  %284 = vst [vmem:[%s1229_s29 + $0x158] sm:$0xff] %v283_v43  ;;  %v287_v45 = vld [vmem:[%s1224_s28 + $0x2d0] sm:$0xff]  ;;  %v289_v46 = vld [vmem:[%s1224_s28 + $0x2d8] sm:$0xff] }
  0x2d   : > { %286 = vst [vmem:[%s1229_s29 + $0x160] sm:$0xff] %v285_v44  ;;  %v291_v47 = vld [vmem:[%s1224_s28 + $0x2e0] sm:$0xff]  ;;  %288 = vst [vmem:[%s1229_s29 + $0x168] sm:$0xff] %v287_v45  ;;  %v295_v49 = vld [vmem:[%s1224_s28 + $0x308] sm:$0xff] }
  0x2e   : > { %290 = vst [vmem:[%s1229_s29 + $0x170] sm:$0xff] %v289_v46  ;;  %292 = vst [vmem:[%s1229_s29 + $0x178] sm:$0xff] %v291_v47  ;;  %v293_v48 = vld [vmem:[%s1224_s28 + $0x300] sm:$0xff]  ;;  %v297_v50 = vld [vmem:[%s1224_s28 + $0x310] sm:$0xff] }
  0x2f   : > { %294 = vst [vmem:[%s1229_s29 + $0x180] sm:$0xff] %v293_v48  ;;  %296 = vst [vmem:[%s1229_s29 + $0x188] sm:$0xff] %v295_v49  ;;  %v299_v51 = vld [vmem:[%s1224_s28 + $0x330] sm:$0xff]  ;;  %v301_v52 = vld [vmem:[%s1224_s28 + $0x338] sm:$0xff] }
  0x30   : > { %298 = vst [vmem:[%s1229_s29 + $0x190] sm:$0xff] %v297_v50  ;;  %v303_v53 = vld [vmem:[%s1224_s28 + $0x340] sm:$0xff]  ;;  %300 = vst [vmem:[%s1229_s29 + $0x198] sm:$0xff] %v299_v51  ;;  %v307_v55 = vld [vmem:[%s1224_s28 + $0x368] sm:$0xff] }
  0x31   : > { %302 = vst [vmem:[%s1229_s29 + $0x1a0] sm:$0xff] %v301_v52  ;;  %304 = vst [vmem:[%s1229_s29 + $0x1a8] sm:$0xff] %v303_v53  ;;  %v305_v54 = vld [vmem:[%s1224_s28 + $0x360] sm:$0xff]  ;;  %v309_v56 = vld [vmem:[%s1224_s28 + $0x370] sm:$0xff] }
  0x32   : > { %306 = vst [vmem:[%s1229_s29 + $0x1b0] sm:$0xff] %v305_v54  ;;  %308 = vst [vmem:[%s1229_s29 + $0x1b8] sm:$0xff] %v307_v55  ;;  %v311_v57 = vld [vmem:[%s1224_s28 + $0x390] sm:$0xff]  ;;  %v313_v58 = vld [vmem:[%s1224_s28 + $0x398] sm:$0xff] }
  0x33   : > { %310 = vst [vmem:[%s1229_s29 + $0x1c0] sm:$0xff] %v309_v56  ;;  %v315_v59 = vld [vmem:[%s1224_s28 + $0x3a0] sm:$0xff]  ;;  %312 = vst [vmem:[%s1229_s29 + $0x1c8] sm:$0xff] %v311_v57  ;;  %v319_v61 = vld [vmem:[%s1224_s28 + $0x3c8] sm:$0xff] }
  0x34   : > { %314 = vst [vmem:[%s1229_s29 + $0x1d0] sm:$0xff] %v313_v58  ;;  %316 = vst [vmem:[%s1229_s29 + $0x1d8] sm:$0xff] %v315_v59  ;;  %v317_v60 = vld [vmem:[%s1224_s28 + $0x3c0] sm:$0xff]  ;;  %v321_v62 = vld [vmem:[%s1224_s28 + $0x3d0] sm:$0xff] }
  0x35   : > { %318 = vst [vmem:[%s1229_s29 + $0x1e0] sm:$0xff] %v317_v60  ;;  %320 = vst [vmem:[%s1229_s29 + $0x1e8] sm:$0xff] %v319_v61  ;;  %v323_v63 = vld [vmem:[%s1224_s28 + $0x3f0] sm:$0xff]  ;;  %v325_v0 = vld [vmem:[%s1224_s28 + $0x3f8] sm:$0xff] }
  0x36   : > { %322 = vst [vmem:[%s1229_s29 + $0x1f0] sm:$0xff] %v321_v62  ;;  %v327_v1 = vld [vmem:[%s1224_s28 + $0x400] sm:$0xff]  ;;  %324 = vst [vmem:[%s1229_s29 + $0x1f8] sm:$0xff] %v323_v63  ;;  %v331_v3 = vld [vmem:[%s1224_s28 + $0x428] sm:$0xff] }
  0x37   : > { %326 = vst [vmem:[%s1229_s29 + $0x200] sm:$0xff] %v325_v0  ;;  %328 = vst [vmem:[%s1229_s29 + $0x208] sm:$0xff] %v327_v1  ;;  %v329_v2 = vld [vmem:[%s1224_s28 + $0x420] sm:$0xff]  ;;  %v333_v4 = vld [vmem:[%s1224_s28 + $0x430] sm:$0xff] }
  0x38   : > { %330 = vst [vmem:[%s1229_s29 + $0x210] sm:$0xff] %v329_v2  ;;  %332 = vst [vmem:[%s1229_s29 + $0x218] sm:$0xff] %v331_v3  ;;  %v335_v5 = vld [vmem:[%s1224_s28 + $0x450] sm:$0xff]  ;;  %v337_v6 = vld [vmem:[%s1224_s28 + $0x458] sm:$0xff] }
  0x39   : > { %334 = vst [vmem:[%s1229_s29 + $0x220] sm:$0xff] %v333_v4  ;;  %v339_v7 = vld [vmem:[%s1224_s28 + $0x460] sm:$0xff]  ;;  %336 = vst [vmem:[%s1229_s29 + $0x228] sm:$0xff] %v335_v5  ;;  %v343_v9 = vld [vmem:[%s1224_s28 + $0x488] sm:$0xff] }
  0x3a   : > { %338 = vst [vmem:[%s1229_s29 + $0x230] sm:$0xff] %v337_v6  ;;  %340 = vst [vmem:[%s1229_s29 + $0x238] sm:$0xff] %v339_v7  ;;  %v341_v8 = vld [vmem:[%s1224_s28 + $0x480] sm:$0xff]  ;;  %v345_v10 = vld [vmem:[%s1224_s28 + $0x490] sm:$0xff] }
  0x3b   : > { %342 = vst [vmem:[%s1229_s29 + $0x240] sm:$0xff] %v341_v8  ;;  %344 = vst [vmem:[%s1229_s29 + $0x248] sm:$0xff] %v343_v9  ;;  %v347_v11 = vld [vmem:[%s1224_s28 + $0x4b0] sm:$0xff]  ;;  %v349_v12 = vld [vmem:[%s1224_s28 + $0x4b8] sm:$0xff] }
  0x3c   : > { %346 = vst [vmem:[%s1229_s29 + $0x250] sm:$0xff] %v345_v10  ;;  %v351_v13 = vld [vmem:[%s1224_s28 + $0x4c0] sm:$0xff]  ;;  %348 = vst [vmem:[%s1229_s29 + $0x258] sm:$0xff] %v347_v11  ;;  %v355_v15 = vld [vmem:[%s1224_s28 + $0x4e8] sm:$0xff] }
  0x3d   : > { %350 = vst [vmem:[%s1229_s29 + $0x260] sm:$0xff] %v349_v12  ;;  %352 = vst [vmem:[%s1229_s29 + $0x268] sm:$0xff] %v351_v13  ;;  %v353_v14 = vld [vmem:[%s1224_s28 + $0x4e0] sm:$0xff]  ;;  %v357_v16 = vld [vmem:[%s1224_s28 + $0x4f0] sm:$0xff] }
  0x3e   : > { %354 = vst [vmem:[%s1229_s29 + $0x270] sm:$0xff] %v353_v14  ;;  %356 = vst [vmem:[%s1229_s29 + $0x278] sm:$0xff] %v355_v15  ;;  %v359_v17 = vld [vmem:[%s1224_s28 + $0x510] sm:$0xff]  ;;  %v361_v18 = vld [vmem:[%s1224_s28 + $0x518] sm:$0xff] }
  0x3f   : > { %358 = vst [vmem:[%s1229_s29 + $0x280] sm:$0xff] %v357_v16  ;;  %v363_v19 = vld [vmem:[%s1224_s28 + $0x520] sm:$0xff]  ;;  %360 = vst [vmem:[%s1229_s29 + $0x288] sm:$0xff] %v359_v17  ;;  %v367_v21 = vld [vmem:[%s1224_s28 + $0x548] sm:$0xff] }
  0x40   : > { %362 = vst [vmem:[%s1229_s29 + $0x290] sm:$0xff] %v361_v18  ;;  %364 = vst [vmem:[%s1229_s29 + $0x298] sm:$0xff] %v363_v19  ;;  %v365_v20 = vld [vmem:[%s1224_s28 + $0x540] sm:$0xff]  ;;  %v369_v22 = vld [vmem:[%s1224_s28 + $0x550] sm:$0xff] }
  0x41   : > { %366 = vst [vmem:[%s1229_s29 + $0x2a0] sm:$0xff] %v365_v20  ;;  %368 = vst [vmem:[%s1229_s29 + $0x2a8] sm:$0xff] %v367_v21  ;;  %v371_v23 = vld [vmem:[%s1224_s28 + $0x570] sm:$0xff]  ;;  %v373_v24 = vld [vmem:[%s1224_s28 + $0x578] sm:$0xff] }
  0x42   : > { %370 = vst [vmem:[%s1229_s29 + $0x2b0] sm:$0xff] %v369_v22  ;;  %v375_v25 = vld [vmem:[%s1224_s28 + $0x580] sm:$0xff]  ;;  %372 = vst [vmem:[%s1229_s29 + $0x2b8] sm:$0xff] %v371_v23  ;;  %v379_v27 = vld [vmem:[%s1224_s28 + $0x5a8] sm:$0xff] }
  0x43   : > { %374 = vst [vmem:[%s1229_s29 + $0x2c0] sm:$0xff] %v373_v24  ;;  %376 = vst [vmem:[%s1229_s29 + $0x2c8] sm:$0xff] %v375_v25  ;;  %v377_v26 = vld [vmem:[%s1224_s28 + $0x5a0] sm:$0xff]  ;;  %v381_v28 = vld [vmem:[%s1224_s28 + $0x5b0] sm:$0xff] }
  0x44   : > { %378 = vst [vmem:[%s1229_s29 + $0x2d0] sm:$0xff] %v377_v26  ;;  %380 = vst [vmem:[%s1229_s29 + $0x2d8] sm:$0xff] %v379_v27  ;;  %v383_v29 = vld [vmem:[%s1224_s28 + $0x5d0] sm:$0xff]  ;;  %v385_v30 = vld [vmem:[%s1224_s28 + $0x5d8] sm:$0xff] }
  0x45   : > { %382 = vst [vmem:[%s1229_s29 + $0x2e0] sm:$0xff] %v381_v28  ;;  %v387_v31 = vld [vmem:[%s1224_s28 + $0x5e0] sm:$0xff]  ;;  %384 = vst [vmem:[%s1229_s29 + $0x2e8] sm:$0xff] %v383_v29 }
  0x46   : > { %386 = vst [vmem:[%s1229_s29 + $0x2f0] sm:$0xff] %v385_v30  ;;  %388 = vst [vmem:[%s1229_s29 + $0x2f8] sm:$0xff] %v387_v31 }
  0x47 PF: > { %p933_p8 = scmp.ge.s32.totalorder %s1154_s16, 1  ;;  %p401_p9 = scmp.lt.s32.totalorder %s1154_s16, 3 }
  0x49   : > { %p402_p10 = pnand %p933_p8, %p401_p9 }
  0x4a   : > { %s408_s30 = sand.u32 (!%p402_p10), 1, %s1138_s12   ;;  %v482_v32 = vld [vmem:[%s1562_s0 + $0x8] sm:$0xff] (!%p402_p10)  ;;  %s458_s20 = smul.u32 (!%p402_p10), 3, %s1146_s14 }
  0x4b   : > { %405 = sbr.rel (%p402_p10) target bundleno = 374 (0x176), region = 51  ;;  %722 = vmatprep.mubr.f32.mxu1 (!%p402_p10), %v482_v32  ;;  %645 = vmatprep.mubr.f32.mxu0 (!%p402_p10), %v482_v32 }
  0x4c   : > { %s1074_s6 = smul.u32 (!%p402_p10), 768, %s408_s30  ;;  %p459_p11 = scmp.lt.s32.totalorder (!%p402_p10), %s458_s20, 5 }
  0x4d   : > { %s1075_s26 = smul.u32 (!%p402_p10), 48, %s408_s30 }
  0x4e   : > { %s1428_s7 = scalar_lea.vmem (!%p402_p10), [#allocation3], %s1074_s6 }
  0x4f   : > { %v486_v33 = vld [vmem:[%s1428_s7 + $0x8] sm:$0xff] (!%p402_p10)  ;;  %v489_v34 = vld [vmem:[%s1428_s7 + $0x20] sm:$0xff] (!%p402_p10)  ;;  %v488_v37 = vld [vmem:[%s1428_s7 + $0x18] sm:$0xff] (!%p402_p10)  ;;  %s443_s27 = scalar_lea.vmem (!%p402_p10), [#allocation4], %s1075_s26 }
  0x50   : > { %v485_v35 = vld [vmem:[%s1428_s7] sm:$0xff] (!%p402_p10)  ;;  %v977_v36 = vpack.c.bf16 (!%p402_p10), %v489_v34, %v486_v33  ;;  %v492_v38 = vld [vmem:[%s1428_s7 + $0x38] sm:$0xff] (!%p402_p10)  ;;  %v495_v39 = vld [vmem:[%s1428_s7 + $0x50] sm:$0xff] (!%p402_p10) }
  0x51   : > { %v979_v40 = vpack.c.bf16 (!%p402_p10), %v488_v37, %v485_v35  ;;  %v981_v41 = vpack.c.bf16 (!%p402_p10), %v495_v39, %v492_v38  ;;  %v491_v42 = vld [vmem:[%s1428_s7 + $0x30] sm:$0xff] (!%p402_p10)  ;;  %v494_v43 = vld [vmem:[%s1428_s7 + $0x48] sm:$0xff] (!%p402_p10)  ;;  %v501_v45 = vld [vmem:[%s1428_s7 + $0x80] sm:$0xff] (!%p402_p10) }
  0x52   : > { %v498_v44 = vld [vmem:[%s1428_s7 + $0x68] sm:$0xff]  ;;  %978 = vmatprep.subr.bf16.mxu0 %v977_v36  ;;  %v983_v46 = vpack.c.bf16 %v494_v43, %v491_v42  ;;  %v497_v48 = vld [vmem:[%s1428_s7 + $0x60] sm:$0xff]  ;;  %v500_v49 = vld [vmem:[%s1428_s7 + $0x78] sm:$0xff]  ;;  %s1574_s20 = smov (!%p459_p11, %s458_s20), 5  ;;  %s938_s12 = smul.u32 (%p1211_p6), 24, %s1146_s14 }
  0x53   : > { %980 = vmatpush1.bf16.msra.mxu0 %v979_v40  ;;  %v985_v47 = vpack.c.bf16 %v501_v45, %v498_v44  ;;  %v504_v50 = vld [vmem:[%s1428_s7 + $0x98] sm:$0xff]  ;;  %v507_v51 = vld [vmem:[%s1428_s7 + $0xb0] sm:$0xff]  ;;  %v987_v52 = vpack.c.bf16 %v500_v49, %v497_v48  ;;  %v506_v55 = vld [vmem:[%s1428_s7 + $0xa8] sm:$0xff]  ;;  %s461_s25 = scalar_lea.vmem %s1564_s2, %s1574_s20 }
  0x54   : > { %982 = vmatprep.subr.bf16.mxu0 %v981_v41  ;;  %v989_v53 = vpack.c.bf16 %v507_v51, %v504_v50  ;;  %v503_v54 = vld [vmem:[%s1428_s7 + $0x90] sm:$0xff]  ;;  %v510_v56 = vld [vmem:[%s1428_s7 + $0xc8] sm:$0xff]  ;;  %v513_v57 = vld [vmem:[%s1428_s7 + $0xe0] sm:$0xff]  ;;  %s795_s30 = scalar_lea.vmem (%p1211_p6), %s1565_s3, %s938_s12 }
  0x55   : > { %v535_v58 = vld [vmem:[%s1428_s7 + $0x190] sm:$0xff]  ;;  %v538_v59 = vld [vmem:[%s1428_s7 + $0x1a8] sm:$0xff]  ;;  %v991_v62 = vpack.c.bf16 %v506_v55, %v503_v54  ;;  %v509_v63 = vld [vmem:[%s1428_s7 + $0xc0] sm:$0xff]  ;;  %v993_v3 = vpack.c.bf16 %v513_v57, %v510_v56 }
  0x56   : > { %v487_v60 = vld [vmem:[%s1428_s7 + $0x10] sm:$0xff]  ;;  %v490_v61 = vld [vmem:[%s1428_s7 + $0x28] sm:$0xff]  ;;  %v512_v0 = vld [vmem:[%s1428_s7 + $0xd8] sm:$0xff]  ;;  %v1041_v1 = vpack.c.bf16 %v538_v59, %v535_v58 }
  0x57   : > { %984 = vmatpush1.bf16.msra.mxu0 %v983_v46  ;;  %v1043_v2 = vpack.c.bf16 %v490_v61, %v487_v60  ;;  %v516_v4 = vld [vmem:[%s1428_s7 + $0xf8] sm:$0xff]  ;;  %v541_v5 = vld [vmem:[%s1428_s7 + $0x1c0] sm:$0xff]  ;;  %v519_v7 = vld [vmem:[%s1428_s7 + $0x110] sm:$0xff]  ;;  %v995_v12 = vpack.c.bf16 %v512_v0, %v509_v63 }
  0x58   : > { %986 = vmatprep.subr.bf16.mxu0 %v985_v47  ;;  %v544_v6 = vld [vmem:[%s1428_s7 + $0x1d8] sm:$0xff]  ;;  %1042 = vmatprep.subr.bf16.mxu1 %v1041_v1  ;;  %v493_v9 = vld [vmem:[%s1428_s7 + $0x40] sm:$0xff]  ;;  %v547_v13 = vld [vmem:[%s1428_s7 + $0x1f0] sm:$0xff]  ;;  %v997_v16 = vpack.c.bf16 %v519_v7, %v516_v4 }
  0x59   : > { %v1045_v8 = vpack.c.bf16 %v544_v6, %v541_v5  ;;  %v496_v10 = vld [vmem:[%s1428_s7 + $0x58] sm:$0xff]  ;;  %1044 = vmatpush3.bf16.msra.mxu1 %v1043_v2  ;;  %v550_v14 = vld [vmem:[%s1428_s7 + $0x208] sm:$0xff]  ;;  %v499_v15 = vld [vmem:[%s1428_s7 + $0x70] sm:$0xff] }
  0x5a   : > { %v1047_v11 = vpack.c.bf16 %v496_v10, %v493_v9  ;;  %v515_v17 = vld [vmem:[%s1428_s7 + $0xf0] sm:$0xff]  ;;  %v518_v18 = vld [vmem:[%s1428_s7 + $0x108] sm:$0xff]  ;;  %v1049_v19 = vpack.c.bf16 %v550_v14, %v547_v13  ;;  %v525_v22 = vld [vmem:[%s1428_s7 + $0x140] sm:$0xff] }
  0x5b   : > { %988 = vmatpush1.bf16.msra.mxu0 %v987_v52  ;;  %1046 = vmatprep.subr.bf16.mxu1 %v1045_v8  ;;  %v502_v20 = vld [vmem:[%s1428_s7 + $0x88] sm:$0xff]  ;;  %v553_v23 = vld [vmem:[%s1428_s7 + $0x220] sm:$0xff]  ;;  %v556_v25 = vld [vmem:[%s1428_s7 + $0x238] sm:$0xff]  ;;  %v999_v26 = vpack.c.bf16 %v518_v18, %v515_v17 }
  0x5c   : > { %990 = vmatprep.subr.bf16.mxu0 %v989_v53  ;;  %v522_v21 = vld [vmem:[%s1428_s7 + $0x128] sm:$0xff]  ;;  %v1051_v24 = vpack.c.bf16 %v502_v20, %v499_v15  ;;  %v521_v27 = vld [vmem:[%s1428_s7 + $0x120] sm:$0xff]  ;;  %v1053_v28 = vpack.c.bf16 %v556_v25, %v553_v23  ;;  %v508_v30 = vld [vmem:[%s1428_s7 + $0xb8] sm:$0xff] }
  0x5d   : > { %1048 = vmatpush3.bf16.msra.mxu1 %v1047_v11  ;;  %v505_v29 = vld [vmem:[%s1428_s7 + $0xa0] sm:$0xff]  ;;  %v1001_v31 = vpack.c.bf16 %v525_v22, %v522_v21  ;;  %v524_v32 = vld [vmem:[%s1428_s7 + $0x138] sm:$0xff]  ;;  %v559_v33 = vld [vmem:[%s1428_s7 + $0x250] sm:$0xff] }
  0x5e   : > { %1050 = vmatprep.subr.bf16.mxu1 %v1049_v19  ;;  %v562_v34 = vld [vmem:[%s1428_s7 + $0x268] sm:$0xff]  ;;  %v528_v35 = vld [vmem:[%s1428_s7 + $0x158] sm:$0xff]  ;;  %v531_v36 = vld [vmem:[%s1428_s7 + $0x170] sm:$0xff]  ;;  %v1055_v37 = vpack.c.bf16 %v508_v30, %v505_v29  ;;  %v1003_v38 = vpack.c.bf16 %v524_v32, %v521_v27 }
  0x5f   : > { %992 = vmatpush1.bf16.msra.mxu0 %v991_v62  ;;  %v527_v39 = vld [vmem:[%s1428_s7 + $0x150] sm:$0xff]  ;;  %v1057_v40 = vpack.c.bf16 %v562_v34, %v559_v33  ;;  %v514_v42 = vld [vmem:[%s1428_s7 + $0xe8] sm:$0xff]  ;;  %v1005_v43 = vpack.c.bf16 %v531_v36, %v528_v35  ;;  %v565_v45 = vld [vmem:[%s1428_s7 + $0x280] sm:$0xff] }
  0x60   : > { %994 = vmatprep.subr.bf16.mxu0 %v993_v3  ;;  %v511_v41 = vld [vmem:[%s1428_s7 + $0xd0] sm:$0xff]  ;;  %v530_v44 = vld [vmem:[%s1428_s7 + $0x168] sm:$0xff]  ;;  %v568_v46 = vld [vmem:[%s1428_s7 + $0x298] sm:$0xff] }
  0x61   : > { %1052 = vmatpush3.bf16.msra.mxu1 %v1051_v24  ;;  %v534_v47 = vld [vmem:[%s1428_s7 + $0x188] sm:$0xff]  ;;  %v537_v48 = vld [vmem:[%s1428_s7 + $0x1a0] sm:$0xff]  ;;  %v1059_v49 = vpack.c.bf16 %v514_v42, %v511_v41  ;;  %v1007_v50 = vpack.c.bf16 %v530_v44, %v527_v39  ;;  %v1061_v52 = vpack.c.bf16 %v568_v46, %v565_v45  ;;  %v520_v54 = vld [vmem:[%s1428_s7 + $0x118] sm:$0xff] }
  0x62   : > { %1054 = vmatprep.subr.bf16.mxu1 %v1053_v28  ;;  %v533_v51 = vld [vmem:[%s1428_s7 + $0x180] sm:$0xff]  ;;  %v1009_v55 = vpack.c.bf16 %v537_v48, %v534_v47  ;;  %v536_v56 = vld [vmem:[%s1428_s7 + $0x198] sm:$0xff]  ;;  %v571_v57 = vld [vmem:[%s1428_s7 + $0x2b0] sm:$0xff] }
  0x63   : > { %996 = vmatpush1.bf16.msra.mxu0 %v995_v12  ;;  %v517_v53 = vld [vmem:[%s1428_s7 + $0x100] sm:$0xff]  ;;  %v574_v58 = vld [vmem:[%s1428_s7 + $0x2c8] sm:$0xff]  ;;  %v540_v59 = vld [vmem:[%s1428_s7 + $0x1b8] sm:$0xff]  ;;  %v1011_v62 = vpack.c.bf16 %v536_v56, %v533_v51 }
  0x64   : > { %998 = vmatprep.subr.bf16.mxu0 %v997_v16  ;;  %v543_v60 = vld [vmem:[%s1428_s7 + $0x1d0] sm:$0xff]  ;;  %v1063_v61 = vpack.c.bf16 %v520_v54, %v517_v53  ;;  %v1065_v0 = vpack.c.bf16 %v574_v58, %v571_v57  ;;  %v526_v2 = vld [vmem:[%s1428_s7 + $0x148] sm:$0xff]  ;;  %v577_v5 = vld [vmem:[%s1428_s7 + $0x2e0] sm:$0xff] }
  0x65   : > { %1056 = vmatpush3.bf16.msra.mxu1 %v1055_v37  ;;  %v539_v63 = vld [vmem:[%s1428_s7 + $0x1b0] sm:$0xff]  ;;  %v1013_v3 = vpack.c.bf16 %v543_v60, %v540_v59  ;;  %v542_v4 = vld [vmem:[%s1428_s7 + $0x1c8] sm:$0xff]  ;;  %v580_v6 = vld [vmem:[%s1428_s7 + $0x2f8] sm:$0xff] }
  0x66   : > { %1058 = vmatprep.subr.bf16.mxu1 %v1057_v40  ;;  %v523_v1 = vld [vmem:[%s1428_s7 + $0x130] sm:$0xff]  ;;  %v546_v7 = vld [vmem:[%s1428_s7 + $0x1e8] sm:$0xff]  ;;  %v549_v8 = vld [vmem:[%s1428_s7 + $0x200] sm:$0xff]  ;;  %v1015_v10 = vpack.c.bf16 %v542_v4, %v539_v63  ;;  %v1069_v11 = vpack.c.bf16 %v580_v6, %v577_v5 }
  0x67   : > { %1000 = vmatpush1.bf16.msra.mxu0 %v999_v26  ;;  %v1067_v9 = vpack.c.bf16 %v526_v2, %v523_v1  ;;  %v529_v12 = vld [vmem:[%s1428_s7 + $0x160] sm:$0xff]  ;;  %v532_v13 = vld [vmem:[%s1428_s7 + $0x178] sm:$0xff]  ;;  %v1017_v14 = vpack.c.bf16 %v549_v8, %v546_v7  ;;  %v555_v18 = vld [vmem:[%s1428_s7 + $0x230] sm:$0xff] }
  0x68   : > { %1002 = vmatprep.subr.bf16.mxu0 %v1001_v31  ;;  %v545_v15 = vld [vmem:[%s1428_s7 + $0x1e0] sm:$0xff]  ;;  %v548_v16 = vld [vmem:[%s1428_s7 + $0x1f8] sm:$0xff]  ;;  %v1071_v19 = vpack.c.bf16 %v532_v13, %v529_v12  ;;  %v551_v22 = vld [vmem:[%s1428_s7 + $0x210] sm:$0xff] }
  0x69   : > { %1060 = vmatpush3.bf16.msra.mxu1 %v1059_v49  ;;  %v552_v17 = vld [vmem:[%s1428_s7 + $0x218] sm:$0xff]  ;;  %v1019_v20 = vpack.c.bf16 %v548_v16, %v545_v15  ;;  %v554_v23 = vld [vmem:[%s1428_s7 + $0x228] sm:$0xff]  ;;  %v561_v25 = vld [vmem:[%s1428_s7 + $0x260] sm:$0xff] }
  0x6a   : > { %1062 = vmatprep.subr.bf16.mxu1 %v1061_v52  ;;  %v1021_v21 = vpack.c.bf16 %v555_v18, %v552_v17  ;;  %v558_v24 = vld [vmem:[%s1428_s7 + $0x248] sm:$0xff]  ;;  %v481_v26 = vld [vmem:[%s1562_s0] sm:$0xff]  ;;  %v1023_v27 = vpack.c.bf16 %v554_v23, %v551_v22  ;;  %v484_v28 = vld [vmem:[%s1562_s0 + $0x18] sm:$0xff]  ;;  %v756_v52 = vlaneseq }
  0x6b   : > { %1004 = vmatpush1.bf16.msra.mxu0 %v1003_v38  ;;  %v1025_v29 = vpack.c.bf16 %v561_v25, %v558_v24  ;;  %v557_v30 = vld [vmem:[%s1428_s7 + $0x240] sm:$0xff]  ;;  %v560_v31 = vld [vmem:[%s1428_s7 + $0x258] sm:$0xff]  ;;  %v567_v33 = vld [vmem:[%s1428_s7 + $0x290] sm:$0xff] }
  0x6c   : > { %1006 = vmatprep.subr.bf16.mxu0 %v1005_v43  ;;  %v564_v32 = vld [vmem:[%s1428_s7 + $0x278] sm:$0xff]  ;;  %v483_v34 = vld [vmem:[%s1562_s0 + $0x10] sm:$0xff]  ;;  %v1027_v35 = vpack.c.bf16 %v560_v31, %v557_v30  ;;  %v566_v38 = vld [vmem:[%s1428_s7 + $0x288] sm:$0xff]  ;;  %v757_v53 = vshrl.u32 %v756_v52, 7 }
  0x6d   : > { %1064 = vmatpush3.bf16.msra.mxu1 %v1063_v61  ;;  %v1029_v36 = vpack.c.bf16 %v567_v33, %v564_v32  ;;  %v563_v37 = vld [vmem:[%s1428_s7 + $0x270] sm:$0xff]  ;;  %v570_v39 = vld [vmem:[%s1428_s7 + $0x2a8] sm:$0xff]  ;;  %v573_v40 = vld [vmem:[%s1428_s7 + $0x2c0] sm:$0xff] }
  0x6e   : > { %1066 = vmatprep.subr.bf16.mxu1 %v1065_v0  ;;  %v1031_v41 = vpack.c.bf16 %v566_v38, %v563_v37  ;;  %v1033_v42 = vpack.c.bf16 %v573_v40, %v570_v39  ;;  %v569_v43 = vld [vmem:[%s1428_s7 + $0x2a0] sm:$0xff]  ;;  %v572_v44 = vld [vmem:[%s1428_s7 + $0x2b8] sm:$0xff]  ;;  %v579_v46 = vld [vmem:[%s1428_s7 + $0x2f0] sm:$0xff]  ;;  %v766_v54 = vsub.s32 2, %v757_v53  ;;  %v758_v1 = vsub.s32 0, %v757_v53 }
  0x6f   : > { %1008 = vmatpush1.bf16.msra.mxu0 %v1007_v50  ;;  %v576_v45 = vld [vmem:[%s1428_s7 + $0x2d8] sm:$0xff]  ;;  %v1035_v47 = vpack.c.bf16 %v572_v44, %v569_v43  ;;  %v575_v49 = vld [vmem:[%s1428_s7 + $0x2d0] sm:$0xff]  ;;  %v578_v50 = vld [vmem:[%s1428_s7 + $0x2e8] sm:$0xff]  ;;  %v762_v2 = vsub.s32 1, %v757_v53 }
  0x70   : > { %1010 = vmatprep.subr.bf16.mxu0 %v1009_v55  ;;  %v1037_v48 = vpack.c.bf16 %v579_v46, %v576_v45  ;;  %v1039_v51 = vpack.c.bf16 %v578_v50, %v575_v49  ;;  %v754_v55 = vld [vmem:[%s461_s25] sm:$0x7] }
  0x71   : > { %1068 = vmatpush3.bf16.msra.mxu1 %v1067_v9  ;;  %v767_v57 = vrot.slane %v754_v55, %v766_v54  ;;  %v763_v4 = vrot.slane %v754_v55, %v762_v2 }
  0x72   : > { %1070 = vmatprep.subr.bf16.mxu1 %v1069_v11 }
  0x73   : > { %1012 = vmatpush1.bf16.msra.mxu0 %v1011_v62 }
  0x74   : > { %1014 = vmatprep.subr.bf16.mxu0 %v1013_v3  ;;  %v759_v3 = vrot.slane %v754_v55, %v758_v1 }
  0x75   : > { %1072 = vmatpush3.bf16.msra.mxu1 %v1071_v19 }
  0x77   : > { %1016 = vmatpush1.bf16.msra.mxu0 %v1015_v10 }
  0x78   : > { %1018 = vmatprep.subr.bf16.mxu0 %v1017_v14  ;;  %723 = vmatmul.mubr.f32.vlgmr.msra.gmra.mrb[0].mxu1 %v481_v26 }
  0x79   : > { %727 = vmatprep.mubr.f32.mxu1 %v484_v28 }
  0x7b   : > { %1020 = vmatpush1.bf16.msra.mxu0 %v1019_v20 }
  0x7c   : > { %1022 = vmatprep.subr.bf16.mxu0 %v1021_v21  ;;  %728 = vmatmul.mubr.f32.gmra.mrb[2].mxu1 %v483_v34 }
  0x7f   : > { %1024 = vmatpush1.bf16.msra.mxu0 %v1023_v27 }
  0x80   : > { %1026 = vmatprep.subr.bf16.mxu0 %v1025_v29 }
  0x83   : > { %1028 = vmatpush1.bf16.msra.mxu0 %v1027_v35 }
  0x84   : > { %1030 = vmatprep.subr.bf16.mxu0 %v1029_v36 }
  0x87   : > { %1032 = vmatpush1.bf16.msra.mxu0 %v1031_v41 }
  0x88   : > { %1034 = vmatprep.subr.bf16.mxu0 %v1033_v42 }
  0x8b   : > { %1036 = vmatpush1.bf16.msra.mxu0 %v1035_v47 }
  0x8c   : > { %1038 = vmatprep.subr.bf16.mxu0 %v1037_v48 }
  0x8f   : > { %1040 = vmatpush1.bf16.msra.mxu0 %v1039_v51 }
  0x92   : > { %646 = vmatmul.mubr.f32.vlgmr.msra.gmra.mrb[0].mxu0 %v481_v26 }
  0x93   : > { %651 = vmatprep.mubr.f32.mxu0 %v484_v28 }
  0x96   : > { %652 = vmatmul.mubr.f32.gmra.mrb[2].mxu0 %v483_v34 }
 0x14b   : > { %v971_v56 = vpop.f32.mrb[0].mxu1 }
 0x14c   : > { %v972_v58 = vpop.f32.mrb[1].mxu1 }
 0x14d   : > { %v973_v59 = vadd.f32 %v972_v58, %v971_v56 }
 0x14f   : > { %v773_v60 = vadd.f32 %v973_v59, %v767_v57  ;;  %v974_v61 = vpop.f32.mrb[2].mxu1 }
 0x150   : > { %v975_v62 = vpop.f32.mrb[3].mxu1 }
 0x151   : > { %779 = vst [vmem:[%s443_s27 + $0x10] sm:$0xff] %v773_v60  ;;  %v976_v63 = vadd.f32 %v975_v62, %v974_v61 }
 0x153   : > { %v776_v0 = vadd.f32 %v976_v63, %v767_v57 }
 0x155   : > { %782 = vst [vmem:[%s443_s27 + $0x28] sm:$0xff] %v776_v0 }
 0x158   : > { %v812_v15 = vld [vmem:[%s443_s27 + $0x10] sm:$0xff] (%p1211_p6) }
 0x159   : > { %813 = vst [vmem:[%s795_s30 + $0x10] sm:$0xff] (%p1211_p6), %v812_v15 }
 0x15c   : > { %v818_v18 = vld [vmem:[%s443_s27 + $0x28] sm:$0xff] (%p1211_p6) }
 0x15d   : > { %819 = vst [vmem:[%s795_s30 + $0x40] sm:$0xff] (%p1211_p6), %v818_v18 }
 0x165   : > { %v647_v5 = vpop.f32.mrb[0].mxu0 }
 0x166   : > { %v771_v6 = vadd.f32 %v759_v3, %v647_v5  ;;  %v649_v7 = vpop.f32.mrb[1].mxu0 }
 0x167   : > { %v772_v8 = vadd.f32 %v763_v4, %v649_v7  ;;  %789 = sbr.rel (!%p1211_p6) target bundleno = 374 (0x176), region = 67 }
 0x168   : > { %777 = vst [vmem:[%s443_s27] sm:$0xff] %v771_v6 }
 0x169   : > { %778 = vst [vmem:[%s443_s27 + $0x8] sm:$0xff] %v772_v8  ;;  %v653_v9 = vpop.f32.mrb[2].mxu0 }
 0x16a   : > { %v774_v10 = vadd.f32 %v759_v3, %v653_v9  ;;  %v655_v11 = vpop.f32.mrb[3].mxu0 }
 0x16b   : > { %v775_v12 = vadd.f32 %v763_v4, %v655_v11 }
 0x16c   : > { %780 = vst [vmem:[%s443_s27 + $0x18] sm:$0xff] %v774_v10 }
 0x16d   : > { %781 = vst [vmem:[%s443_s27 + $0x20] sm:$0xff] %v775_v12 }
 0x16f   : > { %v808_v13 = vld [vmem:[%s443_s27] sm:$0xff] }
 0x170   : > { %v810_v14 = vld [vmem:[%s443_s27 + $0x8] sm:$0xff]  ;;  %809 = vst [vmem:[%s795_s30] sm:$0xff] %v808_v13 }
 0x171   : > { %811 = vst [vmem:[%s795_s30 + $0x8] sm:$0xff] %v810_v14 }
 0x173   : > { %v814_v16 = vld [vmem:[%s443_s27 + $0x18] sm:$0xff] }
 0x174   : > { %v816_v17 = vld [vmem:[%s443_s27 + $0x20] sm:$0xff]  ;;  %815 = vst [vmem:[%s795_s30 + $0x30] sm:$0xff] %v814_v16 }
 0x175   : > { %817 = vst [vmem:[%s795_s30 + $0x38] sm:$0xff] %v816_v17 }
 0x176 PF: > { %s13_s16 = sadd.s32 1, %s1154_s16   ;;  %s1567_s12 = smov %s1142_s13 }
 0x177   : > { %p10_p12 = scmp.ge.s32.totalorder %s13_s16, 4   ;;  %s1568_s13 = smov %s1216_s22 }
 0x178   : > { %s1569_s14 = smov %s1150_s15  ;;  %s1570_s15 = smov %s1572_s17 }
 0x179   :  { %12 = sbr.rel (!%p10_p12) target bundleno = 3 (0x3), region = 127 }

// kernel: transformer_encoder_forward.34
= control target key start
LH: loop header
LB: loop body
LE: loop exit
PB: predicated region body
PF: predicated region fallthrough
CT: control target
= control target key end

     0   :  { %s1059_s1 = inlined_call_operand.vmem [shape: f32[512,256], index: 1, kind: input, shape index: {}]   ;;  %s1060_s0 = inlined_call_operand.vmem [shape: f32[16,512], index: 0, kind: input, shape index: {}]   ;;  %s1061_s2 = inlined_call_operand.vmem [shape: f32[1,256], index: 2, kind: input, shape index: {}]   ;;  %s1062_s3 = inlined_call_operand.vmem [shape: f32[16,256], index: 3, kind: input, shape index: {}]   ;;  %s1063_s4 = inlined_call_operand.vmem [shape: f32[1,256], index: 4, kind: input, shape index: {}]   ;;  %s1064_s5 = inlined_call_operand.vmem [shape: f32[1,256], index: 5, kind: input, shape index: {}]   ;;  %s1065_s6 = inlined_call_operand.vmem [shape: f32[16,256], index: 6, kind: output, shape index: {}]  }
   0x1   :  { %v44_v0 = vld [vmem:[%s1059_s1 + $0x8] sm:$0xff]  ;;  %v46_v1 = vld [vmem:[%s1059_s1 + $0x18] sm:$0xff]  ;;  %v43_v5 = vld [vmem:[%s1059_s1] sm:$0xff] }
   0x2   :  { %v108_v2 = vld [vmem:[%s1059_s1 + $0x208] sm:$0xff]  ;;  %v437_v3 = vpack.c.bf16 %v46_v1, %v44_v0  ;;  %v110_v4 = vld [vmem:[%s1059_s1 + $0x218] sm:$0xff]  ;;  %v45_v6 = vld [vmem:[%s1059_s1 + $0x10] sm:$0xff] }
   0x3   :  { %v501_v7 = vpack.c.bf16 %v110_v4, %v108_v2  ;;  %v439_v8 = vpack.c.bf16 %v45_v6, %v43_v5  ;;  %v107_v9 = vld [vmem:[%s1059_s1 + $0x200] sm:$0xff]  ;;  %v109_v10 = vld [vmem:[%s1059_s1 + $0x210] sm:$0xff]  ;;  %v48_v11 = vld [vmem:[%s1059_s1 + $0x28] sm:$0xff] }
   0x4   :  { %438 = vmatprep.subr.bf16.mxu1 %v437_v3  ;;  %v503_v12 = vpack.c.bf16 %v109_v10, %v107_v9  ;;  %v50_v13 = vld [vmem:[%s1059_s1 + $0x38] sm:$0xff]  ;;  %v112_v14 = vld [vmem:[%s1059_s1 + $0x228] sm:$0xff]  ;;  %v47_v18 = vld [vmem:[%s1059_s1 + $0x20] sm:$0xff] }
   0x5   :  { %v114_v15 = vld [vmem:[%s1059_s1 + $0x238] sm:$0xff]  ;;  %502 = vmatprep.subr.bf16.mxu0 %v501_v7  ;;  %440 = vmatpush1.bf16.msra.mxu1 %v439_v8  ;;  %v441_v16 = vpack.c.bf16 %v50_v13, %v48_v11  ;;  %v49_v19 = vld [vmem:[%s1059_s1 + $0x30] sm:$0xff]  ;;  %v111_v20 = vld [vmem:[%s1059_s1 + $0x220] sm:$0xff] }
   0x6   :  { %v505_v17 = vpack.c.bf16 %v114_v15, %v112_v14  ;;  %504 = vmatpush1.bf16.msra.mxu0 %v503_v12  ;;  %v443_v21 = vpack.c.bf16 %v49_v19, %v47_v18  ;;  %v113_v22 = vld [vmem:[%s1059_s1 + $0x230] sm:$0xff]  ;;  %v52_v23 = vld [vmem:[%s1059_s1 + $0x48] sm:$0xff]  ;;  %v54_v24 = vld [vmem:[%s1059_s1 + $0x58] sm:$0xff] }
   0x7   :  { %442 = vmatprep.subr.bf16.mxu1 %v441_v16  ;;  %v507_v25 = vpack.c.bf16 %v113_v22, %v111_v20  ;;  %v445_v26 = vpack.c.bf16 %v54_v24, %v52_v23  ;;  %v116_v27 = vld [vmem:[%s1059_s1 + $0x248] sm:$0xff]  ;;  %v118_v28 = vld [vmem:[%s1059_s1 + $0x258] sm:$0xff]  ;;  %v51_v29 = vld [vmem:[%s1059_s1 + $0x40] sm:$0xff] }
   0x8   :  { %506 = vmatprep.subr.bf16.mxu0 %v505_v17  ;;  %v509_v30 = vpack.c.bf16 %v118_v28, %v116_v27  ;;  %v53_v31 = vld [vmem:[%s1059_s1 + $0x50] sm:$0xff]  ;;  %v115_v32 = vld [vmem:[%s1059_s1 + $0x240] sm:$0xff]  ;;  %v56_v35 = vld [vmem:[%s1059_s1 + $0x68] sm:$0xff] }
   0x9   :  { %v117_v33 = vld [vmem:[%s1059_s1 + $0x250] sm:$0xff]  ;;  %444 = vmatpush1.bf16.msra.mxu1 %v443_v21  ;;  %v447_v34 = vpack.c.bf16 %v53_v31, %v51_v29  ;;  %v58_v36 = vld [vmem:[%s1059_s1 + $0x78] sm:$0xff]  ;;  %v120_v37 = vld [vmem:[%s1059_s1 + $0x268] sm:$0xff] }
   0xa   :  { %508 = vmatpush1.bf16.msra.mxu0 %v507_v25  ;;  %446 = vmatprep.subr.bf16.mxu1 %v445_v26  ;;  %v511_v38 = vpack.c.bf16 %v117_v33, %v115_v32  ;;  %v449_v39 = vpack.c.bf16 %v58_v36, %v56_v35  ;;  %v122_v40 = vld [vmem:[%s1059_s1 + $0x278] sm:$0xff]  ;;  %v55_v41 = vld [vmem:[%s1059_s1 + $0x60] sm:$0xff]  ;;  %v57_v42 = vld [vmem:[%s1059_s1 + $0x70] sm:$0xff] }
   0xb   :  { %510 = vmatprep.subr.bf16.mxu0 %v509_v30  ;;  %v513_v43 = vpack.c.bf16 %v122_v40, %v120_v37  ;;  %v119_v44 = vld [vmem:[%s1059_s1 + $0x260] sm:$0xff]  ;;  %v121_v45 = vld [vmem:[%s1059_s1 + $0x270] sm:$0xff]  ;;  %v60_v46 = vld [vmem:[%s1059_s1 + $0x88] sm:$0xff]  ;;  %v451_v50 = vpack.c.bf16 %v57_v42, %v55_v41 }
   0xc   :  { %v62_v47 = vld [vmem:[%s1059_s1 + $0x98] sm:$0xff]  ;;  %v124_v48 = vld [vmem:[%s1059_s1 + $0x288] sm:$0xff]  ;;  %v515_v51 = vpack.c.bf16 %v121_v45, %v119_v44  ;;  %v59_v53 = vld [vmem:[%s1059_s1 + $0x80] sm:$0xff] }
   0xd   :  { %v126_v49 = vld [vmem:[%s1059_s1 + $0x298] sm:$0xff]  ;;  %448 = vmatpush1.bf16.msra.mxu1 %v447_v34  ;;  %v453_v52 = vpack.c.bf16 %v62_v47, %v60_v46  ;;  %v61_v54 = vld [vmem:[%s1059_s1 + $0x90] sm:$0xff]  ;;  %v123_v55 = vld [vmem:[%s1059_s1 + $0x280] sm:$0xff] }
   0xe   :  { %512 = vmatpush1.bf16.msra.mxu0 %v511_v38  ;;  %450 = vmatprep.subr.bf16.mxu1 %v449_v39  ;;  %v517_v56 = vpack.c.bf16 %v126_v49, %v124_v48  ;;  %v125_v57 = vld [vmem:[%s1059_s1 + $0x290] sm:$0xff]  ;;  %v64_v58 = vld [vmem:[%s1059_s1 + $0xa8] sm:$0xff]  ;;  %v66_v59 = vld [vmem:[%s1059_s1 + $0xb8] sm:$0xff]  ;;  %v455_v62 = vpack.c.bf16 %v61_v54, %v59_v53 }
   0xf   :  { %514 = vmatprep.subr.bf16.mxu0 %v513_v43  ;;  %v128_v60 = vld [vmem:[%s1059_s1 + $0x2a8] sm:$0xff]  ;;  %v130_v61 = vld [vmem:[%s1059_s1 + $0x2b8] sm:$0xff]  ;;  %v519_v63 = vpack.c.bf16 %v125_v57, %v123_v55  ;;  %v457_v0 = vpack.c.bf16 %v66_v59, %v64_v58  ;;  %v63_v1 = vld [vmem:[%s1059_s1 + $0xa0] sm:$0xff] }
  0x10   :  { %v65_v2 = vld [vmem:[%s1059_s1 + $0xb0] sm:$0xff]  ;;  %v127_v3 = vld [vmem:[%s1059_s1 + $0x2a0] sm:$0xff]  ;;  %v521_v4 = vpack.c.bf16 %v130_v61, %v128_v60  ;;  %v68_v6 = vld [vmem:[%s1059_s1 + $0xc8] sm:$0xff] }
  0x11   :  { %452 = vmatpush1.bf16.msra.mxu1 %v451_v50  ;;  %v129_v5 = vld [vmem:[%s1059_s1 + $0x2b0] sm:$0xff]  ;;  %v70_v7 = vld [vmem:[%s1059_s1 + $0xd8] sm:$0xff]  ;;  %v132_v8 = vld [vmem:[%s1059_s1 + $0x2c8] sm:$0xff]  ;;  %v459_v10 = vpack.c.bf16 %v65_v2, %v63_v1 }
  0x12   :  { %516 = vmatpush1.bf16.msra.mxu0 %v515_v51  ;;  %454 = vmatprep.subr.bf16.mxu1 %v453_v52  ;;  %v134_v9 = vld [vmem:[%s1059_s1 + $0x2d8] sm:$0xff]  ;;  %v523_v11 = vpack.c.bf16 %v129_v5, %v127_v3  ;;  %v461_v12 = vpack.c.bf16 %v70_v7, %v68_v6  ;;  %v67_v13 = vld [vmem:[%s1059_s1 + $0xc0] sm:$0xff]  ;;  %v69_v14 = vld [vmem:[%s1059_s1 + $0xd0] sm:$0xff] }
  0x13   :  { %518 = vmatprep.subr.bf16.mxu0 %v517_v56  ;;  %v131_v15 = vld [vmem:[%s1059_s1 + $0x2c0] sm:$0xff]  ;;  %v525_v16 = vpack.c.bf16 %v134_v9, %v132_v8  ;;  %v133_v17 = vld [vmem:[%s1059_s1 + $0x2d0] sm:$0xff]  ;;  %v72_v18 = vld [vmem:[%s1059_s1 + $0xe8] sm:$0xff]  ;;  %v463_v22 = vpack.c.bf16 %v69_v14, %v67_v13 }
  0x14   :  { %v74_v19 = vld [vmem:[%s1059_s1 + $0xf8] sm:$0xff]  ;;  %v136_v20 = vld [vmem:[%s1059_s1 + $0x2e8] sm:$0xff]  ;;  %v527_v23 = vpack.c.bf16 %v133_v17, %v131_v15  ;;  %v71_v25 = vld [vmem:[%s1059_s1 + $0xe0] sm:$0xff] }
  0x15   :  { %456 = vmatpush1.bf16.msra.mxu1 %v455_v62  ;;  %v138_v21 = vld [vmem:[%s1059_s1 + $0x2f8] sm:$0xff]  ;;  %v465_v24 = vpack.c.bf16 %v74_v19, %v72_v18  ;;  %v73_v26 = vld [vmem:[%s1059_s1 + $0xf0] sm:$0xff]  ;;  %v135_v27 = vld [vmem:[%s1059_s1 + $0x2e0] sm:$0xff] }
  0x16   :  { %520 = vmatpush1.bf16.msra.mxu0 %v519_v63  ;;  %458 = vmatprep.subr.bf16.mxu1 %v457_v0  ;;  %v529_v28 = vpack.c.bf16 %v138_v21, %v136_v20  ;;  %v137_v29 = vld [vmem:[%s1059_s1 + $0x2f0] sm:$0xff]  ;;  %v76_v30 = vld [vmem:[%s1059_s1 + $0x108] sm:$0xff]  ;;  %v78_v31 = vld [vmem:[%s1059_s1 + $0x118] sm:$0xff]  ;;  %v467_v34 = vpack.c.bf16 %v73_v26, %v71_v25 }
  0x17   :  { %522 = vmatprep.subr.bf16.mxu0 %v521_v4  ;;  %v140_v32 = vld [vmem:[%s1059_s1 + $0x308] sm:$0xff]  ;;  %v142_v33 = vld [vmem:[%s1059_s1 + $0x318] sm:$0xff]  ;;  %v531_v35 = vpack.c.bf16 %v137_v29, %v135_v27  ;;  %v469_v36 = vpack.c.bf16 %v78_v31, %v76_v30  ;;  %v75_v37 = vld [vmem:[%s1059_s1 + $0x100] sm:$0xff] }
  0x18   :  { %v77_v38 = vld [vmem:[%s1059_s1 + $0x110] sm:$0xff]  ;;  %v139_v39 = vld [vmem:[%s1059_s1 + $0x300] sm:$0xff]  ;;  %v533_v40 = vpack.c.bf16 %v142_v33, %v140_v32  ;;  %v80_v42 = vld [vmem:[%s1059_s1 + $0x128] sm:$0xff] }
  0x19   :  { %460 = vmatpush1.bf16.msra.mxu1 %v459_v10  ;;  %v141_v41 = vld [vmem:[%s1059_s1 + $0x310] sm:$0xff]  ;;  %v82_v43 = vld [vmem:[%s1059_s1 + $0x138] sm:$0xff]  ;;  %v144_v44 = vld [vmem:[%s1059_s1 + $0x328] sm:$0xff]  ;;  %v471_v46 = vpack.c.bf16 %v77_v38, %v75_v37 }
  0x1a   :  { %524 = vmatpush1.bf16.msra.mxu0 %v523_v11  ;;  %462 = vmatprep.subr.bf16.mxu1 %v461_v12  ;;  %v146_v45 = vld [vmem:[%s1059_s1 + $0x338] sm:$0xff]  ;;  %v535_v47 = vpack.c.bf16 %v141_v41, %v139_v39  ;;  %v473_v48 = vpack.c.bf16 %v82_v43, %v80_v42  ;;  %v79_v49 = vld [vmem:[%s1059_s1 + $0x120] sm:$0xff]  ;;  %v81_v50 = vld [vmem:[%s1059_s1 + $0x130] sm:$0xff] }
  0x1b   :  { %526 = vmatprep.subr.bf16.mxu0 %v525_v16  ;;  %v143_v51 = vld [vmem:[%s1059_s1 + $0x320] sm:$0xff]  ;;  %v537_v52 = vpack.c.bf16 %v146_v45, %v144_v44  ;;  %v145_v53 = vld [vmem:[%s1059_s1 + $0x330] sm:$0xff]  ;;  %v84_v54 = vld [vmem:[%s1059_s1 + $0x148] sm:$0xff]  ;;  %v475_v58 = vpack.c.bf16 %v81_v50, %v79_v49 }
  0x1c   :  { %v86_v55 = vld [vmem:[%s1059_s1 + $0x158] sm:$0xff]  ;;  %v148_v56 = vld [vmem:[%s1059_s1 + $0x348] sm:$0xff]  ;;  %v539_v59 = vpack.c.bf16 %v145_v53, %v143_v51  ;;  %v83_v61 = vld [vmem:[%s1059_s1 + $0x140] sm:$0xff] }
  0x1d   :  { %464 = vmatpush1.bf16.msra.mxu1 %v463_v22  ;;  %v150_v57 = vld [vmem:[%s1059_s1 + $0x358] sm:$0xff]  ;;  %v477_v60 = vpack.c.bf16 %v86_v55, %v84_v54  ;;  %v85_v62 = vld [vmem:[%s1059_s1 + $0x150] sm:$0xff]  ;;  %v147_v63 = vld [vmem:[%s1059_s1 + $0x340] sm:$0xff] }
  0x1e   :  { %528 = vmatpush1.bf16.msra.mxu0 %v527_v23  ;;  %466 = vmatprep.subr.bf16.mxu1 %v465_v24  ;;  %v541_v0 = vpack.c.bf16 %v150_v57, %v148_v56  ;;  %v149_v1 = vld [vmem:[%s1059_s1 + $0x350] sm:$0xff]  ;;  %v88_v2 = vld [vmem:[%s1059_s1 + $0x168] sm:$0xff]  ;;  %v90_v3 = vld [vmem:[%s1059_s1 + $0x178] sm:$0xff]  ;;  %v479_v6 = vpack.c.bf16 %v85_v62, %v83_v61 }
  0x1f   :  { %530 = vmatprep.subr.bf16.mxu0 %v529_v28  ;;  %v152_v4 = vld [vmem:[%s1059_s1 + $0x368] sm:$0xff]  ;;  %v154_v5 = vld [vmem:[%s1059_s1 + $0x378] sm:$0xff]  ;;  %v87_v7 = vld [vmem:[%s1059_s1 + $0x160] sm:$0xff]  ;;  %v543_v8 = vpack.c.bf16 %v149_v1, %v147_v63  ;;  %v481_v9 = vpack.c.bf16 %v90_v3, %v88_v2 }
  0x20   :  { %v89_v10 = vld [vmem:[%s1059_s1 + $0x170] sm:$0xff]  ;;  %v151_v11 = vld [vmem:[%s1059_s1 + $0x360] sm:$0xff]  ;;  %v545_v13 = vpack.c.bf16 %v154_v5, %v152_v4  ;;  %v92_v14 = vld [vmem:[%s1059_s1 + $0x188] sm:$0xff] }
  0x21   :  { %468 = vmatpush1.bf16.msra.mxu1 %v467_v34  ;;  %v153_v12 = vld [vmem:[%s1059_s1 + $0x370] sm:$0xff]  ;;  %v94_v15 = vld [vmem:[%s1059_s1 + $0x198] sm:$0xff]  ;;  %v36_v16 = vld [vmem:[%s1060_s0 + $0x8] sm:$0xff]  ;;  %v483_v20 = vpack.c.bf16 %v89_v10, %v87_v7 }
  0x22   :  { %532 = vmatpush1.bf16.msra.mxu0 %v531_v35  ;;  %470 = vmatprep.subr.bf16.mxu1 %v469_v36  ;;  %v156_v17 = vld [vmem:[%s1059_s1 + $0x388] sm:$0xff]  ;;  %v158_v18 = vld [vmem:[%s1059_s1 + $0x398] sm:$0xff]  ;;  %v547_v21 = vpack.c.bf16 %v153_v12, %v151_v11  ;;  %v485_v22 = vpack.c.bf16 %v94_v15, %v92_v14  ;;  %v91_v23 = vld [vmem:[%s1059_s1 + $0x180] sm:$0xff] }
  0x23   :  { %534 = vmatprep.subr.bf16.mxu0 %v533_v40  ;;  %235 = vmatprep.mubr.f32.mxu1 %v36_v16  ;;  %v38_v19 = vld [vmem:[%s1060_s0 + $0x18] sm:$0xff]  ;;  %v93_v24 = vld [vmem:[%s1059_s1 + $0x190] sm:$0xff]  ;;  %v155_v25 = vld [vmem:[%s1059_s1 + $0x380] sm:$0xff]  ;;  %v549_v26 = vpack.c.bf16 %v158_v18, %v156_v17 }
  0x24   :  { %312 = vmatprep.mubr.f32.mxu0 %v38_v19  ;;  %v157_v27 = vld [vmem:[%s1059_s1 + $0x390] sm:$0xff]  ;;  %v96_v28 = vld [vmem:[%s1059_s1 + $0x1a8] sm:$0xff]  ;;  %v98_v29 = vld [vmem:[%s1059_s1 + $0x1b8] sm:$0xff]  ;;  %v487_v32 = vpack.c.bf16 %v93_v24, %v91_v23 }
  0x25   :  { %472 = vmatpush1.bf16.msra.mxu1 %v471_v46  ;;  %v160_v30 = vld [vmem:[%s1059_s1 + $0x3a8] sm:$0xff]  ;;  %v162_v31 = vld [vmem:[%s1059_s1 + $0x3b8] sm:$0xff]  ;;  %v551_v33 = vpack.c.bf16 %v157_v27, %v155_v25  ;;  %v489_v34 = vpack.c.bf16 %v98_v29, %v96_v28  ;;  %v95_v35 = vld [vmem:[%s1059_s1 + $0x1a0] sm:$0xff] }
  0x26   :  { %536 = vmatpush1.bf16.msra.mxu0 %v535_v47  ;;  %474 = vmatprep.subr.bf16.mxu1 %v473_v48  ;;  %v97_v36 = vld [vmem:[%s1059_s1 + $0x1b0] sm:$0xff]  ;;  %v159_v37 = vld [vmem:[%s1059_s1 + $0x3a0] sm:$0xff]  ;;  %v553_v38 = vpack.c.bf16 %v162_v31, %v160_v30  ;;  %v100_v40 = vld [vmem:[%s1059_s1 + $0x1c8] sm:$0xff] }
  0x27   :  { %538 = vmatprep.subr.bf16.mxu0 %v537_v52  ;;  %v161_v39 = vld [vmem:[%s1059_s1 + $0x3b0] sm:$0xff]  ;;  %v102_v41 = vld [vmem:[%s1059_s1 + $0x1d8] sm:$0xff]  ;;  %v164_v42 = vld [vmem:[%s1059_s1 + $0x3c8] sm:$0xff]  ;;  %v491_v44 = vpack.c.bf16 %v97_v36, %v95_v35 }
  0x28   :  { %v166_v43 = vld [vmem:[%s1059_s1 + $0x3d8] sm:$0xff]  ;;  %v555_v45 = vpack.c.bf16 %v161_v39, %v159_v37  ;;  %v493_v46 = vpack.c.bf16 %v102_v41, %v100_v40  ;;  %v99_v47 = vld [vmem:[%s1059_s1 + $0x1c0] sm:$0xff]  ;;  %v101_v48 = vld [vmem:[%s1059_s1 + $0x1d0] sm:$0xff] }
  0x29   :  { %476 = vmatpush1.bf16.msra.mxu1 %v475_v58  ;;  %v163_v49 = vld [vmem:[%s1059_s1 + $0x3c0] sm:$0xff]  ;;  %v557_v50 = vpack.c.bf16 %v166_v43, %v164_v42  ;;  %v165_v51 = vld [vmem:[%s1059_s1 + $0x3d0] sm:$0xff]  ;;  %v104_v52 = vld [vmem:[%s1059_s1 + $0x1e8] sm:$0xff]  ;;  %v495_v56 = vpack.c.bf16 %v101_v48, %v99_v47 }
  0x2a   :  { %540 = vmatpush1.bf16.msra.mxu0 %v539_v59  ;;  %478 = vmatprep.subr.bf16.mxu1 %v477_v60  ;;  %v106_v53 = vld [vmem:[%s1059_s1 + $0x1f8] sm:$0xff]  ;;  %v168_v54 = vld [vmem:[%s1059_s1 + $0x3e8] sm:$0xff]  ;;  %v559_v57 = vpack.c.bf16 %v165_v51, %v163_v49  ;;  %v103_v59 = vld [vmem:[%s1059_s1 + $0x1e0] sm:$0xff] }
  0x2b   :  { %542 = vmatprep.subr.bf16.mxu0 %v541_v0  ;;  %v170_v55 = vld [vmem:[%s1059_s1 + $0x3f8] sm:$0xff]  ;;  %v497_v58 = vpack.c.bf16 %v106_v53, %v104_v52  ;;  %v105_v60 = vld [vmem:[%s1059_s1 + $0x1f0] sm:$0xff]  ;;  %v167_v62 = vld [vmem:[%s1059_s1 + $0x3e0] sm:$0xff] }
  0x2c   :  { %v561_v61 = vpack.c.bf16 %v170_v55, %v168_v54  ;;  %v169_v63 = vld [vmem:[%s1059_s1 + $0x3f0] sm:$0xff]  ;;  %v499_v0 = vpack.c.bf16 %v105_v60, %v103_v59  ;;  %v35_v2 = vld [vmem:[%s1060_s0] sm:$0xff]  ;;  %v40_v4 = vld [vmem:[%s1060_s0 + $0x28] sm:$0xff] }
  0x2d   :  { %480 = vmatpush1.bf16.msra.mxu1 %v479_v6  ;;  %v563_v1 = vpack.c.bf16 %v169_v63, %v167_v62  ;;  %v37_v3 = vld [vmem:[%s1060_s0 + $0x10] sm:$0xff]  ;;  %v42_v5 = vld [vmem:[%s1060_s0 + $0x38] sm:$0xff]  ;;  %v39_v6 = vld [vmem:[%s1060_s0 + $0x20] sm:$0xff] }
  0x2e   :  { %544 = vmatpush1.bf16.msra.mxu0 %v543_v8  ;;  %482 = vmatprep.subr.bf16.mxu1 %v481_v9  ;;  %v41_v7 = vld [vmem:[%s1060_s0 + $0x30] sm:$0xff]  ;;  %v342_v8 = vlaneseq  ;;  %v340_v11 = vld [vmem:[%s1061_s2] sm:$0x3]  ;;  %v357_v24 = vld [vmem:[%s1062_s3 + $0x8] sm:$0xff] }
  0x2f   :  { %546 = vmatprep.subr.bf16.mxu0 %v545_v13  ;;  %v359_v35 = vld [vmem:[%s1062_s3 + $0x18] sm:$0xff]  ;;  %v413_v62 = vld [vmem:[%s1064_s5] sm:$0x3] }
  0x30   :  { %v343_v9 = vshrl.u32 %v342_v8, 7 }
  0x31   :  { %484 = vmatpush1.bf16.msra.mxu1 %v483_v20 }
  0x32   :  { %548 = vmatpush1.bf16.msra.mxu0 %v547_v21  ;;  %486 = vmatprep.subr.bf16.mxu1 %v485_v22  ;;  %v1016_v10 = vsub.s32 0, %v343_v9  ;;  %v1021_v12 = vsub.s32 1, %v343_v9  ;;  %v356_v21 = vld [vmem:[%s1062_s3] sm:$0xff] }
  0x33   :  { %550 = vmatprep.subr.bf16.mxu0 %v549_v26 }
  0x34   :  { %v345_v14 = vrot.slane %v340_v11, %v1016_v10  ;;  %v349_v17 = vrot.slane %v340_v11, %v1021_v12 }
  0x35   :  { %488 = vmatpush1.bf16.msra.mxu1 %v487_v32 }
  0x36   :  { %552 = vmatpush1.bf16.msra.mxu0 %v551_v33  ;;  %490 = vmatprep.subr.bf16.mxu1 %v489_v34  ;;  %v358_v33 = vld [vmem:[%s1062_s3 + $0x10] sm:$0xff] }
  0x37   :  { %554 = vmatprep.subr.bf16.mxu0 %v553_v38 }
  0x39   :  { %492 = vmatpush1.bf16.msra.mxu1 %v491_v44 }
  0x3a   :  { %556 = vmatpush1.bf16.msra.mxu0 %v555_v45  ;;  %494 = vmatprep.subr.bf16.mxu1 %v493_v46 }
  0x3b   :  { %558 = vmatprep.subr.bf16.mxu0 %v557_v50 }
  0x3d   :  { %496 = vmatpush1.bf16.msra.mxu1 %v495_v56 }
  0x3e   :  { %560 = vmatpush1.bf16.msra.mxu0 %v559_v57  ;;  %498 = vmatprep.subr.bf16.mxu1 %v497_v58 }
  0x3f   :  { %562 = vmatprep.subr.bf16.mxu0 %v561_v61  ;;  %v397_v61 = vld [vmem:[%s1063_s4] sm:$0x3] }
  0x40   :  { %v402_v63 = vrot.slane %v397_v61, %v1016_v10 }
  0x41   :  { %500 = vmatpush1.bf16.msra.mxu1 %v499_v0  ;;  %v406_v0 = vrot.slane %v397_v61, %v1021_v12 }
  0x42   :  { %564 = vmatpush1.bf16.msra.mxu0 %v563_v1 }
  0x44   :  { %236 = vmatmul.mubr.f32.vlgmr.msra.gmra.mrb[0].mxu1 %v35_v2  ;;  %v418_v2 = vrot.slane %v413_v62, %v1016_v10 }
  0x45   :  { %313 = vmatmul.mubr.f32.vlgmr.msra.gmra.mrb[0].mxu0 %v37_v3  ;;  %241 = vmatprep.mubr.f32.mxu1 %v40_v4  ;;  %v422_v3 = vrot.slane %v413_v62, %v1021_v12 }
  0x46   :  { %318 = vmatprep.mubr.f32.mxu0 %v42_v5 }
  0x48   :  { %242 = vmatmul.mubr.f32.gmra.mrb[2].mxu1 %v39_v6 }
  0x49   :  { %319 = vmatmul.mubr.f32.gmra.mrb[2].mxu0 %v41_v7 }
 0x117   :  { %v237_v13 = vpop.f32.mrb[0].mxu1 }
 0x118   :  { %v314_v15 = vpop.f32.mrb[0].mxu0  ;;  %v239_v16 = vpop.f32.mrb[1].mxu1 }
 0x119   :  { %v315_v18 = vadd.f32 %v314_v15, %v237_v13  ;;  %v316_v19 = vpop.f32.mrb[1].mxu0 }
 0x11a   :  { %v317_v20 = vadd.f32 %v316_v19, %v239_v16 }
 0x11b   :  { %v352_v22 = vadd.f32 %v345_v14, %v315_v18  ;;  %v243_v23 = vpop.f32.mrb[2].mxu1 }
 0x11c   :  { %v353_v25 = vadd.f32 %v349_v17, %v317_v20  ;;  %v320_v26 = vpop.f32.mrb[2].mxu0  ;;  %v245_v27 = vpop.f32.mrb[3].mxu1 }
 0x11d   :  { %v321_v28 = vadd.f32 %v320_v26, %v243_v23  ;;  %v322_v29 = vpop.f32.mrb[3].mxu0  ;;  %v360_v30 = vadd.f32 %v356_v21, %v352_v22 }
 0x11e   :  { %v323_v31 = vadd.f32 %v322_v29, %v245_v27  ;;  %v361_v32 = vadd.f32 %v357_v24, %v353_v25 }
 0x11f   :  { %v354_v34 = vadd.f32 %v345_v14, %v321_v28 }
 0x120   :  { %v355_v36 = vadd.f32 %v349_v17, %v323_v31  ;;  %v364_v37 = vadd.f32 %v361_v32, %v360_v30 }
 0x121   :  { %v362_v38 = vadd.f32 %v358_v33, %v354_v34 }
 0x122   :  { %365 = vadd.xlane.f32.xlu0 %v364_v37  ;;  %v363_v39 = vadd.f32 %v359_v35, %v355_v36 }
 0x124   :  { %v367_v40 = vadd.f32 %v363_v39, %v362_v38 }
 0x126   :  { %368 = vadd.xlane.f32.xlu0 %v367_v40 }
 0x1af   :  { %v366_v41 = vpop.xlane.xlu0 %365 }
 0x1b0   :  { %v371_v42 = vmul.f32 0.00390625, %v366_v41 }
 0x1b2   :  { %v373_v43 = vsub.f32 %v360_v30, %v371_v42  ;;  %v374_v44 = vsub.f32 %v361_v32, %v371_v42 }
 0x1b3   :  { %v369_v45 = vpop.xlane.xlu0 %368 }
 0x1b4   :  { %v372_v46 = vmul.f32 0.00390625, %v369_v45  ;;  %v377_v47 = vmul.f32 %v373_v43, %v373_v43  ;;  %v378_v48 = vmul.f32 %v374_v44, %v374_v44 }
 0x1b6   :  { %v375_v49 = vsub.f32 %v362_v38, %v372_v46  ;;  %v376_v50 = vsub.f32 %v363_v39, %v372_v46  ;;  %v381_v51 = vadd.f32 %v378_v48, %v377_v47 }
 0x1b8   :  { %382 = vadd.xlane.f32.xlu1 %v381_v51  ;;  %v379_v52 = vmul.f32 %v375_v49, %v375_v49  ;;  %v380_v53 = vmul.f32 %v376_v50, %v376_v50 }
 0x1ba   :  { %v384_v54 = vadd.f32 %v380_v53, %v379_v52 }
 0x1bc   :  { %385 = vadd.xlane.f32.xlu1 %v384_v54 }
 0x245   :  { %v383_v55 = vpop.xlane.xlu1 %382 }
 0x246   :  { %v387_v56 = vmul.f32 0.00390625, %v383_v55 }
 0x248   :  { %v389_v57 = vadd.f32 1e-05, %v387_v56 }
 0x249   :  { %v386_v58 = vpop.xlane.xlu1 %385 }
 0x24a   :  { %569 = vrsqrt.f32 %v389_v57  ;;  %v388_v59 = vmul.f32 0.00390625, %v386_v58 }
 0x24c   :  { %v390_v60 = vadd.f32 1e-05, %v388_v59 }
 0x24e   :  { %571 = vrsqrt.f32 %v390_v60 }
 0x254   :  { %v570_v1 = vpop.eup %569 }
 0x255   :  { %v393_v4 = vmul.f32 %v570_v1, %v373_v43  ;;  %v394_v5 = vmul.f32 %v570_v1, %v374_v44 }
 0x257   :  { %v409_v6 = vmul.f32 %v402_v63, %v393_v4  ;;  %v410_v7 = vmul.f32 %v406_v0, %v394_v5 }
 0x258   :  { %v572_v8 = vpop.eup %571 }
 0x259   :  { %v425_v9 = vadd.f32 %v418_v2, %v409_v6  ;;  %v426_v11 = vadd.f32 %v422_v3, %v410_v7  ;;  %v395_v13 = vmul.f32 %v572_v8, %v375_v49  ;;  %v396_v14 = vmul.f32 %v572_v8, %v376_v50 }
 0x25b   :  { %429 = vst [vmem:[%s1065_s6] sm:$0xff] %v425_v9  ;;  %430 = vst [vmem:[%s1065_s6 + $0x8] sm:$0xff] %v426_v11  ;;  %v411_v10 = vmul.f32 %v402_v63, %v395_v13  ;;  %v412_v15 = vmul.f32 %v406_v0, %v396_v14 }
 0x25d   :  { %v427_v12 = vadd.f32 %v418_v2, %v411_v10  ;;  %v428_v16 = vadd.f32 %v422_v3, %v412_v15 }
 0x25f   :  { %431 = vst [vmem:[%s1065_s6 + $0x10] sm:$0xff] %v427_v12  ;;  %432 = vst [vmem:[%s1065_s6 + $0x18] sm:$0xff] %v428_v16 }

</bundles_post_ra>
